<compile_context>
chip_gen: v6e
topology: v6e:2x2x1
jax: 0.10.0
libtpu: 0.0.40
codegen_flags: <defaults>
</compile_context>

<pallas_src>
import jax
import jax.numpy as jnp
from jax.experimental import pallas as pl
from jax.experimental.pallas import tpu as pltpu

_VMEM = pl.BlockSpec(memory_space=pltpu.MemorySpace.VMEM)


# ----------------------------- helpers -------------------------------------


def _round_up(a, b):
    return (a + b - 1) // b * b


def _flat_len(H, W):
    # padded-flat length: (H+2)*(W+2) plus room for the last 3x3 tap slice.
    return _round_up((H + 2) * (W + 2) + 2, 8)


def _silu(v):
    return v * (1.0 / (1.0 + jnp.exp(-v)))


# ----------------------------- kernels -------------------------------------


def _make_residual_kernel(N, C, H, W, L):
    """One fused kernel for a whole Residual block (whole batch, no grid)."""
    Wp = W + 2
    HW2 = H * Wp
    P0 = Wp + 1                       # interior start on the padded-flat axis
    offs = tuple(ky * Wp + kx for ky in range(3) for kx in range(3))
    inv_cnt = 1.0 / float(N * H * W)  # BN batch-stat count (interior only)

    def kernel(x_ref, mask_ref, e_ref,
               ta_w1_ref, ta_b1_ref, ta_w2_ref, ta_b2_ref,
               bn1_g_ref, bn1_b_ref, bn2_g_ref, bn2_b_ref,
               w1_ref, b1_ref, w2_ref, b2_ref,
               o_ref, h1_ref, im_ref):
        x = x_ref[...]                              # (N, C, L) f32, zero halo
        interior = mask_ref[...]                    # (1, L)
        interior3 = interior[None]                  # (1, 1, L)
        valid = interior[:, P0:P0 + HW2]            # (1, HW2): valid out cols

        # --- time_adaptor MLP; both t_emb and y_emb go through it (PyTorch
        #     forward quirk). Operands kept (dim, batch) so no transposes. ---
        h = jnp.dot(ta_w1_ref[...], e_ref[...],
                    preferred_element_type=jnp.float32) + ta_b1_ref[...]
        proj = jnp.dot(ta_w2_ref[...], _silu(h),
                       preferred_element_type=jnp.float32) + ta_b2_ref[...]
        emb = proj[:, :N] + proj[:, N:]             # (C, N): t_proj + y_proj

        def _bsum(a):
            # (N, C, L) -> (C, 1): lane reduction + static batch accumulation.
            parts = jnp.sum(a, axis=2, keepdims=True)        # (N, C, 1)
            tot = parts[0]
            for n in range(1, N):
                tot = tot + parts[n]
            return tot

        def silu_bn(a, g_ref, b_ref):
            # SiLU -> BatchNorm (train mode, batch stats, two-pass variance).
            # `a` is zero on the halo and SiLU(0)=0, so sums see interior only.
            s = _silu(a)
            mean = _bsum(s) * inv_cnt                        # (C, 1)
            d = (s - mean[None]) * interior3
            var = _bsum(d * d) * inv_cnt                     # (C, 1)
            scale = g_ref[...] * jax.lax.rsqrt(var + 1e-5)
            shift = b_ref[...] - mean * scale
            return (s * scale[None] + shift[None]) * interior3   # (N,C,L) f32

        def conv(hn_n, w_ref):
            # im2col built once in VMEM: tap k is a lane-offset slice of the
            # padded-flat activation; one bf16 cast; one K=9*Cin MXU dot.
            for t, off in enumerate(offs):
                im_ref[t * C:(t + 1) * C, :] = hn_n[:, off:off + HW2]
            rhs = im_ref[...].astype(jnp.bfloat16)           # (9C, HW2)
            return jnp.dot(w_ref[...], rhs,
                           preferred_element_type=jnp.float32)   # (Cout, HW2)

        # ---- block1 (+ bias + t/y embedding), placed back onto the
        #      padded-flat grid with a zero halo for block2's taps. ----------
        hn1 = silu_bn(x, bn1_g_ref, bn1_b_ref)
        h1_ref[...] = jnp.zeros(h1_ref.shape, h1_ref.dtype)
        for n in range(N):
            y1 = conv(hn1[n], w1_ref) + b1_ref[...] + emb[:, n:n + 1]
            h1_ref[n, :, P0:P0 + HW2] = y1 * valid

        # ---- block2 + residual add (orig == x in this layout, zero halo) ---
        hn2 = silu_bn(h1_ref[...], bn2_g_ref, bn2_b_ref)
        o_ref[...] = x
        for n in range(N):
            y2 = conv(hn2[n], w2_ref) + b2_ref[...]
            o_ref[n, :, P0:P0 + HW2] = x[n, :, P0:P0 + HW2] + y2 * valid

    return kernel


def _make_downsample_kernel(N, C, H, W, L):
    """Conv3x3 stride=2 pad=1: even rows/cols selected with a one-hot matrix
    (MXU) before the weight contraction -- no full stride-1 conv, no XLA
    strided slice."""
    Wp = W + 2
    HW2 = H * Wp
    offs = tuple(ky * Wp + kx for ky in range(3) for kx in range(3))

    def kernel(x_ref, w_ref, b_ref, sel_ref, o_ref, im_ref):
        x = x_ref[...]                                   # (N, C, L), zero halo
        for n in range(N):
            for t, off in enumerate(offs):
                im_ref[t * C:(t + 1) * C, :] = x[n, :, off:off + HW2]
            rhs = im_ref[...].astype(jnp.bfloat16)       # (9C, HW2)
            # stride-2 selection (exact: one-hot columns), then the conv dot.
            rhs_s = jnp.dot(rhs, sel_ref[...],
                            preferred_element_type=jnp.float32)      # (9C, HOW)
            out = jnp.dot(w_ref[...], rhs_s.astype(jnp.bfloat16),
                          preferred_element_type=jnp.float32)        # (Cout, HOW)
            o_ref[n] = out + b_ref[...]

    return kernel


# ----------------------------- wrappers ------------------------------------


def _residual_block(xp, emb_t, mask, rp, H, W):
    N, C, L = xp.shape
    kernel = _make_residual_kernel(N, C, H, W, L)
    return pl.pallas_call(
        kernel,
        out_shape=jax.ShapeDtypeStruct((N, C, L), jnp.float32),
        in_specs=[_VMEM] * 15,
        out_specs=_VMEM,
        scratch_shapes=[pltpu.VMEM((N, C, L), jnp.float32),        # h1 (flat)
                        pltpu.VMEM((9 * C, H * (W + 2)), jnp.float32)],  # im2col
    )(xp, mask, emb_t,
      rp['ta_w1t'], rp['ta_b1c'], rp['ta_w2t'], rp['ta_b2c'],
      rp['bn1_g'], rp['bn1_b'], rp['bn2_g'], rp['bn2_b'],
      rp['conv1_wk'], rp['conv1_bc'], rp['conv2_wk'], rp['conv2_bc'])


def _downsample(xp, wk, bc, sel, H, W):
    N, C, L = xp.shape
    Cout = wk.shape[0]
    HOW = (H // 2) * (W // 2)
    kernel = _make_downsample_kernel(N, C, H, W, L)
    out = pl.pallas_call(
        kernel,
        out_shape=jax.ShapeDtypeStruct((N, Cout, HOW), jnp.float32),
        in_specs=[_VMEM] * 4,
        out_specs=_VMEM,
        scratch_shapes=[pltpu.VMEM((9 * C, H * (W + 2)), jnp.float32)],
    )(xp, wk, bc, sel)
    return out.reshape(N, Cout, H // 2, W // 2)


@jax.jit
def encoder_forward(prep, x_nchw, t_emb, y_emb):
    x = x_nchw.astype(jnp.float32)
    N, C, H, W = x.shape
    Wp = W + 2
    hwp = (H + 2) * Wp
    L = _flat_len(H, W)
    # NCHW -> padded-flat (N, C, L): spatial zero-pad by 1, flatten, tail-pad.
    # This layout is kept end-to-end (no pad/slice glue between pallas_calls).
    xp = jnp.pad(x, ((0, 0), (0, 0), (1, 1), (1, 1))).reshape(N, C, hwp)
    xp = jnp.pad(xp, ((0, 0), (0, 0), (0, L - hwp)))
    # Both embeddings go through time_adaptor; keep them (dim, 2N).
    emb_t = jnp.concatenate([t_emb, y_emb], axis=0).T.astype(jnp.float32)
    for rp in prep['res_blocks']:
        xp = _residual_block(xp, emb_t, prep['mask'], rp, H, W)
    return _downsample(xp, prep['down_wk'], prep['down_bc'], prep['sel'], H, W)


# ----------------------------- params --------------------------------------


def _init_linear(key, din, dout):
    kw, kb = jax.random.split(key)
    bound = 1.0 / (din ** 0.5)
    w = jax.random.uniform(kw, (din, dout), jnp.float32, -bound, bound)
    b = jax.random.uniform(kb, (dout,), jnp.float32, -bound, bound)
    return w, b


def _init_conv(key, cin, cout):
    kw, kb = jax.random.split(key)
    bound = 1.0 / ((cin * 9) ** 0.5)
    w = jax.random.uniform(kw, (3, 3, cin, cout), jnp.float32, -bound, bound)
    b = jax.random.uniform(kb, (cout,), jnp.float32, -bound, bound)
    return w, b


def init_residual(key, c, t_dim, y_dim):
    k = jax.random.split(key, 6)
    conv1_w, conv1_b = _init_conv(k[0], c, c)
    conv2_w, conv2_b = _init_conv(k[1], c, c)
    ta_w1, ta_b1 = _init_linear(k[2], t_dim, t_dim)
    ta_w2, ta_b2 = _init_linear(k[3], t_dim, c)
    ya_w1, ya_b1 = _init_linear(k[4], y_dim, y_dim)   # y_adaptor: created but
    ya_w2, ya_b2 = _init_linear(k[5], y_dim, c)       # unused (as in PyTorch)
    return dict(
        bn1_g=jnp.ones((c,), jnp.float32), bn1_b=jnp.zeros((c,), jnp.float32),
        bn2_g=jnp.ones((c,), jnp.float32), bn2_b=jnp.zeros((c,), jnp.float32),
        conv1_w=conv1_w, conv1_b=conv1_b,
        conv2_w=conv2_w, conv2_b=conv2_b,
        ta_w1=ta_w1, ta_b1=ta_b1, ta_w2=ta_w2, ta_b2=ta_b2,
        ya_w1=ya_w1, ya_b1=ya_b1, ya_w2=ya_w2, ya_b2=ya_b2,
    )


def init_encoder(key, cin, cout, n_res, t_dim, y_dim):
    keys = jax.random.split(key, n_res + 1)
    res = [init_residual(keys[i], cin, t_dim, y_dim) for i in range(n_res)]
    dw, db = _init_conv(keys[-1], cin, cout)
    return dict(res_blocks=res, down_w=dw, down_b=db)


def prepare_encoder_params(params, H, W):
    """One-time (outside the forward trace) conversion to kernel-ready layouts:
    conv weights -> (Cout, 9*Cin) bf16, vectors -> column form, MLP weights
    transposed, plus the interior mask and stride-2 selection matrix."""
    Wp = W + 2
    hwp = (H + 2) * Wp
    L = _flat_len(H, W)
    HW2 = H * Wp
    H_out, W_out = H // 2, W // 2

    def conv_k(w):      # (3,3,Cin,Cout) HWIO -> (Cout, 9*Cin) bf16
        return jnp.transpose(w, (3, 0, 1, 2)).reshape(
            w.shape[3], -1).astype(jnp.bfloat16)

    def col(v):         # (D,) -> (D, 1) f32
        return v.reshape(-1, 1).astype(jnp.float32)

    res = []
    for p in params['res_blocks']:
        res.append(dict(
            ta_w1t=p['ta_w1'].T.astype(jnp.float32), ta_b1c=col(p['ta_b1']),
            ta_w2t=p['ta_w2'].T.astype(jnp.float32), ta_b2c=col(p['ta_b2']),
            bn1_g=col(p['bn1_g']), bn1_b=col(p['bn1_b']),
            bn2_g=col(p['bn2_g']), bn2_b=col(p['bn2_b']),
            conv1_wk=conv_k(p['conv1_w']), conv1_bc=col(p['conv1_b']),
            conv2_wk=conv_k(p['conv2_w']), conv2_bc=col(p['conv2_b']),
        ))

    # Interior mask on the padded-flat axis (1 inside the image, 0 elsewhere).
    mask = jnp.pad(jnp.ones((H, W), jnp.float32), ((1, 1), (1, 1))).reshape(1, hwp)
    mask = jnp.pad(mask, ((0, 0), (0, L - hwp)))

    # One-hot selection matrix mapping flat stride-1 columns -> stride-2 output.
    oy, ox = jnp.divmod(jnp.arange(H_out * W_out), W_out)
    sel = (jnp.arange(HW2)[:, None] ==
           (2 * oy * Wp + 2 * ox)[None, :]).astype(jnp.bfloat16)

    return dict(res_blocks=res, mask=mask, sel=sel,
                down_wk=conv_k(params['down_w']), down_bc=col(params['down_b']))


# ----------------------------- pure-JAX reference ---------------------------


def _ref_silu_bn(x, g, b):          # x NCHW
    s = x * jax.nn.sigmoid(x)
    mean = jnp.mean(s, axis=(0, 2, 3), keepdims=True)
    var = jnp.mean((s - mean) ** 2, axis=(0, 2, 3), keepdims=True)
    out = (s - mean) * jax.lax.rsqrt(var + 1e-5)
    return out * g.reshape(1, -1, 1, 1) + b.reshape(1, -1, 1, 1)


def _ref_conv(x, w, b, stride):     # w HWIO
    out = jax.lax.conv_general_dilated(
        x, w, (stride, stride), ((1, 1), (1, 1)),
        dimension_numbers=('NCHW', 'HWIO', 'NCHW'))
    return out + b.reshape(1, -1, 1, 1)


def _ref_mlp(e, w1, b1, w2, b2):
    h = e @ w1 + b1
    h = h * jax.nn.sigmoid(h)
    return h @ w2 + b2


def _ref_encoder(params, x, t_emb, y_emb):
    for p in params['res_blocks']:
        orig = x
        h = _ref_conv(_ref_silu_bn(x, p['bn1_g'], p['bn1_b']),
                      p['conv1_w'], p['conv1_b'], 1)
        tp = _ref_mlp(t_emb, p['ta_w1'], p['ta_b1'], p['ta_w2'], p['ta_b2'])
        yp = _ref_mlp(y_emb, p['ta_w1'], p['ta_b1'], p['ta_w2'], p['ta_b2'])
        h = h + tp[:, :, None, None] + yp[:, :, None, None]
        h = _ref_conv(_ref_silu_bn(h, p['bn2_g'], p['bn2_b']),
                      p['conv2_w'], p['conv2_b'], 1)
        x = orig + h
    return _ref_conv(x, params['down_w'], params['down_b'], 2)


# ----------------------------- main -----------------------------------------

if __name__ == "__main__":
    key = jax.random.PRNGKey(0)
    k_params, kx, kt, ky = jax.random.split(key, 4)

    N, C_IN, C_OUT, H, W = 2, 4, 8, 16, 16
    N_RES = 2
    T_DIM = Y_DIM = 32   # forward requires t_emb_dim == y_emb_dim (see above)

    params = init_encoder(k_params, C_IN, C_OUT, N_RES, T_DIM, Y_DIM)
    prep = prepare_encoder_params(params, H, W)

    x = jax.random.normal(kx, (N, C_IN, H, W), jnp.float32)
    t = jax.random.normal(kt, (N, T_DIM), jnp.float32)
    y = jax.random.normal(ky, (N, Y_DIM), jnp.float32)

    out = encoder_forward(prep, x, t, y)
    out = jax.block_until_ready(out)
    assert out.shape == (N, C_OUT, H // 2, W // 2), out.shape

    ref = _ref_encoder(params, x, t, y)
    max_err = float(jnp.max(jnp.abs(out - ref)))
    assert jnp.allclose(out, ref, atol=2e-2, rtol=2e-2), f"max abs err {max_err}"

    print("KERNEL_OK")
</pallas_src>

<mosaic_0001>
module attributes {stable_mosaic.version = 11 : i64} {
  func.func @kernel(%arg0: memref<2x4x328xf32, #tpu.memory_space<vmem>>, %arg1: memref<8x36xbf16, #tpu.memory_space<vmem>>, %arg2: memref<8x1xf32, #tpu.memory_space<vmem>>, %arg3: memref<288x64xbf16, #tpu.memory_space<vmem>>, %arg4: memref<2x8x64xf32, #tpu.memory_space<vmem>>, %arg5: memref<36x288xf32, #tpu.memory_space<vmem>>) attributes {dimension_semantics = [], scalar_prefetch = 0 : i64, scratch_operands = 1 : i64, tpu.core_type = #tpu.core_type<tc>} {
    %c0 = arith.constant 0 : index
    %c0_0 = arith.constant 0 : index
    %c0_1 = arith.constant 0 : index
    %0 = vector.load %arg0[%c0, %c0_0, %c0_1] : memref<2x4x328xf32, #tpu.memory_space<vmem>>, vector<2x4x328xf32>
    %1 = vector.extract_strided_slice %0 {offsets = [0, 0, 0], sizes = [1, 4, 288], strides = [1, 1, 1]} : vector<2x4x328xf32> to vector<1x4x288xf32>
    %2 = vector.shape_cast %1 : vector<1x4x288xf32> to vector<4x288xf32>
    %c0_2 = arith.constant 0 : index
    %c0_3 = arith.constant 0 : index
    %3 = vector.load %arg5[%c0_2, %c0_3] : memref<36x288xf32, #tpu.memory_space<vmem>>, vector<4x288xf32>
    tpu.vector_store %arg5[%c0_2, %c0_3], %2 {strides = array<i32>} : memref<36x288xf32, #tpu.memory_space<vmem>>, vector<4x288xf32>,
    %4 = vector.extract_strided_slice %0 {offsets = [0, 0, 1], sizes = [1, 4, 288], strides = [1, 1, 1]} : vector<2x4x328xf32> to vector<1x4x288xf32>
    %5 = vector.shape_cast %4 : vector<1x4x288xf32> to vector<4x288xf32>
    %c4 = arith.constant 4 : index
    %c0_4 = arith.constant 0 : index
    %6 = vector.load %arg5[%c4, %c0_4] : memref<36x288xf32, #tpu.memory_space<vmem>>, vector<4x288xf32>
    tpu.vector_store %arg5[%c4, %c0_4], %5 {strides = array<i32>} : memref<36x288xf32, #tpu.memory_space<vmem>>, vector<4x288xf32>,
    %7 = vector.extract_strided_slice %0 {offsets = [0, 0, 2], sizes = [1, 4, 288], strides = [1, 1, 1]} : vector<2x4x328xf32> to vector<1x4x288xf32>
    %8 = vector.shape_cast %7 : vector<1x4x288xf32> to vector<4x288xf32>
    %c8 = arith.constant 8 : index
    %c0_5 = arith.constant 0 : index
    %9 = vector.load %arg5[%c8, %c0_5] : memref<36x288xf32, #tpu.memory_space<vmem>>, vector<4x288xf32>
    tpu.vector_store %arg5[%c8, %c0_5], %8 {strides = array<i32>} : memref<36x288xf32, #tpu.memory_space<vmem>>, vector<4x288xf32>,
    %10 = vector.extract_strided_slice %0 {offsets = [0, 0, 18], sizes = [1, 4, 288], strides = [1, 1, 1]} : vector<2x4x328xf32> to vector<1x4x288xf32>
    %11 = vector.shape_cast %10 : vector<1x4x288xf32> to vector<4x288xf32>
    %c12 = arith.constant 12 : index
    %c0_6 = arith.constant 0 : index
    %12 = vector.load %arg5[%c12, %c0_6] : memref<36x288xf32, #tpu.memory_space<vmem>>, vector<4x288xf32>
    tpu.vector_store %arg5[%c12, %c0_6], %11 {strides = array<i32>} : memref<36x288xf32, #tpu.memory_space<vmem>>, vector<4x288xf32>,
    %13 = vector.extract_strided_slice %0 {offsets = [0, 0, 19], sizes = [1, 4, 288], strides = [1, 1, 1]} : vector<2x4x328xf32> to vector<1x4x288xf32>
    %14 = vector.shape_cast %13 : vector<1x4x288xf32> to vector<4x288xf32>
    %c16 = arith.constant 16 : index
    %c0_7 = arith.constant 0 : index
    %15 = vector.load %arg5[%c16, %c0_7] : memref<36x288xf32, #tpu.memory_space<vmem>>, vector<4x288xf32>
    tpu.vector_store %arg5[%c16, %c0_7], %14 {strides = array<i32>} : memref<36x288xf32, #tpu.memory_space<vmem>>, vector<4x288xf32>,
    %16 = vector.extract_strided_slice %0 {offsets = [0, 0, 20], sizes = [1, 4, 288], strides = [1, 1, 1]} : vector<2x4x328xf32> to vector<1x4x288xf32>
    %17 = vector.shape_cast %16 : vector<1x4x288xf32> to vector<4x288xf32>
    %c20 = arith.constant 20 : index
    %c0_8 = arith.constant 0 : index
    %18 = vector.load %arg5[%c20, %c0_8] : memref<36x288xf32, #tpu.memory_space<vmem>>, vector<4x288xf32>
    tpu.vector_store %arg5[%c20, %c0_8], %17 {strides = array<i32>} : memref<36x288xf32, #tpu.memory_space<vmem>>, vector<4x288xf32>,
    %19 = vector.extract_strided_slice %0 {offsets = [0, 0, 36], sizes = [1, 4, 288], strides = [1, 1, 1]} : vector<2x4x328xf32> to vector<1x4x288xf32>
    %20 = vector.shape_cast %19 : vector<1x4x288xf32> to vector<4x288xf32>
    %c24 = arith.constant 24 : index
    %c0_9 = arith.constant 0 : index
    %21 = vector.load %arg5[%c24, %c0_9] : memref<36x288xf32, #tpu.memory_space<vmem>>, vector<4x288xf32>
    tpu.vector_store %arg5[%c24, %c0_9], %20 {strides = array<i32>} : memref<36x288xf32, #tpu.memory_space<vmem>>, vector<4x288xf32>,
    %22 = vector.extract_strided_slice %0 {offsets = [0, 0, 37], sizes = [1, 4, 288], strides = [1, 1, 1]} : vector<2x4x328xf32> to vector<1x4x288xf32>
    %23 = vector.shape_cast %22 : vector<1x4x288xf32> to vector<4x288xf32>
    %c28 = arith.constant 28 : index
    %c0_10 = arith.constant 0 : index
    %24 = vector.load %arg5[%c28, %c0_10] : memref<36x288xf32, #tpu.memory_space<vmem>>, vector<4x288xf32>
    tpu.vector_store %arg5[%c28, %c0_10], %23 {strides = array<i32>} : memref<36x288xf32, #tpu.memory_space<vmem>>, vector<4x288xf32>,
    %25 = vector.extract_strided_slice %0 {offsets = [0, 0, 38], sizes = [1, 4, 288], strides = [1, 1, 1]} : vector<2x4x328xf32> to vector<1x4x288xf32>
    %26 = vector.shape_cast %25 : vector<1x4x288xf32> to vector<4x288xf32>
    %c32 = arith.constant 32 : index
    %c0_11 = arith.constant 0 : index
    %27 = vector.load %arg5[%c32, %c0_11] : memref<36x288xf32, #tpu.memory_space<vmem>>, vector<4x288xf32>
    tpu.vector_store %arg5[%c32, %c0_11], %26 {strides = array<i32>} : memref<36x288xf32, #tpu.memory_space<vmem>>, vector<4x288xf32>,
    %c0_12 = arith.constant 0 : index
    %c0_13 = arith.constant 0 : index
    %28 = vector.load %arg5[%c0_12, %c0_13] : memref<36x288xf32, #tpu.memory_space<vmem>>, vector<36x288xf32>
    %29 = arith.truncf %28 : vector<36x288xf32> to vector<36x288xbf16>
    %c0_14 = arith.constant 0 : index
    %c0_15 = arith.constant 0 : index
    %30 = vector.load %arg3[%c0_14, %c0_15] : memref<288x64xbf16, #tpu.memory_space<vmem>>, vector<288x64xbf16>
    %cst = arith.constant dense<0.000000e+00> : vector<36x64xf32>
    %31 = tpu.matmul %29, %30, %cst {dimension_numbers = #tpu.dot_dimension_numbers<[1], [0], [0], [1], [0, 0, 1, 1], [], []>} : vector<36x288xbf16>, vector<288x64xbf16>, vector<36x64xf32> -> vector<36x64xf32>
    %c0_16 = arith.constant 0 : index
    %c0_17 = arith.constant 0 : index
    %32 = vector.load %arg1[%c0_16, %c0_17] : memref<8x36xbf16, #tpu.memory_space<vmem>>, vector<8x36xbf16>
    %33 = arith.truncf %31 : vector<36x64xf32> to vector<36x64xbf16>
    %cst_18 = arith.constant dense<0.000000e+00> : vector<8x64xf32>
    %34 = tpu.matmul %32, %33, %cst_18 {dimension_numbers = #tpu.dot_dimension_numbers<[1], [0], [0], [1], [0, 0, 1, 1], [], []>} : vector<8x36xbf16>, vector<36x64xbf16>, vector<8x64xf32> -> vector<8x64xf32>
    %c0_19 = arith.constant 0 : index
    %c0_20 = arith.constant 0 : index
    %35 = vector.load %arg2[%c0_19, %c0_20] : memref<8x1xf32, #tpu.memory_space<vmem>>, vector<8x1xf32>
    %36 = vector.broadcast %35 : vector<8x1xf32> to vector<8x64xf32>
    %37 = arith.addf %34, %36 : vector<8x64xf32>
    %c0_21 = arith.constant 0 : index
    %c0_22 = arith.constant 0 : index
    %c0_23 = arith.constant 0 : index
    %38 = vector.load %arg4[%c0_21, %c0_22, %c0_23] : memref<2x8x64xf32, #tpu.memory_space<vmem>>, vector<1x8x64xf32>
    %39 = vector.shape_cast %38 : vector<1x8x64xf32> to vector<8x64xf32>
    %40 = vector.shape_cast %37 : vector<8x64xf32> to vector<1x8x64xf32>
    tpu.vector_store %arg4[%c0_21, %c0_22, %c0_23], %40 {strides = array<i32>} : memref<2x8x64xf32, #tpu.memory_space<vmem>>, vector<1x8x64xf32>,
    %41 = vector.extract_strided_slice %0 {offsets = [1, 0, 0], sizes = [1, 4, 288], strides = [1, 1, 1]} : vector<2x4x328xf32> to vector<1x4x288xf32>
    %42 = vector.shape_cast %41 : vector<1x4x288xf32> to vector<4x288xf32>
    %c0_24 = arith.constant 0 : index
    %c0_25 = arith.constant 0 : index
    %43 = vector.load %arg5[%c0_24, %c0_25] : memref<36x288xf32, #tpu.memory_space<vmem>>, vector<4x288xf32>
    tpu.vector_store %arg5[%c0_24, %c0_25], %42 {strides = array<i32>} : memref<36x288xf32, #tpu.memory_space<vmem>>, vector<4x288xf32>,
    %44 = vector.extract_strided_slice %0 {offsets = [1, 0, 1], sizes = [1, 4, 288], strides = [1, 1, 1]} : vector<2x4x328xf32> to vector<1x4x288xf32>
    %45 = vector.shape_cast %44 : vector<1x4x288xf32> to vector<4x288xf32>
    %c4_26 = arith.constant 4 : index
    %c0_27 = arith.constant 0 : index
    %46 = vector.load %arg5[%c4_26, %c0_27] : memref<36x288xf32, #tpu.memory_space<vmem>>, vector<4x288xf32>
    tpu.vector_store %arg5[%c4_26, %c0_27], %45 {strides = array<i32>} : memref<36x288xf32, #tpu.memory_space<vmem>>, vector<4x288xf32>,
    %47 = vector.extract_strided_slice %0 {offsets = [1, 0, 2], sizes = [1, 4, 288], strides = [1, 1, 1]} : vector<2x4x328xf32> to vector<1x4x288xf32>
    %48 = vector.shape_cast %47 : vector<1x4x288xf32> to vector<4x288xf32>
    %c8_28 = arith.constant 8 : index
    %c0_29 = arith.constant 0 : index
    %49 = vector.load %arg5[%c8_28, %c0_29] : memref<36x288xf32, #tpu.memory_space<vmem>>, vector<4x288xf32>
    tpu.vector_store %arg5[%c8_28, %c0_29], %48 {strides = array<i32>} : memref<36x288xf32, #tpu.memory_space<vmem>>, vector<4x288xf32>,
    %50 = vector.extract_strided_slice %0 {offsets = [1, 0, 18], sizes = [1, 4, 288], strides = [1, 1, 1]} : vector<2x4x328xf32> to vector<1x4x288xf32>
    %51 = vector.shape_cast %50 : vector<1x4x288xf32> to vector<4x288xf32>
    %c12_30 = arith.constant 12 : index
    %c0_31 = arith.constant 0 : index
    %52 = vector.load %arg5[%c12_30, %c0_31] : memref<36x288xf32, #tpu.memory_space<vmem>>, vector<4x288xf32>
    tpu.vector_store %arg5[%c12_30, %c0_31], %51 {strides = array<i32>} : memref<36x288xf32, #tpu.memory_space<vmem>>, vector<4x288xf32>,
    %53 = vector.extract_strided_slice %0 {offsets = [1, 0, 19], sizes = [1, 4, 288], strides = [1, 1, 1]} : vector<2x4x328xf32> to vector<1x4x288xf32>
    %54 = vector.shape_cast %53 : vector<1x4x288xf32> to vector<4x288xf32>
    %c16_32 = arith.constant 16 : index
    %c0_33 = arith.constant 0 : index
    %55 = vector.load %arg5[%c16_32, %c0_33] : memref<36x288xf32, #tpu.memory_space<vmem>>, vector<4x288xf32>
    tpu.vector_store %arg5[%c16_32, %c0_33], %54 {strides = array<i32>} : memref<36x288xf32, #tpu.memory_space<vmem>>, vector<4x288xf32>,
    %56 = vector.extract_strided_slice %0 {offsets = [1, 0, 20], sizes = [1, 4, 288], strides = [1, 1, 1]} : vector<2x4x328xf32> to vector<1x4x288xf32>
    %57 = vector.shape_cast %56 : vector<1x4x288xf32> to vector<4x288xf32>
    %c20_34 = arith.constant 20 : index
    %c0_35 = arith.constant 0 : index
    %58 = vector.load %arg5[%c20_34, %c0_35] : memref<36x288xf32, #tpu.memory_space<vmem>>, vector<4x288xf32>
    tpu.vector_store %arg5[%c20_34, %c0_35], %57 {strides = array<i32>} : memref<36x288xf32, #tpu.memory_space<vmem>>, vector<4x288xf32>,
    %59 = vector.extract_strided_slice %0 {offsets = [1, 0, 36], sizes = [1, 4, 288], strides = [1, 1, 1]} : vector<2x4x328xf32> to vector<1x4x288xf32>
    %60 = vector.shape_cast %59 : vector<1x4x288xf32> to vector<4x288xf32>
    %c24_36 = arith.constant 24 : index
    %c0_37 = arith.constant 0 : index
    %61 = vector.load %arg5[%c24_36, %c0_37] : memref<36x288xf32, #tpu.memory_space<vmem>>, vector<4x288xf32>
    tpu.vector_store %arg5[%c24_36, %c0_37], %60 {strides = array<i32>} : memref<36x288xf32, #tpu.memory_space<vmem>>, vector<4x288xf32>,
    %62 = vector.extract_strided_slice %0 {offsets = [1, 0, 37], sizes = [1, 4, 288], strides = [1, 1, 1]} : vector<2x4x328xf32> to vector<1x4x288xf32>
    %63 = vector.shape_cast %62 : vector<1x4x288xf32> to vector<4x288xf32>
    %c28_38 = arith.constant 28 : index
    %c0_39 = arith.constant 0 : index
    %64 = vector.load %arg5[%c28_38, %c0_39] : memref<36x288xf32, #tpu.memory_space<vmem>>, vector<4x288xf32>
    tpu.vector_store %arg5[%c28_38, %c0_39], %63 {strides = array<i32>} : memref<36x288xf32, #tpu.memory_space<vmem>>, vector<4x288xf32>,
    %65 = vector.extract_strided_slice %0 {offsets = [1, 0, 38], sizes = [1, 4, 288], strides = [1, 1, 1]} : vector<2x4x328xf32> to vector<1x4x288xf32>
    %66 = vector.shape_cast %65 : vector<1x4x288xf32> to vector<4x288xf32>
    %c32_40 = arith.constant 32 : index
    %c0_41 = arith.constant 0 : index
    %67 = vector.load %arg5[%c32_40, %c0_41] : memref<36x288xf32, #tpu.memory_space<vmem>>, vector<4x288xf32>
    tpu.vector_store %arg5[%c32_40, %c0_41], %66 {strides = array<i32>} : memref<36x288xf32, #tpu.memory_space<vmem>>, vector<4x288xf32>,
    %c0_42 = arith.constant 0 : index
    %c0_43 = arith.constant 0 : index
    %68 = vector.load %arg5[%c0_42, %c0_43] : memref<36x288xf32, #tpu.memory_space<vmem>>, vector<36x288xf32>
    %69 = arith.truncf %68 : vector<36x288xf32> to vector<36x288xbf16>
    %c0_44 = arith.constant 0 : index
    %c0_45 = arith.constant 0 : index
    %70 = vector.load %arg3[%c0_44, %c0_45] : memref<288x64xbf16, #tpu.memory_space<vmem>>, vector<288x64xbf16>
    %cst_46 = arith.constant dense<0.000000e+00> : vector<36x64xf32>
    %71 = tpu.matmul %69, %70, %cst_46 {dimension_numbers = #tpu.dot_dimension_numbers<[1], [0], [0], [1], [0, 0, 1, 1], [], []>} : vector<36x288xbf16>, vector<288x64xbf16>, vector<36x64xf32> -> vector<36x64xf32>
    %c0_47 = arith.constant 0 : index
    %c0_48 = arith.constant 0 : index
    %72 = vector.load %arg1[%c0_47, %c0_48] : memref<8x36xbf16, #tpu.memory_space<vmem>>, vector<8x36xbf16>
    %73 = arith.truncf %71 : vector<36x64xf32> to vector<36x64xbf16>
    %cst_49 = arith.constant dense<0.000000e+00> : vector<8x64xf32>
    %74 = tpu.matmul %72, %73, %cst_49 {dimension_numbers = #tpu.dot_dimension_numbers<[1], [0], [0], [1], [0, 0, 1, 1], [], []>} : vector<8x36xbf16>, vector<36x64xbf16>, vector<8x64xf32> -> vector<8x64xf32>
    %c0_50 = arith.constant 0 : index
    %c0_51 = arith.constant 0 : index
    %75 = vector.load %arg2[%c0_50, %c0_51] : memref<8x1xf32, #tpu.memory_space<vmem>>, vector<8x1xf32>
    %76 = vector.broadcast %75 : vector<8x1xf32> to vector<8x64xf32>
    %77 = arith.addf %74, %76 : vector<8x64xf32>
    %c1 = arith.constant 1 : index
    %c0_52 = arith.constant 0 : index
    %c0_53 = arith.constant 0 : index
    %78 = vector.load %arg4[%c1, %c0_52, %c0_53] : memref<2x8x64xf32, #tpu.memory_space<vmem>>, vector<1x8x64xf32>
    %79 = vector.shape_cast %78 : vector<1x8x64xf32> to vector<8x64xf32>
    %80 = vector.shape_cast %77 : vector<8x64xf32> to vector<1x8x64xf32>
    tpu.vector_store %arg4[%c1, %c0_52, %c0_53], %80 {strides = array<i32>} : memref<2x8x64xf32, #tpu.memory_space<vmem>>, vector<1x8x64xf32>,
    return
  }
}

module attributes {stable_mosaic.version = 11 : i64} {
  func.func @kernel(%arg0: memref<2x4x328xf32, #tpu.memory_space<vmem>>, %arg1: memref<1x328xf32, #tpu.memory_space<vmem>>, %arg2: memref<32x4xf32, #tpu.memory_space<vmem>>, %arg3: memref<32x32xf32, #tpu.memory_space<vmem>>, %arg4: memref<32x1xf32, #tpu.memory_space<vmem>>, %arg5: memref<4x32xf32, #tpu.memory_space<vmem>>, %arg6: memref<4x1xf32, #tpu.memory_space<vmem>>, %arg7: memref<4x1xf32, #tpu.memory_space<vmem>>, %arg8: memref<4x1xf32, #tpu.memory_space<vmem>>, %arg9: memref<4x1xf32, #tpu.memory_space<vmem>>, %arg10: memref<4x1xf32, #tpu.memory_space<vmem>>, %arg11: memref<4x36xbf16, #tpu.memory_space<vmem>>, %arg12: memref<4x1xf32, #tpu.memory_space<vmem>>, %arg13: memref<4x36xbf16, #tpu.memory_space<vmem>>, %arg14: memref<4x1xf32, #tpu.memory_space<vmem>>, %arg15: memref<2x4x328xf32, #tpu.memory_space<vmem>>, %arg16: memref<2x4x328xf32, #tpu.memory_space<vmem>>, %arg17: memref<36x288xf32, #tpu.memory_space<vmem>>) attributes {dimension_semantics = [], scalar_prefetch = 0 : i64, scratch_operands = 2 : i64, tpu.core_type = #tpu.core_type<tc>} {
    %c0 = arith.constant 0 : index
    %c0_0 = arith.constant 0 : index
    %c0_1 = arith.constant 0 : index
    %0 = vector.load %arg0[%c0, %c0_0, %c0_1] : memref<2x4x328xf32, #tpu.memory_space<vmem>>, vector<2x4x328xf32>
    %c0_2 = arith.constant 0 : index
    %c0_3 = arith.constant 0 : index
    %1 = vector.load %arg1[%c0_2, %c0_3] : memref<1x328xf32, #tpu.memory_space<vmem>>, vector<1x328xf32>
    %2 = vector.shape_cast %1 : vector<1x328xf32> to vector<1x1x328xf32>
    %3 = vector.extract_strided_slice %1 {offsets = [0, 19], sizes = [1, 288], strides = [1, 1]} : vector<1x328xf32> to vector<1x288xf32>
    %c0_4 = arith.constant 0 : index
    %c0_5 = arith.constant 0 : index
    %4 = vector.load %arg3[%c0_4, %c0_5] : memref<32x32xf32, #tpu.memory_space<vmem>>, vector<32x32xf32>
    %c0_6 = arith.constant 0 : index
    %c0_7 = arith.constant 0 : index
    %5 = vector.load %arg2[%c0_6, %c0_7] : memref<32x4xf32, #tpu.memory_space<vmem>>, vector<32x4xf32>
    %cst = arith.constant dense<0.000000e+00> : vector<32x4xf32>
    %6 = tpu.matmul %4, %5, %cst {dimension_numbers = #tpu.dot_dimension_numbers<[1], [0], [0], [1], [0, 0, 1, 1], [], []>} : vector<32x32xf32>, vector<32x4xf32>, vector<32x4xf32> -> vector<32x4xf32>
    %c0_8 = arith.constant 0 : index
    %c0_9 = arith.constant 0 : index
    %7 = vector.load %arg4[%c0_8, %c0_9] : memref<32x1xf32, #tpu.memory_space<vmem>>, vector<32x1xf32>
    %8 = vector.broadcast %7 : vector<32x1xf32> to vector<32x4xf32>
    %9 = arith.addf %6, %8 : vector<32x4xf32>
    %c0_10 = arith.constant 0 : index
    %c0_11 = arith.constant 0 : index
    %10 = vector.load %arg5[%c0_10, %c0_11] : memref<4x32xf32, #tpu.memory_space<vmem>>, vector<4x32xf32>
    %cst_12 = arith.constant 0.000000e+00 : f32
    %11 = vector.broadcast %cst_12 : f32 to vector<32x4xf32>
    %12 = arith.subf %11, %9 : vector<32x4xf32>
    %13 = math.exp %12 : vector<32x4xf32>
    %cst_13 = arith.constant 1.000000e+00 : f32
    %14 = vector.broadcast %cst_13 : f32 to vector<32x4xf32>
    %15 = arith.addf %14, %13 : vector<32x4xf32>
    %cst_14 = arith.constant 1.000000e+00 : f32
    %16 = vector.broadcast %cst_14 : f32 to vector<32x4xf32>
    %17 = arith.divf %16, %15 : vector<32x4xf32>
    %18 = arith.mulf %9, %17 : vector<32x4xf32>
    %cst_15 = arith.constant dense<0.000000e+00> : vector<4x4xf32>
    %19 = tpu.matmul %10, %18, %cst_15 {dimension_numbers = #tpu.dot_dimension_numbers<[1], [0], [0], [1], [0, 0, 1, 1], [], []>} : vector<4x32xf32>, vector<32x4xf32>, vector<4x4xf32> -> vector<4x4xf32>
    %c0_16 = arith.constant 0 : index
    %c0_17 = arith.constant 0 : index
    %20 = vector.load %arg6[%c0_16, %c0_17] : memref<4x1xf32, #tpu.memory_space<vmem>>, vector<4x1xf32>
    %21 = vector.broadcast %20 : vector<4x1xf32> to vector<4x4xf32>
    %22 = arith.addf %19, %21 : vector<4x4xf32>
    %23 = vector.extract_strided_slice %22 {offsets = [0, 0], sizes = [4, 2], strides = [1, 1]} : vector<4x4xf32> to vector<4x2xf32>
    %24 = vector.extract_strided_slice %22 {offsets = [0, 2], sizes = [4, 2], strides = [1, 1]} : vector<4x4xf32> to vector<4x2xf32>
    %25 = arith.addf %23, %24 : vector<4x2xf32>
    %cst_18 = arith.constant 0.000000e+00 : f32
    %26 = vector.broadcast %cst_18 : f32 to vector<2x4x328xf32>
    %27 = arith.subf %26, %0 : vector<2x4x328xf32>
    %28 = math.exp %27 : vector<2x4x328xf32>
    %cst_19 = arith.constant 1.000000e+00 : f32
    %29 = vector.broadcast %cst_19 : f32 to vector<2x4x328xf32>
    %30 = arith.addf %29, %28 : vector<2x4x328xf32>
    %cst_20 = arith.constant 1.000000e+00 : f32
    %31 = vector.broadcast %cst_20 : f32 to vector<2x4x328xf32>
    %32 = arith.divf %31, %30 : vector<2x4x328xf32>
    %33 = arith.mulf %0, %32 : vector<2x4x328xf32>
    %cst_21 = arith.constant dense<0.000000e+00> : vector<2x4xf32>
    %34 = vector.multi_reduction <add>, %33, %cst_21 [2] : vector<2x4x328xf32> to vector<2x4xf32>
    %35 = vector.shape_cast %34 : vector<2x4xf32> to vector<2x4x1xf32>
    %36 = vector.extract_strided_slice %35 {offsets = [0, 0, 0], sizes = [1, 4, 1], strides = [1, 1, 1]} : vector<2x4x1xf32> to vector<1x4x1xf32>
    %37 = vector.shape_cast %36 : vector<1x4x1xf32> to vector<4x1xf32>
    %38 = vector.extract_strided_slice %35 {offsets = [1, 0, 0], sizes = [1, 4, 1], strides = [1, 1, 1]} : vector<2x4x1xf32> to vector<1x4x1xf32>
    %39 = vector.shape_cast %38 : vector<1x4x1xf32> to vector<4x1xf32>
    %40 = arith.addf %37, %39 : vector<4x1xf32>
    %cst_22 = arith.constant 0.001953125 : f32
    %41 = vector.broadcast %cst_22 : f32 to vector<4x1xf32>
    %42 = arith.mulf %40, %41 : vector<4x1xf32>
    %43 = vector.shape_cast %42 : vector<4x1xf32> to vector<1x4x1xf32>
    %44 = vector.broadcast %43 : vector<1x4x1xf32> to vector<2x4x328xf32>
    %45 = arith.subf %33, %44 : vector<2x4x328xf32>
    %46 = vector.broadcast %2 : vector<1x1x328xf32> to vector<2x4x328xf32>
    %47 = arith.mulf %45, %46 : vector<2x4x328xf32>
    %48 = arith.mulf %47, %47 : vector<2x4x328xf32>
    %cst_23 = arith.constant dense<0.000000e+00> : vector<2x4xf32>
    %49 = vector.multi_reduction <add>, %48, %cst_23 [2] : vector<2x4x328xf32> to vector<2x4xf32>
    %50 = vector.shape_cast %49 : vector<2x4xf32> to vector<2x4x1xf32>
    %51 = vector.extract_strided_slice %50 {offsets = [0, 0, 0], sizes = [1, 4, 1], strides = [1, 1, 1]} : vector<2x4x1xf32> to vector<1x4x1xf32>
    %52 = vector.shape_cast %51 : vector<1x4x1xf32> to vector<4x1xf32>
    %53 = vector.extract_strided_slice %50 {offsets = [1, 0, 0], sizes = [1, 4, 1], strides = [1, 1, 1]} : vector<2x4x1xf32> to vector<1x4x1xf32>
    %54 = vector.shape_cast %53 : vector<1x4x1xf32> to vector<4x1xf32>
    %55 = arith.addf %52, %54 : vector<4x1xf32>
    %cst_24 = arith.constant 0.001953125 : f32
    %56 = vector.broadcast %cst_24 : f32 to vector<4x1xf32>
    %57 = arith.mulf %55, %56 : vector<4x1xf32>
    %c0_25 = arith.constant 0 : index
    %c0_26 = arith.constant 0 : index
    %58 = vector.load %arg7[%c0_25, %c0_26] : memref<4x1xf32, #tpu.memory_space<vmem>>, vector<4x1xf32>
    %cst_27 = arith.constant 9.99999974E-6 : f32
    %59 = vector.broadcast %cst_27 : f32 to vector<4x1xf32>
    %60 = arith.addf %57, %59 : vector<4x1xf32>
    %61 = math.rsqrt %60 : vector<4x1xf32>
    %62 = arith.mulf %58, %61 : vector<4x1xf32>
    %c0_28 = arith.constant 0 : index
    %c0_29 = arith.constant 0 : index
    %63 = vector.load %arg8[%c0_28, %c0_29] : memref<4x1xf32, #tpu.memory_space<vmem>>, vector<4x1xf32>
    %64 = arith.mulf %42, %62 : vector<4x1xf32>
    %65 = arith.subf %63, %64 : vector<4x1xf32>
    %66 = vector.shape_cast %62 : vector<4x1xf32> to vector<1x4x1xf32>
    %67 = vector.broadcast %66 : vector<1x4x1xf32> to vector<2x4x328xf32>
    %68 = arith.mulf %33, %67 : vector<2x4x328xf32>
    %69 = vector.shape_cast %65 : vector<4x1xf32> to vector<1x4x1xf32>
    %70 = vector.broadcast %69 : vector<1x4x1xf32> to vector<2x4x328xf32>
    %71 = arith.addf %68, %70 : vector<2x4x328xf32>
    %72 = vector.broadcast %2 : vector<1x1x328xf32> to vector<2x4x328xf32>
    %73 = arith.mulf %71, %72 : vector<2x4x328xf32>
    %cst_30 = arith.constant 0.000000e+00 : f32
    %74 = vector.broadcast %cst_30 : f32 to vector<2x4x328xf32>
    %c0_31 = arith.constant 0 : index
    %c0_32 = arith.constant 0 : index
    %c0_33 = arith.constant 0 : index
    %75 = vector.load %arg16[%c0_31, %c0_32, %c0_33] : memref<2x4x328xf32, #tpu.memory_space<vmem>>, vector<2x4x328xf32>
    tpu.vector_store %arg16[%c0_31, %c0_32, %c0_33], %74 {strides = array<i32>} : memref<2x4x328xf32, #tpu.memory_space<vmem>>, vector<2x4x328xf32>,
    %76 = vector.extract_strided_slice %73 {offsets = [0, 0, 0], sizes = [1, 4, 328], strides = [1, 1, 1]} : vector<2x4x328xf32> to vector<1x4x328xf32>
    %77 = vector.shape_cast %76 : vector<1x4x328xf32> to vector<4x328xf32>
    %78 = vector.extract_strided_slice %77 {offsets = [0, 0], sizes = [4, 288], strides = [1, 1]} : vector<4x328xf32> to vector<4x288xf32>
    %c0_34 = arith.constant 0 : index
    %c0_35 = arith.constant 0 : index
    %79 = vector.load %arg17[%c0_34, %c0_35] : memref<36x288xf32, #tpu.memory_space<vmem>>, vector<4x288xf32>
    tpu.vector_store %arg17[%c0_34, %c0_35], %78 {strides = array<i32>} : memref<36x288xf32, #tpu.memory_space<vmem>>, vector<4x288xf32>,
    %80 = vector.extract_strided_slice %77 {offsets = [0, 1], sizes = [4, 288], strides = [1, 1]} : vector<4x328xf32> to vector<4x288xf32>
    %c4 = arith.constant 4 : index
    %c0_36 = arith.constant 0 : index
    %81 = vector.load %arg17[%c4, %c0_36] : memref<36x288xf32, #tpu.memory_space<vmem>>, vector<4x288xf32>
    tpu.vector_store %arg17[%c4, %c0_36], %80 {strides = array<i32>} : memref<36x288xf32, #tpu.memory_space<vmem>>, vector<4x288xf32>,
    %82 = vector.extract_strided_slice %77 {offsets = [0, 2], sizes = [4, 288], strides = [1, 1]} : vector<4x328xf32> to vector<4x288xf32>
    %c8 = arith.constant 8 : index
    %c0_37 = arith.constant 0 : index
    %83 = vector.load %arg17[%c8, %c0_37] : memref<36x288xf32, #tpu.memory_space<vmem>>, vector<4x288xf32>
    tpu.vector_store %arg17[%c8, %c0_37], %82 {strides = array<i32>} : memref<36x288xf32, #tpu.memory_space<vmem>>, vector<4x288xf32>,
    %84 = vector.extract_strided_slice %77 {offsets = [0, 18], sizes = [4, 288], strides = [1, 1]} : vector<4x328xf32> to vector<4x288xf32>
    %c12 = arith.constant 12 : index
    %c0_38 = arith.constant 0 : index
    %85 = vector.load %arg17[%c12, %c0_38] : memref<36x288xf32, #tpu.memory_space<vmem>>, vector<4x288xf32>
    tpu.vector_store %arg17[%c12, %c0_38], %84 {strides = array<i32>} : memref<36x288xf32, #tpu.memory_space<vmem>>, vector<4x288xf32>,
    %86 = vector.extract_strided_slice %77 {offsets = [0, 19], sizes = [4, 288], strides = [1, 1]} : vector<4x328xf32> to vector<4x288xf32>
    %c16 = arith.constant 16 : index
    %c0_39 = arith.constant 0 : index
    %87 = vector.load %arg17[%c16, %c0_39] : memref<36x288xf32, #tpu.memory_space<vmem>>, vector<4x288xf32>
    tpu.vector_store %arg17[%c16, %c0_39], %86 {strides = array<i32>} : memref<36x288xf32, #tpu.memory_space<vmem>>, vector<4x288xf32>,
    %88 = vector.extract_strided_slice %77 {offsets = [0, 20], sizes = [4, 288], strides = [1, 1]} : vector<4x328xf32> to vector<4x288xf32>
    %c20 = arith.constant 20 : index
    %c0_40 = arith.constant 0 : index
    %89 = vector.load %arg17[%c20, %c0_40] : memref<36x288xf32, #tpu.memory_space<vmem>>, vector<4x288xf32>
    tpu.vector_store %arg17[%c20, %c0_40], %88 {strides = array<i32>} : memref<36x288xf32, #tpu.memory_space<vmem>>, vector<4x288xf32>,
    %90 = vector.extract_strided_slice %77 {offsets = [0, 36], sizes = [4, 288], strides = [1, 1]} : vector<4x328xf32> to vector<4x288xf32>
    %c24 = arith.constant 24 : index
    %c0_41 = arith.constant 0 : index
    %91 = vector.load %arg17[%c24, %c0_41] : memref<36x288xf32, #tpu.memory_space<vmem>>, vector<4x288xf32>
    tpu.vector_store %arg17[%c24, %c0_41], %90 {strides = array<i32>} : memref<36x288xf32, #tpu.memory_space<vmem>>, vector<4x288xf32>,
    %92 = vector.extract_strided_slice %77 {offsets = [0, 37], sizes = [4, 288], strides = [1, 1]} : vector<4x328xf32> to vector<4x288xf32>
    %c28 = arith.constant 28 : index
    %c0_42 = arith.constant 0 : index
    %93 = vector.load %arg17[%c28, %c0_42] : memref<36x288xf32, #tpu.memory_space<vmem>>, vector<4x288xf32>
    tpu.vector_store %arg17[%c28, %c0_42], %92 {strides = array<i32>} : memref<36x288xf32, #tpu.memory_space<vmem>>, vector<4x288xf32>,
    %94 = vector.extract_strided_slice %77 {offsets = [0, 38], sizes = [4, 288], strides = [1, 1]} : vector<4x328xf32> to vector<4x288xf32>
    %c32 = arith.constant 32 : index
    %c0_43 = arith.constant 0 : index
    %95 = vector.load %arg17[%c32, %c0_43] : memref<36x288xf32, #tpu.memory_space<vmem>>, vector<4x288xf32>
    tpu.vector_store %arg17[%c32, %c0_43], %94 {strides = array<i32>} : memref<36x288xf32, #tpu.memory_space<vmem>>, vector<4x288xf32>,
    %c0_44 = arith.constant 0 : index
    %c0_45 = arith.constant 0 : index
    %96 = vector.load %arg17[%c0_44, %c0_45] : memref<36x288xf32, #tpu.memory_space<vmem>>, vector<36x288xf32>
    %97 = arith.truncf %96 : vector<36x288xf32> to vector<36x288xbf16>
    %c0_46 = arith.constant 0 : index
    %c0_47 = arith.constant 0 : index
    %98 = vector.load %arg11[%c0_46, %c0_47] : memref<4x36xbf16, #tpu.memory_space<vmem>>, vector<4x36xbf16>
    %cst_48 = arith.constant dense<0.000000e+00> : vector<4x288xf32>
    %99 = tpu.matmul %98, %97, %cst_48 {dimension_numbers = #tpu.dot_dimension_numbers<[1], [0], [0], [1], [0, 0, 1, 1], [], []>} : vector<4x36xbf16>, vector<36x288xbf16>, vector<4x288xf32> -> vector<4x288xf32>
    %c0_49 = arith.constant 0 : index
    %c0_50 = arith.constant 0 : index
    %100 = vector.load %arg12[%c0_49, %c0_50] : memref<4x1xf32, #tpu.memory_space<vmem>>, vector<4x1xf32>
    %101 = vector.broadcast %100 : vector<4x1xf32> to vector<4x288xf32>
    %102 = arith.addf %99, %101 : vector<4x288xf32>
    %103 = vector.extract_strided_slice %25 {offsets = [0, 0], sizes = [4, 1], strides = [1, 1]} : vector<4x2xf32> to vector<4x1xf32>
    %104 = vector.broadcast %103 : vector<4x1xf32> to vector<4x288xf32>
    %105 = arith.addf %102, %104 : vector<4x288xf32>
    %106 = vector.broadcast %3 : vector<1x288xf32> to vector<4x288xf32>
    %107 = arith.mulf %105, %106 : vector<4x288xf32>
    %c0_51 = arith.constant 0 : index
    %c0_52 = arith.constant 0 : index
    %c19 = arith.constant 19 : index
    %108 = vector.load %arg16[%c0_51, %c0_52, %c19] : memref<2x4x328xf32, #tpu.memory_space<vmem>>, vector<1x4x288xf32>
    %109 = vector.shape_cast %108 : vector<1x4x288xf32> to vector<4x288xf32>
    %110 = vector.shape_cast %107 : vector<4x288xf32> to vector<1x4x288xf32>
    tpu.vector_store %arg16[%c0_51, %c0_52, %c19], %110 {strides = array<i32>} : memref<2x4x328xf32, #tpu.memory_space<vmem>>, vector<1x4x288xf32>,
    %111 = vector.extract_strided_slice %73 {offsets = [1, 0, 0], sizes = [1, 4, 328], strides = [1, 1, 1]} : vector<2x4x328xf32> to vector<1x4x328xf32>
    %112 = vector.shape_cast %111 : vector<1x4x328xf32> to vector<4x328xf32>
    %113 = vector.extract_strided_slice %112 {offsets = [0, 0], sizes = [4, 288], strides = [1, 1]} : vector<4x328xf32> to vector<4x288xf32>
    %c0_53 = arith.constant 0 : index
    %c0_54 = arith.constant 0 : index
    %114 = vector.load %arg17[%c0_53, %c0_54] : memref<36x288xf32, #tpu.memory_space<vmem>>, vector<4x288xf32>
    tpu.vector_store %arg17[%c0_53, %c0_54], %113 {strides = array<i32>} : memref<36x288xf32, #tpu.memory_space<vmem>>, vector<4x288xf32>,
    %115 = vector.extract_strided_slice %112 {offsets = [0, 1], sizes = [4, 288], strides = [1, 1]} : vector<4x328xf32> to vector<4x288xf32>
    %c4_55 = arith.constant 4 : index
    %c0_56 = arith.constant 0 : index
    %116 = vector.load %arg17[%c4_55, %c0_56] : memref<36x288xf32, #tpu.memory_space<vmem>>, vector<4x288xf32>
    tpu.vector_store %arg17[%c4_55, %c0_56], %115 {strides = array<i32>} : memref<36x288xf32, #tpu.memory_space<vmem>>, vector<4x288xf32>,
    %117 = vector.extract_strided_slice %112 {offsets = [0, 2], sizes = [4, 288], strides = [1, 1]} : vector<4x328xf32> to vector<4x288xf32>
    %c8_57 = arith.constant 8 : index
    %c0_58 = arith.constant 0 : index
    %118 = vector.load %arg17[%c8_57, %c0_58] : memref<36x288xf32, #tpu.memory_space<vmem>>, vector<4x288xf32>
    tpu.vector_store %arg17[%c8_57, %c0_58], %117 {strides = array<i32>} : memref<36x288xf32, #tpu.memory_space<vmem>>, vector<4x288xf32>,
    %119 = vector.extract_strided_slice %112 {offsets = [0, 18], sizes = [4, 288], strides = [1, 1]} : vector<4x328xf32> to vector<4x288xf32>
    %c12_59 = arith.constant 12 : index
    %c0_60 = arith.constant 0 : index
    %120 = vector.load %arg17[%c12_59, %c0_60] : memref<36x288xf32, #tpu.memory_space<vmem>>, vector<4x288xf32>
    tpu.vector_store %arg17[%c12_59, %c0_60], %119 {strides = array<i32>} : memref<36x288xf32, #tpu.memory_space<vmem>>, vector<4x288xf32>,
    %121 = vector.extract_strided_slice %112 {offsets = [0, 19], sizes = [4, 288], strides = [1, 1]} : vector<4x328xf32> to vector<4x288xf32>
    %c16_61 = arith.constant 16 : index
    %c0_62 = arith.constant 0 : index
    %122 = vector.load %arg17[%c16_61, %c0_62] : memref<36x288xf32, #tpu.memory_space<vmem>>, vector<4x288xf32>
    tpu.vector_store %arg17[%c16_61, %c0_62], %121 {strides = array<i32>} : memref<36x288xf32, #tpu.memory_space<vmem>>, vector<4x288xf32>,
    %123 = vector.extract_strided_slice %112 {offsets = [0, 20], sizes = [4, 288], strides = [1, 1]} : vector<4x328xf32> to vector<4x288xf32>
    %c20_63 = arith.constant 20 : index
    %c0_64 = arith.constant 0 : index
    %124 = vector.load %arg17[%c20_63, %c0_64] : memref<36x288xf32, #tpu.memory_space<vmem>>, vector<4x288xf32>
    tpu.vector_store %arg17[%c20_63, %c0_64], %123 {strides = array<i32>} : memref<36x288xf32, #tpu.memory_space<vmem>>, vector<4x288xf32>,
    %125 = vector.extract_strided_slice %112 {offsets = [0, 36], sizes = [4, 288], strides = [1, 1]} : vector<4x328xf32> to vector<4x288xf32>
    %c24_65 = arith.constant 24 : index
    %c0_66 = arith.constant 0 : index
    %126 = vector.load %arg17[%c24_65, %c0_66] : memref<36x288xf32, #tpu.memory_space<vmem>>, vector<4x288xf32>
    tpu.vector_store %arg17[%c24_65, %c0_66], %125 {strides = array<i32>} : memref<36x288xf32, #tpu.memory_space<vmem>>, vector<4x288xf32>,
    %127 = vector.extract_strided_slice %112 {offsets = [0, 37], sizes = [4, 288], strides = [1, 1]} : vector<4x328xf32> to vector<4x288xf32>
    %c28_67 = arith.constant 28 : index
    %c0_68 = arith.constant 0 : index
    %128 = vector.load %arg17[%c28_67, %c0_68] : memref<36x288xf32, #tpu.memory_space<vmem>>, vector<4x288xf32>
    tpu.vector_store %arg17[%c28_67, %c0_68], %127 {strides = array<i32>} : memref<36x288xf32, #tpu.memory_space<vmem>>, vector<4x288xf32>,
    %129 = vector.extract_strided_slice %112 {offsets = [0, 38], sizes = [4, 288], strides = [1, 1]} : vector<4x328xf32> to vector<4x288xf32>
    %c32_69 = arith.constant 32 : index
    %c0_70 = arith.constant 0 : index
    %130 = vector.load %arg17[%c32_69, %c0_70] : memref<36x288xf32, #tpu.memory_space<vmem>>, vector<4x288xf32>
    tpu.vector_store %arg17[%c32_69, %c0_70], %129 {strides = array<i32>} : memref<36x288xf32, #tpu.memory_space<vmem>>, vector<4x288xf32>,
    %c0_71 = arith.constant 0 : index
    %c0_72 = arith.constant 0 : index
    %131 = vector.load %arg17[%c0_71, %c0_72] : memref<36x288xf32, #tpu.memory_space<vmem>>, vector<36x288xf32>
    %132 = arith.truncf %131 : vector<36x288xf32> to vector<36x288xbf16>
    %c0_73 = arith.constant 0 : index
    %c0_74 = arith.constant 0 : index
    %133 = vector.load %arg11[%c0_73, %c0_74] : memref<4x36xbf16, #tpu.memory_space<vmem>>, vector<4x36xbf16>
    %cst_75 = arith.constant dense<0.000000e+00> : vector<4x288xf32>
    %134 = tpu.matmul %133, %132, %cst_75 {dimension_numbers = #tpu.dot_dimension_numbers<[1], [0], [0], [1], [0, 0, 1, 1], [], []>} : vector<4x36xbf16>, vector<36x288xbf16>, vector<4x288xf32> -> vector<4x288xf32>
    %c0_76 = arith.constant 0 : index
    %c0_77 = arith.constant 0 : index
    %135 = vector.load %arg12[%c0_76, %c0_77] : memref<4x1xf32, #tpu.memory_space<vmem>>, vector<4x1xf32>
    %136 = vector.broadcast %135 : vector<4x1xf32> to vector<4x288xf32>
    %137 = arith.addf %134, %136 : vector<4x288xf32>
    %138 = vector.extract_strided_slice %25 {offsets = [0, 1], sizes = [4, 1], strides = [1, 1]} : vector<4x2xf32> to vector<4x1xf32>
    %139 = vector.broadcast %138 : vector<4x1xf32> to vector<4x288xf32>
    %140 = arith.addf %137, %139 : vector<4x288xf32>
    %141 = vector.broadcast %3 : vector<1x288xf32> to vector<4x288xf32>
    %142 = arith.mulf %140, %141 : vector<4x288xf32>
    %c1 = arith.constant 1 : index
    %c0_78 = arith.constant 0 : index
    %c19_79 = arith.constant 19 : index
    %143 = vector.load %arg16[%c1, %c0_78, %c19_79] : memref<2x4x328xf32, #tpu.memory_space<vmem>>, vector<1x4x288xf32>
    %144 = vector.shape_cast %143 : vector<1x4x288xf32> to vector<4x288xf32>
    %145 = vector.shape_cast %142 : vector<4x288xf32> to vector<1x4x288xf32>
    tpu.vector_store %arg16[%c1, %c0_78, %c19_79], %145 {strides = array<i32>} : memref<2x4x328xf32, #tpu.memory_space<vmem>>, vector<1x4x288xf32>,
    %c0_80 = arith.constant 0 : index
    %c0_81 = arith.constant 0 : index
    %c0_82 = arith.constant 0 : index
    %146 = vector.load %arg16[%c0_80, %c0_81, %c0_82] : memref<2x4x328xf32, #tpu.memory_space<vmem>>, vector<2x4x328xf32>
    %cst_83 = arith.constant 0.000000e+00 : f32
    %147 = vector.broadcast %cst_83 : f32 to vector<2x4x328xf32>
    %148 = arith.subf %147, %146 : vector<2x4x328xf32>
    %149 = math.exp %148 : vector<2x4x328xf32>
    %cst_84 = arith.constant 1.000000e+00 : f32
    %150 = vector.broadcast %cst_84 : f32 to vector<2x4x328xf32>
    %151 = arith.addf %150, %149 : vector<2x4x328xf32>
    %cst_85 = arith.constant 1.000000e+00 : f32
    %152 = vector.broadcast %cst_85 : f32 to vector<2x4x328xf32>
    %153 = arith.divf %152, %151 : vector<2x4x328xf32>
    %154 = arith.mulf %146, %153 : vector<2x4x328xf32>
    %cst_86 = arith.constant dense<0.000000e+00> : vector<2x4xf32>
    %155 = vector.multi_reduction <add>, %154, %cst_86 [2] : vector<2x4x328xf32> to vector<2x4xf32>
    %156 = vector.shape_cast %155 : vector<2x4xf32> to vector<2x4x1xf32>
    %157 = vector.extract_strided_slice %156 {offsets = [0, 0, 0], sizes = [1, 4, 1], strides = [1, 1, 1]} : vector<2x4x1xf32> to vector<1x4x1xf32>
    %158 = vector.shape_cast %157 : vector<1x4x1xf32> to vector<4x1xf32>
    %159 = vector.extract_strided_slice %156 {offsets = [1, 0, 0], sizes = [1, 4, 1], strides = [1, 1, 1]} : vector<2x4x1xf32> to vector<1x4x1xf32>
    %160 = vector.shape_cast %159 : vector<1x4x1xf32> to vector<4x1xf32>
    %161 = arith.addf %158, %160 : vector<4x1xf32>
    %cst_87 = arith.constant 0.001953125 : f32
    %162 = vector.broadcast %cst_87 : f32 to vector<4x1xf32>
    %163 = arith.mulf %161, %162 : vector<4x1xf32>
    %164 = vector.shape_cast %163 : vector<4x1xf32> to vector<1x4x1xf32>
    %165 = vector.broadcast %164 : vector<1x4x1xf32> to vector<2x4x328xf32>
    %166 = arith.subf %154, %165 : vector<2x4x328xf32>
    %167 = vector.broadcast %2 : vector<1x1x328xf32> to vector<2x4x328xf32>
    %168 = arith.mulf %166, %167 : vector<2x4x328xf32>
    %169 = arith.mulf %168, %168 : vector<2x4x328xf32>
    %cst_88 = arith.constant dense<0.000000e+00> : vector<2x4xf32>
    %170 = vector.multi_reduction <add>, %169, %cst_88 [2] : vector<2x4x328xf32> to vector<2x4xf32>
    %171 = vector.shape_cast %170 : vector<2x4xf32> to vector<2x4x1xf32>
    %172 = vector.extract_strided_slice %171 {offsets = [0, 0, 0], sizes = [1, 4, 1], strides = [1, 1, 1]} : vector<2x4x1xf32> to vector<1x4x1xf32>
    %173 = vector.shape_cast %172 : vector<1x4x1xf32> to vector<4x1xf32>
    %174 = vector.extract_strided_slice %171 {offsets = [1, 0, 0], sizes = [1, 4, 1], strides = [1, 1, 1]} : vector<2x4x1xf32> to vector<1x4x1xf32>
    %175 = vector.shape_cast %174 : vector<1x4x1xf32> to vector<4x1xf32>
    %176 = arith.addf %173, %175 : vector<4x1xf32>
    %cst_89 = arith.constant 0.001953125 : f32
    %177 = vector.broadcast %cst_89 : f32 to vector<4x1xf32>
    %178 = arith.mulf %176, %177 : vector<4x1xf32>
    %c0_90 = arith.constant 0 : index
    %c0_91 = arith.constant 0 : index
    %179 = vector.load %arg9[%c0_90, %c0_91] : memref<4x1xf32, #tpu.memory_space<vmem>>, vector<4x1xf32>
    %cst_92 = arith.constant 9.99999974E-6 : f32
    %180 = vector.broadcast %cst_92 : f32 to vector<4x1xf32>
    %181 = arith.addf %178, %180 : vector<4x1xf32>
    %182 = math.rsqrt %181 : vector<4x1xf32>
    %183 = arith.mulf %179, %182 : vector<4x1xf32>
    %c0_93 = arith.constant 0 : index
    %c0_94 = arith.constant 0 : index
    %184 = vector.load %arg10[%c0_93, %c0_94] : memref<4x1xf32, #tpu.memory_space<vmem>>, vector<4x1xf32>
    %185 = arith.mulf %163, %183 : vector<4x1xf32>
    %186 = arith.subf %184, %185 : vector<4x1xf32>
    %187 = vector.shape_cast %183 : vector<4x1xf32> to vector<1x4x1xf32>
    %188 = vector.broadcast %187 : vector<1x4x1xf32> to vector<2x4x328xf32>
    %189 = arith.mulf %154, %188 : vector<2x4x328xf32>
    %190 = vector.shape_cast %186 : vector<4x1xf32> to vector<1x4x1xf32>
    %191 = vector.broadcast %190 : vector<1x4x1xf32> to vector<2x4x328xf32>
    %192 = arith.addf %189, %191 : vector<2x4x328xf32>
    %193 = vector.broadcast %2 : vector<1x1x328xf32> to vector<2x4x328xf32>
    %194 = arith.mulf %192, %193 : vector<2x4x328xf32>
    %c0_95 = arith.constant 0 : index
    %c0_96 = arith.constant 0 : index
    %c0_97 = arith.constant 0 : index
    %195 = vector.load %arg15[%c0_95, %c0_96, %c0_97] : memref<2x4x328xf32, #tpu.memory_space<vmem>>, vector<2x4x328xf32>
    tpu.vector_store %arg15[%c0_95, %c0_96, %c0_97], %0 {strides = array<i32>} : memref<2x4x328xf32, #tpu.memory_space<vmem>>, vector<2x4x328xf32>,
    %196 = vector.extract_strided_slice %194 {offsets = [0, 0, 0], sizes = [1, 4, 328], strides = [1, 1, 1]} : vector<2x4x328xf32> to vector<1x4x328xf32>
    %197 = vector.shape_cast %196 : vector<1x4x328xf32> to vector<4x328xf32>
    %198 = vector.extract_strided_slice %197 {offsets = [0, 0], sizes = [4, 288], strides = [1, 1]} : vector<4x328xf32> to vector<4x288xf32>
    %c0_98 = arith.constant 0 : index
    %c0_99 = arith.constant 0 : index
    %199 = vector.load %arg17[%c0_98, %c0_99] : memref<36x288xf32, #tpu.memory_space<vmem>>, vector<4x288xf32>
    tpu.vector_store %arg17[%c0_98, %c0_99], %198 {strides = array<i32>} : memref<36x288xf32, #tpu.memory_space<vmem>>, vector<4x288xf32>,
    %200 = vector.extract_strided_slice %197 {offsets = [0, 1], sizes = [4, 288], strides = [1, 1]} : vector<4x328xf32> to vector<4x288xf32>
    %c4_100 = arith.constant 4 : index
    %c0_101 = arith.constant 0 : index
    %201 = vector.load %arg17[%c4_100, %c0_101] : memref<36x288xf32, #tpu.memory_space<vmem>>, vector<4x288xf32>
    tpu.vector_store %arg17[%c4_100, %c0_101], %200 {strides = array<i32>} : memref<36x288xf32, #tpu.memory_space<vmem>>, vector<4x288xf32>,
    %202 = vector.extract_strided_slice %197 {offsets = [0, 2], sizes = [4, 288], strides = [1, 1]} : vector<4x328xf32> to vector<4x288xf32>
    %c8_102 = arith.constant 8 : index
    %c0_103 = arith.constant 0 : index
    %203 = vector.load %arg17[%c8_102, %c0_103] : memref<36x288xf32, #tpu.memory_space<vmem>>, vector<4x288xf32>
    tpu.vector_store %arg17[%c8_102, %c0_103], %202 {strides = array<i32>} : memref<36x288xf32, #tpu.memory_space<vmem>>, vector<4x288xf32>,
    %204 = vector.extract_strided_slice %197 {offsets = [0, 18], sizes = [4, 288], strides = [1, 1]} : vector<4x328xf32> to vector<4x288xf32>
    %c12_104 = arith.constant 12 : index
    %c0_105 = arith.constant 0 : index
    %205 = vector.load %arg17[%c12_104, %c0_105] : memref<36x288xf32, #tpu.memory_space<vmem>>, vector<4x288xf32>
    tpu.vector_store %arg17[%c12_104, %c0_105], %204 {strides = array<i32>} : memref<36x288xf32, #tpu.memory_space<vmem>>, vector<4x288xf32>,
    %206 = vector.extract_strided_slice %197 {offsets = [0, 19], sizes = [4, 288], strides = [1, 1]} : vector<4x328xf32> to vector<4x288xf32>
    %c16_106 = arith.constant 16 : index
    %c0_107 = arith.constant 0 : index
    %207 = vector.load %arg17[%c16_106, %c0_107] : memref<36x288xf32, #tpu.memory_space<vmem>>, vector<4x288xf32>
    tpu.vector_store %arg17[%c16_106, %c0_107], %206 {strides = array<i32>} : memref<36x288xf32, #tpu.memory_space<vmem>>, vector<4x288xf32>,
    %208 = vector.extract_strided_slice %197 {offsets = [0, 20], sizes = [4, 288], strides = [1, 1]} : vector<4x328xf32> to vector<4x288xf32>
    %c20_108 = arith.constant 20 : index
    %c0_109 = arith.constant 0 : index
    %209 = vector.load %arg17[%c20_108, %c0_109] : memref<36x288xf32, #tpu.memory_space<vmem>>, vector<4x288xf32>
    tpu.vector_store %arg17[%c20_108, %c0_109], %208 {strides = array<i32>} : memref<36x288xf32, #tpu.memory_space<vmem>>, vector<4x288xf32>,
    %210 = vector.extract_strided_slice %197 {offsets = [0, 36], sizes = [4, 288], strides = [1, 1]} : vector<4x328xf32> to vector<4x288xf32>
    %c24_110 = arith.constant 24 : index
    %c0_111 = arith.constant 0 : index
    %211 = vector.load %arg17[%c24_110, %c0_111] : memref<36x288xf32, #tpu.memory_space<vmem>>, vector<4x288xf32>
    tpu.vector_store %arg17[%c24_110, %c0_111], %210 {strides = array<i32>} : memref<36x288xf32, #tpu.memory_space<vmem>>, vector<4x288xf32>,
    %212 = vector.extract_strided_slice %197 {offsets = [0, 37], sizes = [4, 288], strides = [1, 1]} : vector<4x328xf32> to vector<4x288xf32>
    %c28_112 = arith.constant 28 : index
    %c0_113 = arith.constant 0 : index
    %213 = vector.load %arg17[%c28_112, %c0_113] : memref<36x288xf32, #tpu.memory_space<vmem>>, vector<4x288xf32>
    tpu.vector_store %arg17[%c28_112, %c0_113], %212 {strides = array<i32>} : memref<36x288xf32, #tpu.memory_space<vmem>>, vector<4x288xf32>,
    %214 = vector.extract_strided_slice %197 {offsets = [0, 38], sizes = [4, 288], strides = [1, 1]} : vector<4x328xf32> to vector<4x288xf32>
    %c32_114 = arith.constant 32 : index
    %c0_115 = arith.constant 0 : index
    %215 = vector.load %arg17[%c32_114, %c0_115] : memref<36x288xf32, #tpu.memory_space<vmem>>, vector<4x288xf32>
    tpu.vector_store %arg17[%c32_114, %c0_115], %214 {strides = array<i32>} : memref<36x288xf32, #tpu.memory_space<vmem>>, vector<4x288xf32>,
    %c0_116 = arith.constant 0 : index
    %c0_117 = arith.constant 0 : index
    %216 = vector.load %arg17[%c0_116, %c0_117] : memref<36x288xf32, #tpu.memory_space<vmem>>, vector<36x288xf32>
    %217 = arith.truncf %216 : vector<36x288xf32> to vector<36x288xbf16>
    %c0_118 = arith.constant 0 : index
    %c0_119 = arith.constant 0 : index
    %218 = vector.load %arg13[%c0_118, %c0_119] : memref<4x36xbf16, #tpu.memory_space<vmem>>, vector<4x36xbf16>
    %cst_120 = arith.constant dense<0.000000e+00> : vector<4x288xf32>
    %219 = tpu.matmul %218, %217, %cst_120 {dimension_numbers = #tpu.dot_dimension_numbers<[1], [0], [0], [1], [0, 0, 1, 1], [], []>} : vector<4x36xbf16>, vector<36x288xbf16>, vector<4x288xf32> -> vector<4x288xf32>
    %c0_121 = arith.constant 0 : index
    %c0_122 = arith.constant 0 : index
    %220 = vector.load %arg14[%c0_121, %c0_122] : memref<4x1xf32, #tpu.memory_space<vmem>>, vector<4x1xf32>
    %221 = vector.broadcast %220 : vector<4x1xf32> to vector<4x288xf32>
    %222 = arith.addf %219, %221 : vector<4x288xf32>
    %223 = vector.extract_strided_slice %0 {offsets = [0, 0, 19], sizes = [1, 4, 288], strides = [1, 1, 1]} : vector<2x4x328xf32> to vector<1x4x288xf32>
    %224 = vector.shape_cast %223 : vector<1x4x288xf32> to vector<4x288xf32>
    %225 = vector.broadcast %3 : vector<1x288xf32> to vector<4x288xf32>
    %226 = arith.mulf %222, %225 : vector<4x288xf32>
    %227 = arith.addf %224, %226 : vector<4x288xf32>
    %c0_123 = arith.constant 0 : index
    %c0_124 = arith.constant 0 : index
    %c19_125 = arith.constant 19 : index
    %228 = vector.load %arg15[%c0_123, %c0_124, %c19_125] : memref<2x4x328xf32, #tpu.memory_space<vmem>>, vector<1x4x288xf32>
    %229 = vector.shape_cast %228 : vector<1x4x288xf32> to vector<4x288xf32>
    %230 = vector.shape_cast %227 : vector<4x288xf32> to vector<1x4x288xf32>
    tpu.vector_store %arg15[%c0_123, %c0_124, %c19_125], %230 {strides = array<i32>} : memref<2x4x328xf32, #tpu.memory_space<vmem>>, vector<1x4x288xf32>,
    %231 = vector.extract_strided_slice %194 {offsets = [1, 0, 0], sizes = [1, 4, 328], strides = [1, 1, 1]} : vector<2x4x328xf32> to vector<1x4x328xf32>
    %232 = vector.shape_cast %231 : vector<1x4x328xf32> to vector<4x328xf32>
    %233 = vector.extract_strided_slice %232 {offsets = [0, 0], sizes = [4, 288], strides = [1, 1]} : vector<4x328xf32> to vector<4x288xf32>
    %c0_126 = arith.constant 0 : index
    %c0_127 = arith.constant 0 : index
    %234 = vector.load %arg17[%c0_126, %c0_127] : memref<36x288xf32, #tpu.memory_space<vmem>>, vector<4x288xf32>
    tpu.vector_store %arg17[%c0_126, %c0_127], %233 {strides = array<i32>} : memref<36x288xf32, #tpu.memory_space<vmem>>, vector<4x288xf32>,
    %235 = vector.extract_strided_slice %232 {offsets = [0, 1], sizes = [4, 288], strides = [1, 1]} : vector<4x328xf32> to vector<4x288xf32>
    %c4_128 = arith.constant 4 : index
    %c0_129 = arith.constant 0 : index
    %236 = vector.load %arg17[%c4_128, %c0_129] : memref<36x288xf32, #tpu.memory_space<vmem>>, vector<4x288xf32>
    tpu.vector_store %arg17[%c4_128, %c0_129], %235 {strides = array<i32>} : memref<36x288xf32, #tpu.memory_space<vmem>>, vector<4x288xf32>,
    %237 = vector.extract_strided_slice %232 {offsets = [0, 2], sizes = [4, 288], strides = [1, 1]} : vector<4x328xf32> to vector<4x288xf32>
    %c8_130 = arith.constant 8 : index
    %c0_131 = arith.constant 0 : index
    %238 = vector.load %arg17[%c8_130, %c0_131] : memref<36x288xf32, #tpu.memory_space<vmem>>, vector<4x288xf32>
    tpu.vector_store %arg17[%c8_130, %c0_131], %237 {strides = array<i32>} : memref<36x288xf32, #tpu.memory_space<vmem>>, vector<4x288xf32>,
    %239 = vector.extract_strided_slice %232 {offsets = [0, 18], sizes = [4, 288], strides = [1, 1]} : vector<4x328xf32> to vector<4x288xf32>
    %c12_132 = arith.constant 12 : index
    %c0_133 = arith.constant 0 : index
    %240 = vector.load %arg17[%c12_132, %c0_133] : memref<36x288xf32, #tpu.memory_space<vmem>>, vector<4x288xf32>
    tpu.vector_store %arg17[%c12_132, %c0_133], %239 {strides = array<i32>} : memref<36x288xf32, #tpu.memory_space<vmem>>, vector<4x288xf32>,
    %241 = vector.extract_strided_slice %232 {offsets = [0, 19], sizes = [4, 288], strides = [1, 1]} : vector<4x328xf32> to vector<4x288xf32>
    %c16_134 = arith.constant 16 : index
    %c0_135 = arith.constant 0 : index
    %242 = vector.load %arg17[%c16_134, %c0_135] : memref<36x288xf32, #tpu.memory_space<vmem>>, vector<4x288xf32>
    tpu.vector_store %arg17[%c16_134, %c0_135], %241 {strides = array<i32>} : memref<36x288xf32, #tpu.memory_space<vmem>>, vector<4x288xf32>,
    %243 = vector.extract_strided_slice %232 {offsets = [0, 20], sizes = [4, 288], strides = [1, 1]} : vector<4x328xf32> to vector<4x288xf32>
    %c20_136 = arith.constant 20 : index
    %c0_137 = arith.constant 0 : index
    %244 = vector.load %arg17[%c20_136, %c0_137] : memref<36x288xf32, #tpu.memory_space<vmem>>, vector<4x288xf32>
    tpu.vector_store %arg17[%c20_136, %c0_137], %243 {strides = array<i32>} : memref<36x288xf32, #tpu.memory_space<vmem>>, vector<4x288xf32>,
    %245 = vector.extract_strided_slice %232 {offsets = [0, 36], sizes = [4, 288], strides = [1, 1]} : vector<4x328xf32> to vector<4x288xf32>
    %c24_138 = arith.constant 24 : index
    %c0_139 = arith.constant 0 : index
    %246 = vector.load %arg17[%c24_138, %c0_139] : memref<36x288xf32, #tpu.memory_space<vmem>>, vector<4x288xf32>
    tpu.vector_store %arg17[%c24_138, %c0_139], %245 {strides = array<i32>} : memref<36x288xf32, #tpu.memory_space<vmem>>, vector<4x288xf32>,
    %247 = vector.extract_strided_slice %232 {offsets = [0, 37], sizes = [4, 288], strides = [1, 1]} : vector<4x328xf32> to vector<4x288xf32>
    %c28_140 = arith.constant 28 : index
    %c0_141 = arith.constant 0 : index
    %248 = vector.load %arg17[%c28_140, %c0_141] : memref<36x288xf32, #tpu.memory_space<vmem>>, vector<4x288xf32>
    tpu.vector_store %arg17[%c28_140, %c0_141], %247 {strides = array<i32>} : memref<36x288xf32, #tpu.memory_space<vmem>>, vector<4x288xf32>,
    %249 = vector.extract_strided_slice %232 {offsets = [0, 38], sizes = [4, 288], strides = [1, 1]} : vector<4x328xf32> to vector<4x288xf32>
    %c32_142 = arith.constant 32 : index
    %c0_143 = arith.constant 0 : index
    %250 = vector.load %arg17[%c32_142, %c0_143] : memref<36x288xf32, #tpu.memory_space<vmem>>, vector<4x288xf32>
    tpu.vector_store %arg17[%c32_142, %c0_143], %249 {strides = array<i32>} : memref<36x288xf32, #tpu.memory_space<vmem>>, vector<4x288xf32>,
    %c0_144 = arith.constant 0 : index
    %c0_145 = arith.constant 0 : index
    %251 = vector.load %arg17[%c0_144, %c0_145] : memref<36x288xf32, #tpu.memory_space<vmem>>, vector<36x288xf32>
    %252 = arith.truncf %251 : vector<36x288xf32> to vector<36x288xbf16>
    %c0_146 = arith.constant 0 : index
    %c0_147 = arith.constant 0 : index
    %253 = vector.load %arg13[%c0_146, %c0_147] : memref<4x36xbf16, #tpu.memory_space<vmem>>, vector<4x36xbf16>
    %cst_148 = arith.constant dense<0.000000e+00> : vector<4x288xf32>
    %254 = tpu.matmul %253, %252, %cst_148 {dimension_numbers = #tpu.dot_dimension_numbers<[1], [0], [0], [1], [0, 0, 1, 1], [], []>} : vector<4x36xbf16>, vector<36x288xbf16>, vector<4x288xf32> -> vector<4x288xf32>
    %c0_149 = arith.constant 0 : index
    %c0_150 = arith.constant 0 : index
    %255 = vector.load %arg14[%c0_149, %c0_150] : memref<4x1xf32, #tpu.memory_space<vmem>>, vector<4x1xf32>
    %256 = vector.broadcast %255 : vector<4x1xf32> to vector<4x288xf32>
    %257 = arith.addf %254, %256 : vector<4x288xf32>
    %258 = vector.extract_strided_slice %0 {offsets = [1, 0, 19], sizes = [1, 4, 288], strides = [1, 1, 1]} : vector<2x4x328xf32> to vector<1x4x288xf32>
    %259 = vector.shape_cast %258 : vector<1x4x288xf32> to vector<4x288xf32>
    %260 = vector.broadcast %3 : vector<1x288xf32> to vector<4x288xf32>
    %261 = arith.mulf %257, %260 : vector<4x288xf32>
    %262 = arith.addf %259, %261 : vector<4x288xf32>
    %c1_151 = arith.constant 1 : index
    %c0_152 = arith.constant 0 : index
    %c19_153 = arith.constant 19 : index
    %263 = vector.load %arg15[%c1_151, %c0_152, %c19_153] : memref<2x4x328xf32, #tpu.memory_space<vmem>>, vector<1x4x288xf32>
    %264 = vector.shape_cast %263 : vector<1x4x288xf32> to vector<4x288xf32>
    %265 = vector.shape_cast %262 : vector<4x288xf32> to vector<1x4x288xf32>
    tpu.vector_store %arg15[%c1_151, %c0_152, %c19_153], %265 {strides = array<i32>} : memref<2x4x328xf32, #tpu.memory_space<vmem>>, vector<1x4x288xf32>,
    return
  }
}

</mosaic_0001>

<bundles_post_ra>
// kernel: encoder_forward.5
= control target key start
LH: loop header
LB: loop body
LE: loop exit
PB: predicated region body
PF: predicated region fallthrough
CT: control target
= control target key end

     0   :  { %vm28_vm0 = vcmask 257024   ;;  %s1207_s17 = smov 126   ;;  %s1208_s22 = smov 127   ;;  %v1209_v9 = vmov 0.0   ;;  %vm1210_vm1 = vmmov 0   ;;  %vm54_vm2 = vcmask 1031168   ;;  %s1566_s0 = inlined_call_operand.vmem [shape: f32[2,4,328], index: 0, kind: input, shape index: {}]   ;;  %s1567_s3 = inlined_call_operand.vmem [shape: bf16[288,64], index: 3, kind: input, shape index: {}]   ;;  %s1568_s2 = inlined_call_operand.vmem [shape: f32[8,1], index: 2, kind: input, shape index: {}]   ;;  %s1569_s1 = inlined_call_operand.vmem [shape: bf16[8,36], index: 1, kind: input, shape index: {}]   ;;  %s1570_s4 = inlined_call_operand.vmem [shape: f32[2,8,64], index: 4, kind: output, shape index: {}]  }
   0x1   :  { %v1246_v0 = vld [vmem:[%s1566_s0 + $0x8] sm:$0xf]  ;;  %v1253_v1 = vld [vmem:[%s1566_s0] sm:$0xff]  ;;  %v1171_v2 = vld [vmem:[%s1567_s3 + $0x78] sm:$0xff]   ;;  %1106 = vmatprep.subr.bf16.mxu1 %v1209_v9  ;;  %1110 = vmatprep.mubr.msk.bf16.mxu1 %vm1210_vm1, %v1209_v9  ;;  %s1211_s5 = smov 110   ;;  %s1212_s19 = smov 109  }
   0x2   :  { %52 = vrot.lane.b32.xlu1 %v1246_v0, %s1207_s17  ;;  %29 = vst.msk [vmem:[#allocation2 + $0x10] sm:$0xf] %vm28_vm0, %v1246_v0  ;;  %26 = vst [vmem:[#allocation2] sm:$0xf] %v1253_v1  ;;  %34 = vrot.lane.b32.xlu0 %v1253_v1, %s1208_s22  ;;  %v1265_v3 = vcombine.low %v1246_v0, %v1246_v0  ;;  %v1269_v4 = vcombine.high %v1253_v1, %v1253_v1  ;;  %v1172_v5 = vld [vmem:[%s1567_s3 + $0x38] sm:$0xff]   ;;  %v1173_v6 = vld [vmem:[%s1567_s3 + $0x70] sm:$0xff]  }
   0x3   :  { %1020 = vmatprep.subr.bf16.mxu0 %v1171_v2  ;;  %v1174_v7 = vld [vmem:[%s1567_s3 + $0x30] sm:$0xff]   ;;  %v1175_v8 = vld [vmem:[%s1567_s3 + $0x68] sm:$0xff]   ;;  %v30_v11 = vcombine.low %v1253_v1, %v1253_v1  ;;  %v1177_v12 = vld [vmem:[%s1567_s3 + $0x60] sm:$0xff]   ;;  %s1213_s29 = smov 108   ;;  %s1214_s9 = smov 92   ;;  %vm38_vm3 = vcmask 1039360  }
   0x4   :  { %27 = vst [vmem:[#allocation2 + $0x8] sm:$0xf] %v1269_v4  ;;  %1021 = vmatpush3.bf16.msra.mxu0 %v1172_v5  ;;  %v1176_v10 = vld [vmem:[%s1567_s3 + $0x28] sm:$0xff]   ;;  %v1178_v14 = vld [vmem:[%s1567_s3 + $0x20] sm:$0xff]   ;;  %v1179_v15 = vld [vmem:[%s1567_s3 + $0x58] sm:$0xff]   ;;  %s1215_s12 = smov 91  }
   0x5   :  { %1022 = vmatprep.subr.bf16.mxu0 %v1173_v6  ;;  %v1180_v13 = vld [vmem:[%s1567_s3 + $0x88] sm:$0xff]   ;;  %v1183_v16 = vld [vmem:[%s1567_s3 + $0x80] sm:$0xff]   ;;  %v1181_v17 = vld [vmem:[%s1567_s3 + $0x18] sm:$0xff]   ;;  %s1216_s13 = smov 90   ;;  %vm46_vm4 = vcmask 261124   ;;  %vm69_vm5 = vcmask 900096  }
   0x6   :  { %50 = vrot.lane.b32.xlu1 %v1269_v4, %s1207_s17  ;;  %36 = vrot.lane.b32.xlu0 %v1265_v3, %s1208_s22  ;;  %v1182_v18 = vld [vmem:[%s1567_s3 + $0x50] sm:$0xff]   ;;  %v1185_v20 = vld [vmem:[%s1567_s3 + $0x48] sm:$0xff]   ;;  %vm321_vm6 = vcmask 261120   ;;  %vm84_vm7 = vcmask 891904   ;;  %vm99_vm8 = vcmask 883712   ;;  %vm114_vm9 = vcmask 752640  }
   0x7   :  { %1107 = vmatpush3.bf16.msra.mxu1 %v1180_v13  ;;  %v1184_v19 = vld [vmem:[%s1567_s3 + $0x10] sm:$0xff]   ;;  %v1186_v21 = vld [vmem:[%s1567_s3 + $0x8] sm:$0xff]   ;;  %v1187_v22 = vld [vmem:[%s1567_s3 + $0x40] sm:$0xff]   ;;  %vm129_vm10 = vcmask 744448   ;;  %vm144_vm11 = vcmask 736256   ;;  %vm457_vm12 = vcmask 1041408  }
   0x8   :  { %1023 = vmatpush3.bf16.msra.mxu0 %v1174_v7  ;;  %1108 = vmatprep.subr.bf16.mxu1 %v1209_v9  ;;  %v1188_v23 = vld [vmem:[%s1567_s3] sm:$0xff]   ;;  %v21_v24 = vld [vmem:[%s1566_s0 + $0x14] sm:$0xf]  ;;  %v1376_v25 = vld [vmem:[%s1566_s0 + $0xc] sm:$0xff]  ;;  %vm453_vm13 = vcmask 293888   ;;  %vm501_vm14 = vcmask 523264  }
   0x9   :  { %1024 = vmatprep.subr.bf16.mxu0 %v1175_v8  ;;  %v511_v26 = vcombine.low %v21_v24, %v21_v24  ;;  %v1189_v27 = vld [vmem:[%s1567_s3 + $0x78] sm:$0xff]   ;;  %v505_v28 = vcombine.high %v1376_v25, %v1376_v25  ;;  %v510_v29 = vcombine.low %v1376_v25, %v1376_v25 }
   0xa   :  { %67 = vrot.lane.b32.xlu1 %v1265_v3, %s1211_s5  ;;  %65 = vrot.lane.b32.xlu0 %v1253_v1, %s1211_s5  ;;  %v1190_v60 = vld [vmem:[%s1567_s3 + $0x38] sm:$0xff]  }
   0xb   :  { %1109 = vmatpush3.bf16.msra.mxu1 %v1183_v16 }
   0xc   :  { %1025 = vmatpush3.bf16.msra.mxu0 %v1176_v10  ;;  %1122 = vmatprep.subr.bf16.mxu1 %v1209_v9 }
   0xd   :  { %1026 = vmatprep.subr.bf16.mxu0 %v1177_v12 }
   0xe   :  { %48 = vrot.lane.b32.xlu1 %v1253_v1, %s1207_s17  ;;  %32 = vrot.lane.b32.xlu0 %v30_v11, %s1208_s22 }
  0x10   :  { %1027 = vmatpush3.bf16.msra.mxu0 %v1178_v14 }
  0x11   :  { %1028 = vmatprep.subr.bf16.mxu0 %v1179_v15 }
  0x12   :  { %80 = vrot.lane.b32.xlu1 %v1269_v4, %s1212_s19  ;;  %63 = vrot.lane.b32.xlu0 %v30_v11, %s1211_s5 }
  0x14   :  { %1029 = vmatpush3.bf16.msra.mxu0 %v1181_v17 }
  0x15   :  { %1030 = vmatprep.subr.bf16.mxu0 %v1182_v18 }
  0x16   :  { %95 = vrot.lane.b32.xlu1 %v1253_v1, %s1213_s29  ;;  %82 = vrot.lane.b32.xlu0 %v1246_v0, %s1212_s19 }
  0x18   :  { %1031 = vmatpush3.bf16.msra.mxu0 %v1184_v19 }
  0x19   :  { %1032 = vmatprep.subr.bf16.mxu0 %v1185_v20 }
  0x1a   :  { %110 = vrot.lane.b32.xlu1 %v1269_v4, %s1214_s9  ;;  %97 = vrot.lane.b32.xlu0 %v1265_v3, %s1213_s29 }
  0x1c   :  { %1033 = vmatpush3.bf16.msra.mxu0 %v1186_v21 }
  0x1d   :  { %1034 = vmatprep.subr.bf16.mxu0 %v1187_v22 }
  0x1e   :  { %125 = vrot.lane.b32.xlu1 %v1253_v1, %s1215_s12  ;;  %112 = vrot.lane.b32.xlu0 %v1246_v0, %s1214_s9 }
  0x20   :  { %1035 = vmatpush3.bf16.msra.mxu0 %v1188_v23 }
  0x21   :  { %1063 = vmatprep.subr.bf16.mxu0 %v1189_v27 }
  0x22   :  { %78 = vrot.lane.b32.xlu1 %v1253_v1, %s1212_s19  ;;  %127 = vrot.lane.b32.xlu0 %v1265_v3, %s1215_s12 }
  0x26   :  { %108 = vrot.lane.b32.xlu1 %v1253_v1, %s1214_s9  ;;  %93 = vrot.lane.b32.xlu0 %v30_v11, %s1213_s29 }
  0x2a   :  { %140 = vrot.lane.b32.xlu1 %v1269_v4, %s1216_s13  ;;  %123 = vrot.lane.b32.xlu0 %v30_v11, %s1215_s12 }
  0x2e   :  { %138 = vrot.lane.b32.xlu1 %v1253_v1, %s1216_s13  ;;  %142 = vrot.lane.b32.xlu0 %v1246_v0, %s1216_s13 }
  0x32   :  { %514 = vrot.lane.b32.xlu0 %v1376_v25, %s1208_s22  ;;  %516 = vrot.lane.b32.xlu1 %v511_v26, %s1208_s22 }
  0x36   :  { %528 = vrot.lane.b32.xlu0 %v505_v28, %s1207_s17  ;;  %530 = vrot.lane.b32.xlu1 %v21_v24, %s1207_s17 }
  0x3a   :  { %542 = vrot.lane.b32.xlu0 %v1376_v25, %s1211_s5  ;;  %544 = vrot.lane.b32.xlu1 %v511_v26, %s1211_s5 }
  0x3e   :  { %512 = vrot.lane.b32.xlu0 %v510_v29, %s1208_s22  ;;  %526 = vrot.lane.b32.xlu1 %v1376_v25, %s1207_s17 }
  0x42   :  { %540 = vrot.lane.b32.xlu0 %v510_v29, %s1211_s5  ;;  %556 = vrot.lane.b32.xlu1 %v505_v28, %s1212_s19 }
  0x46   :  { %558 = vrot.lane.b32.xlu0 %v21_v24, %s1212_s19  ;;  %570 = vrot.lane.b32.xlu1 %v1376_v25, %s1213_s29 }
  0x4a   :  { %572 = vrot.lane.b32.xlu0 %v511_v26, %s1213_s29  ;;  %584 = vrot.lane.b32.xlu1 %v505_v28, %s1214_s9 }
  0x4e   :  { %586 = vrot.lane.b32.xlu0 %v21_v24, %s1214_s9  ;;  %598 = vrot.lane.b32.xlu1 %v1376_v25, %s1215_s12 }
  0x52   :  { %600 = vrot.lane.b32.xlu0 %v511_v26, %s1215_s12  ;;  %554 = vrot.lane.b32.xlu1 %v1376_v25, %s1212_s19 }
  0x56   :  { %568 = vrot.lane.b32.xlu0 %v510_v29, %s1213_s29  ;;  %582 = vrot.lane.b32.xlu1 %v1376_v25, %s1214_s9 }
  0x5a   :  { %596 = vrot.lane.b32.xlu0 %v510_v29, %s1215_s12  ;;  %612 = vrot.lane.b32.xlu1 %v505_v28, %s1216_s13 }
  0x5e   :  { %614 = vrot.lane.b32.xlu0 %v21_v24, %s1216_s13  ;;  %610 = vrot.lane.b32.xlu1 %v1376_v25, %s1216_s13 }
  0x74   :  { %v53_v30 = vpop.permute.xlu1 %52  ;;  %v35_v31 = vpop.permute.xlu0 %34 }
  0x75   :  { %62 = vst.msk [vmem:[#allocation2 + $0x28] sm:$0xf] %vm28_vm0, %v53_v30 }
  0x78   :  { %v51_v32 = vpop.permute.xlu1 %50  ;;  %v37_v33 = vpop.permute.xlu0 %36 }
  0x79   :  { %v56_v34 = vsel %vm54_vm2, %v51_v32, %v53_v30  ;;  %v40_v35 = vsel %vm38_vm3, %v35_v31, %v37_v33  ;;  %47 = vst.msk [vmem:[#allocation2 + $0x10] sm:$0xf0] %vm46_vm4, %v37_v33 }
  0x7a   :  { %61 = vst [vmem:[#allocation2 + $0x20] sm:$0xf] %v56_v34  ;;  %45 = vst [vmem:[#allocation2 + $0x8] sm:$0xf0] %v40_v35  ;;  %v1191_v34 = vld [vmem:[%s1567_s3 + $0x70] sm:$0xff]  }
  0x7c   :  { %v68_v36 = vpop.permute.xlu1 %67  ;;  %v66_v37 = vpop.permute.xlu0 %65 }
  0x7d   :  { %77 = vst.msk [vmem:[#allocation2 + $0x28] sm:$0xf0] %vm46_vm4, %v68_v36  ;;  %v71_v38 = vsel %vm69_vm5, %v66_v37, %v68_v36  ;;  %v1192_v36 = vld [vmem:[%s1567_s3 + $0x30] sm:$0xff]  }
  0x7e   :  { %76 = vst [vmem:[#allocation2 + $0x20] sm:$0xf0] %v71_v38 }
  0x80   :  { %v49_v39 = vpop.permute.xlu1 %48  ;;  %v33_v40 = vpop.permute.xlu0 %32  ;;  %v155_v42 = vld [vmem:[#allocation2 + $0x10] sm:$0xff] }
  0x81   :  { %v55_v41 = vsel %vm54_vm2, %v49_v39, %v51_v32  ;;  %v39_v43 = vsel %vm38_vm3, %v33_v40, %v35_v31  ;;  %509 = vst.msk [vmem:[#allocation2 + $0x10] sm:$0xf] %vm28_vm0, %v21_v24  ;;  %v154_v44 = vld [vmem:[#allocation2 + $0x8] sm:$0xff] }
  0x82   :  { %60 = vst [vmem:[#allocation2 + $0x18] sm:$0xf] %v55_v41  ;;  %44 = vst [vmem:[#allocation2] sm:$0xf0] %v39_v43  ;;  %v1193_v39 = vld [vmem:[%s1567_s3 + $0x68] sm:$0xff]  }
  0x83   :  { %508 = vst [vmem:[#allocation2 + $0x8] sm:$0xf] %v505_v28  ;;  %v1194_v41 = vld [vmem:[%s1567_s3 + $0x28] sm:$0xff]  }
  0x84   :  { %v81_v45 = vpop.permute.xlu1 %80  ;;  %v158_v46 = vld [vmem:[#allocation2 + $0x28] sm:$0xff]  ;;  %v64_v47 = vpop.permute.xlu0 %63 }
  0x85   :  { %v170_v48 = vpack.c.bf16 %v158_v46, %v155_v42  ;;  %v70_v49 = vsel %vm69_vm5, %v64_v47, %v66_v37  ;;  %v157_v50 = vld [vmem:[#allocation2 + $0x20] sm:$0xff] }
  0x86   :  { %75 = vst [vmem:[#allocation2 + $0x18] sm:$0xf0] %v70_v49  ;;  %v169_v51 = vpack.c.bf16 %v157_v50, %v154_v44  ;;  %v1195_v44 = vld [vmem:[%s1567_s3 + $0x60] sm:$0xff]   ;;  %v1197_v49 = vld [vmem:[%s1567_s3 + $0x58] sm:$0xff]  }
  0x87   :  { %1111 = vmatmul.mubr.msk.bf16.vlgmr.msra.gmra.mxu1 %vm321_vm6, %v170_v48  ;;  %v1196_v47 = vld [vmem:[%s1567_s3 + $0x20] sm:$0xff]   ;;  %v1198_v50 = vld [vmem:[%s1567_s3 + $0x18] sm:$0xff]  }
  0x88   :  { %v96_v52 = vpop.permute.xlu1 %95  ;;  %1114 = vmatprep.mubr.msk.bf16.mxu1 %vm1210_vm1, %v1209_v9  ;;  %v83_v53 = vpop.permute.xlu0 %82  ;;  %363 = vmatprep.mubr.bf16.mxu0 %v169_v51 }
  0x89   :  { %v86_v54 = vsel %vm84_vm7, %v81_v45, %v83_v53  ;;  %92 = vst.msk [vmem:[#allocation2 + $0x40] sm:$0xf] %vm28_vm0, %v83_v53  ;;  %v153_v55 = vld [vmem:[#allocation2] sm:$0xff] }
  0x8a   :  { %91 = vst [vmem:[#allocation2 + $0x38] sm:$0xf] %v86_v54  ;;  %507 = vst [vmem:[#allocation2] sm:$0xf] %v1376_v25 }
  0x8c   :  { %v111_v56 = vpop.permute.xlu1 %110  ;;  %v98_v57 = vpop.permute.xlu0 %97 }
  0x8d   :  { %v101_v58 = vsel %vm99_vm8, %v96_v52, %v98_v57  ;;  %107 = vst.msk [vmem:[#allocation2 + $0x40] sm:$0xf0] %vm46_vm4, %v98_v57  ;;  %v156_v59 = vld [vmem:[#allocation2 + $0x18] sm:$0xff] }
  0x8e   :  { %106 = vst [vmem:[#allocation2 + $0x38] sm:$0xf0] %v101_v58  ;;  %v168_v61 = vpack.c.bf16 %v156_v59, %v153_v55  ;;  %v1199_v55 = vld [vmem:[%s1567_s3 + $0x50] sm:$0xff]   ;;  %v1201_v59 = vld [vmem:[%s1567_s3 + $0x48] sm:$0xff]  }
  0x90   :  { %v126_v62 = vpop.permute.xlu1 %125  ;;  %v113_v63 = vpop.permute.xlu0 %112  ;;  %364 = vmatmul.mubr.bf16.vlgmr.msra.gmra.mxu0 %v168_v61 }
  0x91   :  { %v116_v0 = vsel %vm114_vm9, %v111_v56, %v113_v63  ;;  %122 = vst.msk [vmem:[#allocation2 + $0x58] sm:$0xf] %vm28_vm0, %v113_v63  ;;  %1064 = vmatpush3.bf16.msra.mxu0 %v1190_v60  ;;  %v1202_v60 = vld [vmem:[%s1567_s3 + $0x8] sm:$0xff]  }
  0x92   :  { %121 = vst [vmem:[#allocation2 + $0x50] sm:$0xf] %v116_v0  ;;  %1065 = vmatprep.subr.bf16.mxu0 %v1191_v34 }
  0x94   :  { %v79_v1 = vpop.permute.xlu1 %78  ;;  %v128_v2 = vpop.permute.xlu0 %127  ;;  %v161_v12 = vld [vmem:[#allocation2 + $0x40] sm:$0xff] }
  0x95   :  { %v85_v3 = vsel %vm84_vm7, %v79_v1, %v81_v45  ;;  %v131_v4 = vsel %vm129_vm10, %v126_v62, %v128_v2  ;;  %137 = vst.msk [vmem:[#allocation2 + $0x58] sm:$0xf0] %vm46_vm4, %v128_v2  ;;  %v160_v16 = vld [vmem:[#allocation2 + $0x38] sm:$0xff]  ;;  %1066 = vmatpush3.bf16.msra.mxu0 %v1192_v36  ;;  %v1203_v1 = vld [vmem:[%s1567_s3 + $0x40] sm:$0xff]  }
  0x96   :  { %90 = vst [vmem:[#allocation2 + $0x30] sm:$0xf] %v85_v3  ;;  %136 = vst [vmem:[#allocation2 + $0x50] sm:$0xf0] %v131_v4  ;;  %1067 = vmatprep.subr.bf16.mxu0 %v1193_v39  ;;  %v1204_v2 = vld [vmem:[%s1567_s3] sm:$0xff]   ;;  %v1217_v39 = vmov 0  }
  0x97   :  { %1169 = vset.pattern.permute.xlu0 %v1217_v39  ;;  %1170 = vset.pattern.permute.xlu1 %v1217_v39 }
  0x98   :  { %v109_v5 = vpop.permute.xlu1 %108  ;;  %v94_v6 = vpop.permute.xlu0 %93 }
  0x99   :  { %v115_v7 = vsel %vm114_vm9, %v109_v5, %v111_v56  ;;  %v100_v8 = vsel %vm99_vm8, %v94_v6, %v96_v52  ;;  %1068 = vmatpush3.bf16.msra.mxu0 %v1194_v41  ;;  %v1200_v56 = vld [vmem:[%s1567_s3 + $0x10] sm:$0xff]  }
  0x9a   :  { %120 = vst [vmem:[#allocation2 + $0x48] sm:$0xf] %v115_v7  ;;  %105 = vst [vmem:[#allocation2 + $0x30] sm:$0xf0] %v100_v8  ;;  %1069 = vmatprep.subr.bf16.mxu0 %v1195_v44 }
  0x9c   :  { %v141_v10 = vpop.permute.xlu1 %140  ;;  %v124_v11 = vpop.permute.xlu0 %123  ;;  %v164_v13 = vld [vmem:[#allocation2 + $0x58] sm:$0xff] }
  0x9d   :  { %v130_v14 = vsel %vm129_vm10, %v124_v11, %v126_v62  ;;  %v173_v15 = vpack.c.bf16 %v164_v13, %v161_v12  ;;  %v163_v17 = vld [vmem:[#allocation2 + $0x50] sm:$0xff]  ;;  %1070 = vmatpush3.bf16.msra.mxu0 %v1196_v47 }
  0x9e   :  { %135 = vst [vmem:[#allocation2 + $0x48] sm:$0xf0] %v130_v14  ;;  %v172_v18 = vpack.c.bf16 %v163_v17, %v160_v16  ;;  %1071 = vmatprep.subr.bf16.mxu0 %v1197_v49 }
  0x9f   :  { %1115 = vmatmul.mubr.msk.bf16.gmra.mxu1 %vm321_vm6, %v173_v15 }
  0xa0   :  { %v139_v19 = vpop.permute.xlu1 %138  ;;  %v143_v20 = vpop.permute.xlu0 %142  ;;  %371 = vmatprep.mubr.bf16.mxu0 %v172_v18  ;;  %1118 = vmatprep.mubr.msk.bf16.mxu1 %vm1210_vm1, %v1209_v9 }
  0xa1   :  { %v145_v21 = vsel %vm144_vm11, %v139_v19, %v141_v10  ;;  %v146_v22 = vsel %vm144_vm11, %v141_v10, %v143_v20  ;;  %152 = vst.msk [vmem:[#allocation2 + $0x70] sm:$0xf] %vm28_vm0, %v143_v20  ;;  %v159_v23 = vld [vmem:[#allocation2 + $0x30] sm:$0xff]  ;;  %1072 = vmatpush3.bf16.msra.mxu0 %v1198_v50 }
  0xa2   :  { %150 = vst [vmem:[#allocation2 + $0x60] sm:$0xf] %v145_v21  ;;  %151 = vst [vmem:[#allocation2 + $0x68] sm:$0xf] %v146_v22  ;;  %1073 = vmatprep.subr.bf16.mxu0 %v1199_v55 }
  0xa4   :  { %v515_v32 = vpop.permute.xlu0 %514  ;;  %v517_v35 = vpop.permute.xlu1 %516 }
  0xa5   :  { %v162_v24 = vld [vmem:[#allocation2 + $0x48] sm:$0xff]  ;;  %v519_v37 = vsel %vm38_vm3, %v515_v32, %v517_v35  ;;  %525 = vst.msk [vmem:[#allocation2 + $0x10] sm:$0xf0] %vm46_vm4, %v517_v35  ;;  %1074 = vmatpush3.bf16.msra.mxu0 %v1200_v56 }
  0xa6   :  { %v171_v25 = vpack.c.bf16 %v162_v24, %v159_v23  ;;  %524 = vst [vmem:[#allocation2 + $0x8] sm:$0xf0] %v519_v37  ;;  %1075 = vmatprep.subr.bf16.mxu0 %v1201_v59 }
  0xa8   :  { %372 = vmatmul.mubr.bf16.gmra.mxu0 %v171_v25  ;;  %v167_v26 = vld [vmem:[#allocation2 + $0x70] sm:$0xf]  ;;  %v529_v33 = vpop.permute.xlu0 %528  ;;  %v531_v40 = vpop.permute.xlu1 %530 }
  0xa9   :  { %v176_v27 = vpack.c.bf16 %v167_v26, %v167_v26  ;;  %v166_v28 = vld [vmem:[#allocation2 + $0x68] sm:$0xf]  ;;  %v165_v30 = vld [vmem:[#allocation2 + $0x60] sm:$0xf]  ;;  %v533_v42 = vsel %vm54_vm2, %v529_v33, %v531_v40  ;;  %539 = vst.msk [vmem:[#allocation2 + $0x28] sm:$0xf] %vm28_vm0, %v531_v40  ;;  %1076 = vmatpush3.bf16.msra.mxu0 %v1202_v60 }
  0xaa   :  { %v175_v29 = vpack.c.bf16 %v166_v28, %v166_v28  ;;  %v174_v31 = vpack.c.bf16 %v165_v30, %v165_v30  ;;  %538 = vst [vmem:[#allocation2 + $0x20] sm:$0xf] %v533_v42  ;;  %1077 = vmatprep.subr.bf16.mxu0 %v1203_v1  ;;  %v447_v40 = vld [vmem:[%s1568_s2] sm:$0xff] }
  0xab   :  { %1119 = vmatmul.mubr.msk.bf16.gmra.mxu1 %vm321_vm6, %v176_v27  ;;  %450 = vperm.xlu0 %1169, %v447_v40  }
  0xac   :  { %379 = vmatprep.mubr.bf16.mxu0 %v175_v29  ;;  %1128 = vmatprep.mubr.msk.bf16.mxu1 %vm1210_vm1, %v1209_v9  ;;  %v543_v38 = vpop.permute.xlu0 %542  ;;  %v545_v46 = vpop.permute.xlu1 %544 }
  0xad   :  { %v547_v48 = vsel %vm69_vm5, %v543_v38, %v545_v46  ;;  %553 = vst.msk [vmem:[#allocation2 + $0x28] sm:$0xf0] %vm46_vm4, %v545_v46  ;;  %v625_v5 = vld [vmem:[#allocation2 + $0x8] sm:$0xff]  ;;  %1078 = vmatpush3.bf16.msra.mxu0 %v1204_v2  ;;  %920 = vperm.xlu1 %1170, %v447_v40  }
  0xae   :  { %552 = vst [vmem:[#allocation2 + $0x20] sm:$0xf0] %v547_v48 }
  0xb0   :  { %380 = vmatmul.mubr.bf16.gmra.mxu0 %v174_v31  ;;  %v513_v43 = vpop.permute.xlu0 %512  ;;  %v527_v52 = vpop.permute.xlu1 %526 }
  0xb1   :  { %v518_v45 = vsel %vm38_vm3, %v513_v43, %v515_v32  ;;  %v532_v54 = vsel %vm54_vm2, %v527_v52, %v529_v33 }
  0xb2   :  { %523 = vst [vmem:[#allocation2] sm:$0xf0] %v518_v45  ;;  %537 = vst [vmem:[#allocation2 + $0x18] sm:$0xf] %v532_v54 }
  0xb4   :  { %v541_v51 = vpop.permute.xlu0 %540  ;;  %v557_v58 = vpop.permute.xlu1 %556 }
  0xb5   :  { %v546_v53 = vsel %vm69_vm5, %v541_v51, %v543_v38  ;;  %v628_v6 = vld [vmem:[#allocation2 + $0x20] sm:$0xff] }
  0xb6   :  { %551 = vst [vmem:[#allocation2 + $0x18] sm:$0xf0] %v546_v53  ;;  %v640_v8 = vpack.c.bf16 %v628_v6, %v625_v5 }
  0xb8   :  { %v559_v57 = vpop.permute.xlu0 %558  ;;  %v571_v63 = vpop.permute.xlu1 %570  ;;  %833 = vmatprep.mubr.bf16.mxu0 %v640_v8 }
  0xb9   :  { %567 = vst.msk [vmem:[#allocation2 + $0x40] sm:$0xf] %vm28_vm0, %v559_v57  ;;  %v561_v61 = vsel %vm84_vm7, %v557_v58, %v559_v57  ;;  %v624_v10 = vld [vmem:[#allocation2] sm:$0xff] }
  0xba   :  { %566 = vst [vmem:[#allocation2 + $0x38] sm:$0xf] %v561_v61 }
  0xbc   :  { %v573_v62 = vpop.permute.xlu0 %572  ;;  %v585_v4 = vpop.permute.xlu1 %584 }
  0xbd   :  { %581 = vst.msk [vmem:[#allocation2 + $0x40] sm:$0xf0] %vm46_vm4, %v573_v62  ;;  %v575_v0 = vsel %vm99_vm8, %v571_v63, %v573_v62  ;;  %v627_v11 = vld [vmem:[#allocation2 + $0x18] sm:$0xff] }
  0xbe   :  { %580 = vst [vmem:[#allocation2 + $0x38] sm:$0xf0] %v575_v0  ;;  %v639_v12 = vpack.c.bf16 %v627_v11, %v624_v10 }
  0xc0   :  { %v587_v3 = vpop.permute.xlu0 %586  ;;  %v599_v14 = vpop.permute.xlu1 %598  ;;  %834 = vmatmul.mubr.bf16.vlgmr.msra.gmra.mxu0 %v639_v12 }
  0xc1   :  { %595 = vst.msk [vmem:[#allocation2 + $0x58] sm:$0xf] %vm28_vm0, %v587_v3  ;;  %v589_v7 = vsel %vm114_vm9, %v585_v4, %v587_v3 }
  0xc2   :  { %594 = vst [vmem:[#allocation2 + $0x50] sm:$0xf] %v589_v7 }
  0xc4   :  { %v601_v13 = vpop.permute.xlu0 %600  ;;  %v555_v17 = vpop.permute.xlu1 %554 }
  0xc5   :  { %609 = vst.msk [vmem:[#allocation2 + $0x58] sm:$0xf0] %vm46_vm4, %v601_v13  ;;  %v603_v15 = vsel %vm129_vm10, %v599_v14, %v601_v13  ;;  %v560_v19 = vsel %vm84_vm7, %v555_v17, %v557_v58  ;;  %v631_v24 = vld [vmem:[#allocation2 + $0x38] sm:$0xff]  ;;  %v1205_v17 = vld [vmem:[%s1567_s3 + $0x88] sm:$0xff]  }
  0xc6   :  { %608 = vst [vmem:[#allocation2 + $0x50] sm:$0xf0] %v603_v15  ;;  %565 = vst [vmem:[#allocation2 + $0x30] sm:$0xf] %v560_v19  ;;  %v626_v19 = vld [vmem:[#allocation2 + $0x10] sm:$0xff] }
  0xc8   :  { %v569_v16 = vpop.permute.xlu0 %568  ;;  %v583_v21 = vpop.permute.xlu1 %582 }
  0xc9   :  { %v574_v18 = vsel %vm99_vm8, %v569_v16, %v571_v63  ;;  %v588_v23 = vsel %vm114_vm9, %v583_v21, %v585_v4  ;;  %v443_v16 = vld [vmem:[%s1569_s1] sm:$0xf] }
  0xca   :  { %579 = vst [vmem:[#allocation2 + $0x30] sm:$0xf0] %v574_v18  ;;  %593 = vst [vmem:[#allocation2 + $0x48] sm:$0xf] %v588_v23  ;;  %v1206_v18 = vld [vmem:[%s1567_s3 + $0x80] sm:$0xff]  }
  0xcc   :  { %v597_v20 = vpop.permute.xlu0 %596  ;;  %v613_v30 = vpop.permute.xlu1 %612  ;;  %v635_v23 = vld [vmem:[#allocation2 + $0x58] sm:$0xff] }
  0xcd   :  { %v602_v22 = vsel %vm129_vm10, %v597_v20, %v599_v14  ;;  %v634_v25 = vld [vmem:[#allocation2 + $0x50] sm:$0xff]  ;;  %v629_v20 = vld [vmem:[#allocation2 + $0x28] sm:$0xff] }
  0xce   :  { %607 = vst [vmem:[#allocation2 + $0x48] sm:$0xf0] %v602_v22  ;;  %v643_v26 = vpack.c.bf16 %v634_v25, %v631_v24  ;;  %v641_v21 = vpack.c.bf16 %v629_v20, %v626_v19  ;;  %v632_v22 = vld [vmem:[#allocation2 + $0x40] sm:$0xff] }
  0xcf   :  { %v644_v24 = vpack.c.bf16 %v635_v23, %v632_v22 }
  0xd0   :  { %841 = vmatprep.mubr.bf16.mxu0 %v643_v26  ;;  %v615_v31 = vpop.permute.xlu0 %614  ;;  %v611_v33 = vpop.permute.xlu1 %610 }
  0xd1   :  { %v630_v27 = vld [vmem:[#allocation2 + $0x30] sm:$0xff]  ;;  %v617_v32 = vsel %vm144_vm11, %v613_v30, %v615_v31  ;;  %623 = vst.msk [vmem:[#allocation2 + $0x70] sm:$0xf] %vm28_vm0, %v615_v31  ;;  %v616_v34 = vsel %vm144_vm11, %v611_v33, %v613_v30 }
  0xd2   :  { %622 = vst [vmem:[#allocation2 + $0x68] sm:$0xf] %v617_v32  ;;  %621 = vst [vmem:[#allocation2 + $0x60] sm:$0xf] %v616_v34 }
  0xd5   :  { %v633_v28 = vld [vmem:[#allocation2 + $0x48] sm:$0xff] }
  0xd6   :  { %v642_v29 = vpack.c.bf16 %v633_v28, %v630_v27 }
  0xd8   :  { %842 = vmatmul.mubr.bf16.gmra.mxu0 %v642_v29  ;;  %v638_v25 = vld [vmem:[#allocation2 + $0x70] sm:$0xf] }
  0xd9   :  { %v637_v35 = vld [vmem:[#allocation2 + $0x68] sm:$0xf]  ;;  %v636_v37 = vld [vmem:[#allocation2 + $0x60] sm:$0xf]  ;;  %v647_v26 = vpack.c.bf16 %v638_v25, %v638_v25 }
  0xda   :  { %v646_v36 = vpack.c.bf16 %v637_v35, %v637_v35  ;;  %v645_v38 = vpack.c.bf16 %v636_v37, %v636_v37 }
  0xdc   :  { %849 = vmatprep.mubr.bf16.mxu0 %v646_v36 }
  0xe0   :  { %850 = vmatmul.mubr.bf16.gmra.mxu0 %v645_v38 }
 0x147   :  { %v421_v41 = vpop.f32.mrf.mxu1 }
 0x149   :  { %v1112_v42 = vpop.f32.mrf.mxu1 }
 0x14b   :  { %v424_v43 = vpop.f32.mrf.mxu1 }
 0x14d   :  { %v1113_v44 = vpop.f32.mrf.mxu1 }
 0x14e   :  { %v451_v44 = vpop.permute.xlu0 %450 }
 0x150   :  { %v1036_v45 = vpop.f32.mrf.mxu0 }
 0x152   :  { %v1037_v46 = vpop.f32.mrf.mxu0 }
 0x153   :  { %v1038_v10 = vadd.f32 %v1037_v46, %v1036_v45 }
 0x154   :  { %v1039_v49 = vpop.f32.mrf.mxu0 }
 0x155   :  { %v422_v14 = vadd.f32 %v1038_v10, %v421_v41 }
 0x156   :  { %v1040_v52 = vpop.f32.mrf.mxu0 }
 0x157   :  { %v1041_v6 = vadd.f32 %v1040_v52, %v1039_v49 }
 0x159   :  { %v425_v12 = vadd.f32 %v1041_v6, %v424_v43 }
 0x15b   :  { %v444_v15 = vpack.c.bf16 %v425_v12, %v422_v14 }
 0x15f   :  { %v429_v47 = vpop.f32.mrf.mxu1 }
 0x161   :  { %v1116_v48 = vpop.f32.mrf.mxu1 }
 0x163   :  { %v432_v50 = vpop.f32.mrf.mxu1 }
 0x165   :  { %v1117_v51 = vpop.f32.mrf.mxu1 }
 0x168   :  { %v1042_v53 = vpop.f32.mrf.mxu0 }
 0x16a   :  { %v1043_v54 = vpop.f32.mrf.mxu0 }
 0x16b   :  { %v437_v55 = vpop.f32.mrf.mxu1  ;;  %v1044_v3 = vadd.f32 %v1043_v54, %v1042_v53 }
 0x16c   :  { %v1045_v56 = vpop.f32.mrf.mxu0 }
 0x16d   :  { %v1120_v57 = vpop.f32.mrf.mxu1  ;;  %v430_v11 = vadd.f32 %v1044_v3, %v429_v47 }
 0x16e   :  { %v1046_v58 = vpop.f32.mrf.mxu0 }
 0x16f   :  { %v440_v59 = vpop.f32.mrf.mxu1  ;;  %v1047_v0 = vadd.f32 %v1046_v58, %v1045_v56 }
 0x170   :  { %v1048_v60 = vpop.f32.mrf.mxu0 }
 0x171   :  { %v1121_v61 = vpop.f32.mrf.mxu1  ;;  %v433_v7 = vadd.f32 %v1047_v0, %v432_v50 }
 0x172   :  { %v1049_v62 = vpop.f32.mrf.mxu0 }
 0x173   :  { %v1050_v63 = vadd.f32 %v1049_v62, %v1048_v60  ;;  %v445_v13 = vpack.c.bf16 %v433_v7, %v430_v11  ;;  %v913_v7 = vld [vmem:[%s1569_s1] sm:$0xf] }
 0x174   :  { %v1051_v1 = vpop.f32.mrf.mxu0 }
 0x175   :  { %v438_v2 = vadd.f32 %v1050_v63, %v437_v55 }
 0x176   :  { %v1052_v4 = vpop.f32.mrf.mxu0 }
 0x177   :  { %v446_v5 = vpack.c.bf16 %v438_v2, %v438_v2 }
 0x179   :  { %v459_v8 = vsel %vm457_vm12, %v446_v5, 0 }
 0x17a   :  { %1123 = vmatpush3.bf16.msra.mxu1 %v459_v8  ;;  %v921_v8 = vpop.permute.xlu1 %920 }
 0x17b   :  { %1124 = vmatprep.subr.bf16.mxu1 %v1209_v9 }
 0x17e   :  { %1125 = vmatpush3.bf16.msra.mxu1 %v445_v13 }
 0x17f   :  { %1126 = vmatprep.subr.bf16.mxu1 %v1209_v9 }
 0x180   :  { %v1079_v27 = vpop.f32.mrf.mxu0 }
 0x182   :  { %1127 = vmatpush3.bf16.msra.mxu1 %v444_v15  ;;  %v1080_v28 = vpop.f32.mrf.mxu0 }
 0x183   :  { %1132 = vmatprep.subr.bf16.mxu1 %v1209_v9  ;;  %v1081_v29 = vadd.f32 %v1080_v28, %v1079_v27 }
 0x184   :  { %v1082_v30 = vpop.f32.mrf.mxu0 }
 0x185   :  { %1129 = vmatmul.mubr.msk.bf16.vlgmr.msra.gmra.mxu1 %vm453_vm13, %v443_v16 }
 0x186   :  { %1133 = vmatpush3.bf16.msra.mxu1 %v1205_v17  ;;  %1136 = vmatprep.mubr.msk.bf16.mxu1 %vm1210_vm1, %v1209_v9  ;;  %v1083_v31 = vpop.f32.mrf.mxu0 }
 0x187   :  { %1134 = vmatprep.subr.bf16.mxu1 %v1209_v9  ;;  %v1084_v32 = vadd.f32 %v1083_v31, %v1082_v30 }
 0x18a   :  { %1135 = vmatpush3.bf16.msra.mxu1 %v1206_v18 }
 0x18b   :  { %1148 = vmatprep.subr.bf16.mxu1 %v1209_v9 }
 0x18d   :  { %1137 = vmatmul.mubr.msk.bf16.vlgmr.msra.gmra.mxu1 %vm321_vm6, %v641_v21 }
 0x18e   :  { %1140 = vmatprep.mubr.msk.bf16.mxu1 %vm1210_vm1, %v1209_v9 }
 0x195   :  { %1141 = vmatmul.mubr.msk.bf16.gmra.mxu1 %vm321_vm6, %v644_v24 }
 0x196   :  { %1144 = vmatprep.mubr.msk.bf16.mxu1 %vm1210_vm1, %v1209_v9 }
 0x198   :  { %v1085_v33 = vpop.f32.mrf.mxu0 }
 0x19a   :  { %v1086_v34 = vpop.f32.mrf.mxu0 }
 0x19b   :  { %v1087_v35 = vadd.f32 %v1086_v34, %v1085_v33 }
 0x19c   :  { %v1088_v36 = vpop.f32.mrf.mxu0 }
 0x19d   :  { %1145 = vmatmul.mubr.msk.bf16.gmra.mxu1 %vm321_vm6, %v647_v26 }
 0x19e   :  { %1154 = vmatprep.mubr.msk.bf16.mxu1 %vm1210_vm1, %v1209_v9  ;;  %v1089_v37 = vpop.f32.mrf.mxu0 }
 0x19f   :  { %v1090_v38 = vadd.f32 %v1089_v37, %v1088_v36 }
 0x1a0   :  { %v1091_v39 = vpop.f32.mrf.mxu0 }
 0x1a2   :  { %v1092_v40 = vpop.f32.mrf.mxu0 }
 0x1a3   :  { %v1093_v41 = vadd.f32 %v1092_v40, %v1091_v39 }
 0x1a4   :  { %v1094_v42 = vpop.f32.mrf.mxu0 }
 0x1a6   :  { %v1095_v43 = vpop.f32.mrf.mxu0 }
 0x245   :  { %v495_v45 = vpop.f32.mrf.mxu1 }
 0x246   :  { %v496_v46 = vadd.f32 %v495_v45, %v451_v44 }
 0x247   :  { %v1130_v47 = vpop.f32.mrf.mxu1 }
 0x248   :  { %502 = vst.msk [vmem:[%s1570_s4] sm:$0xff] %vm501_vm14, %v496_v46 }
 0x249   :  { %v498_v48 = vpop.f32.mrf.mxu1 }
 0x24b   :  { %v1131_v49 = vpop.f32.mrf.mxu1 }
 0x24d   :  { %v891_v50 = vpop.f32.mrf.mxu1 }
 0x24e   :  { %v892_v53 = vadd.f32 %v1081_v29, %v891_v50 }
 0x24f   :  { %v1138_v51 = vpop.f32.mrf.mxu1 }
 0x251   :  { %v894_v52 = vpop.f32.mrf.mxu1 }
 0x252   :  { %v895_v54 = vadd.f32 %v1084_v32, %v894_v52 }
 0x253   :  { %v1139_v55 = vpop.f32.mrf.mxu1 }
 0x254   :  { %v914_v56 = vpack.c.bf16 %v895_v54, %v892_v53 }
 0x255   :  { %v899_v57 = vpop.f32.mrf.mxu1 }
 0x256   :  { %v900_v60 = vadd.f32 %v1087_v35, %v899_v57 }
 0x257   :  { %v1142_v58 = vpop.f32.mrf.mxu1 }
 0x259   :  { %v902_v59 = vpop.f32.mrf.mxu1 }
 0x25a   :  { %v903_v61 = vadd.f32 %v1090_v38, %v902_v59 }
 0x25b   :  { %v1143_v62 = vpop.f32.mrf.mxu1 }
 0x25c   :  { %v915_v63 = vpack.c.bf16 %v903_v61, %v900_v60 }
 0x25d   :  { %v907_v0 = vpop.f32.mrf.mxu1 }
 0x25e   :  { %v908_v1 = vadd.f32 %v1093_v41, %v907_v0 }
 0x25f   :  { %v1146_v2 = vpop.f32.mrf.mxu1 }
 0x260   :  { %v916_v3 = vpack.c.bf16 %v908_v1, %v908_v1 }
 0x261   :  { %v910_v4 = vpop.f32.mrf.mxu1 }
 0x262   :  { %v927_v5 = vsel %vm457_vm12, %v916_v3, 0 }
 0x263   :  { %v1147_v6 = vpop.f32.mrf.mxu1  ;;  %1149 = vmatpush3.bf16.msra.mxu1 %v927_v5 }
 0x264   :  { %1150 = vmatprep.subr.bf16.mxu1 %v1209_v9 }
 0x267   :  { %1151 = vmatpush3.bf16.msra.mxu1 %v915_v63 }
 0x268   :  { %1152 = vmatprep.subr.bf16.mxu1 %v1209_v9 }
 0x26b   :  { %1153 = vmatpush3.bf16.msra.mxu1 %v914_v56 }
 0x26e   :  { %1155 = vmatmul.mubr.msk.bf16.vlgmr.msra.gmra.mxu1 %vm453_vm13, %v913_v7 }
 0x32e   :  { %v963_v10 = vpop.f32.mrf.mxu1 }
 0x32f   :  { %v964_v11 = vadd.f32 %v963_v10, %v921_v8 }
 0x330   :  { %v1156_v12 = vpop.f32.mrf.mxu1 }
 0x331   :  { %1019 = vst.msk [vmem:[%s1570_s4 + $0x8] sm:$0xff] %vm501_vm14, %v964_v11 }
 0x332   :  { %v966_v13 = vpop.f32.mrf.mxu1 }
 0x334   :  { %v1157_v14 = vpop.f32.mrf.mxu1 }

// kernel: encoder_forward.3
= control target key start
LH: loop header
LB: loop body
LE: loop exit
PB: predicated region body
PF: predicated region fallthrough
CT: control target
= control target key end

     0   :  { %vm337_vm0 = vcmask 584704   ;;  %v1891_v3 = vmov 0   ;;  %vm88_vm1 = vcmask 261120   ;;  %vm333_vm2 = vcmask 1043456   ;;  %s1896_s28 = smov 90   ;;  %s1897_s29 = smov 91   ;;  %s2737_s0 = inlined_call_operand.vmem [shape: f32[2,4,328], index: 0, kind: input, shape index: {}]   ;;  %s2738_s15 = inlined_call_operand.vmem [shape: f32[2,4,328], index: 15, kind: output, shape index: {}]   ;;  %s2739_s2 = inlined_call_operand.vmem [shape: f32[32,4], index: 2, kind: input, shape index: {}]   ;;  %s2740_s3 = inlined_call_operand.vmem [shape: f32[32,32], index: 3, kind: input, shape index: {}]   ;;  %s2741_s4 = inlined_call_operand.vmem [shape: f32[32,1], index: 4, kind: input, shape index: {}]   ;;  %s2742_s1 = inlined_call_operand.vmem [shape: f32[1,328], index: 1, kind: input, shape index: {}]   ;;  %s2743_s7 = inlined_call_operand.vmem [shape: f32[4,1], index: 7, kind: input, shape index: {}]   ;;  %s2744_s8 = inlined_call_operand.vmem [shape: f32[4,1], index: 8, kind: input, shape index: {}]   ;;  %s2745_s5 = inlined_call_operand.vmem [shape: f32[4,32], index: 5, kind: input, shape index: {}]   ;;  %s2746_s6 = inlined_call_operand.vmem [shape: f32[4,1], index: 6, kind: input, shape index: {}]   ;;  %s2747_s12 = inlined_call_operand.vmem [shape: f32[4,1], index: 12, kind: input, shape index: {}]   ;;  %s2748_s11 = inlined_call_operand.vmem [shape: bf16[4,36], index: 11, kind: input, shape index: {}]   ;;  %s2749_s9 = inlined_call_operand.vmem [shape: f32[4,1], index: 9, kind: input, shape index: {}]   ;;  %s2750_s10 = inlined_call_operand.vmem [shape: f32[4,1], index: 10, kind: input, shape index: {}]   ;;  %s2751_s14 = inlined_call_operand.vmem [shape: f32[4,1], index: 14, kind: input, shape index: {}]   ;;  %s2752_s13 = inlined_call_operand.vmem [shape: bf16[4,36], index: 13, kind: input, shape index: {}]  }
   0x1   :  { %v1988_v0 = vld [vmem:[%s2737_s0] sm:$0xff]  ;;  %v1993_v1 = vld [vmem:[%s2737_s0 + $0x8] sm:$0xf]  ;;  %v1998_v2 = vld [vmem:[%s2737_s0 + $0xc] sm:$0xff]  ;;  %1833 = vset.pattern.permute.xlu0 %v1891_v3  ;;  %1834 = vset.pattern.permute.xlu1 %v1891_v3  ;;  %v1892_v51 = vmov 0.0   ;;  %v355_v52 = vlaneseq  ;;  %vm2753_vm3 = vmmov 0  }
   0x2   :  { %v299_v4 = vsub.f32 0.0, %v1988_v0  ;;  %v300_v5 = vsub.f32 0.0, %v1993_v1  ;;  %1168 = vst.msk [vmem:[%s2738_s15 + $0x8] sm:$0xf] %vm337_vm0, %v1993_v1  ;;  %1167 = vst [vmem:[%s2738_s15] sm:$0xff] %v1988_v0  ;;  %v2016_v6 = vld [vmem:[%s2737_s0 + $0x14] sm:$0xf]  ;;  %1768 = vmatprep.subr.mxu1 %v1892_v51  ;;  %1776 = vmatprep.mubr.msk.f32.mxu1 %vm2753_vm3, %v1892_v51 }
   0x3   :  { %v301_v7 = vsub.f32 0.0, %v1998_v2  ;;  %1169 = vst [vmem:[%s2738_s15 + $0xc] sm:$0xff] %v1998_v2  ;;  %v63_v8 = vld [vmem:[%s2739_s2 + $0x18] sm:$0xff]  ;;  %v302_v9 = vsub.f32 0.0, %v2016_v6  ;;  %1170 = vst.msk [vmem:[%s2738_s15 + $0x14] sm:$0xf] %vm337_vm0, %v2016_v6 }
   0x4   :  { %1754 = vmatprep.subr.mxu0 %v63_v8  ;;  %v62_v10 = vld [vmem:[%s2739_s2 + $0x10] sm:$0xff]  ;;  %v61_v11 = vld [vmem:[%s2739_s2 + $0x8] sm:$0xff]  ;;  %v303_v12 = vmul.f32 1.442695, %v299_v4  ;;  %v305_v13 = vmul.f32 1.442695, %v300_v5 }
   0x5   :  { %v307_v14 = vmul.f32 1.442695, %v301_v7  ;;  %1755 = vmatpush3.msra.mxu0 %v63_v8  ;;  %v309_v15 = vmul.f32 1.442695, %v302_v9  ;;  %v56_v16 = vld [vmem:[%s2740_s3] sm:$0xff]  ;;  %v66_v18 = vld [vmem:[%s2741_s4 + $0x10] sm:$0xff] }
   0x6   :  { %1756 = vmatprep.subr.mxu0 %v62_v10  ;;  %1837 = vpow2.f32 %v303_v12  ;;  %v60_v17 = vld [vmem:[%s2739_s2] sm:$0xff]  ;;  %1762 = vmatprep.mubr.msk.f32.mxu0 %vm88_vm1, %v56_v16  ;;  %v57_v19 = vld [vmem:[%s2740_s3 + $0x8] sm:$0xff]  ;;  %v58_v20 = vld [vmem:[%s2740_s3 + $0x10] sm:$0xff]  ;;  %453 = vst [vmem:[#allocation2] sm:$0xff] %v1892_v51  ;;  %v1893_v53 = vmov 839922192  }
   0x7   :  { %1757 = vmatpush3.msra.mxu0 %v62_v10  ;;  %1839 = vpow2.f32 %v305_v13  ;;  %80 = vperm.xlu1 %1834, %v66_v18   ;;  %v59_v21 = vld [vmem:[%s2740_s3 + $0x18] sm:$0xff]  ;;  %454 = vst.msk [vmem:[#allocation2 + $0x8] sm:$0xf] %vm337_vm0, %v1892_v51  ;;  %455 = vst [vmem:[#allocation2 + $0xc] sm:$0xff] %v1892_v51  ;;  %v353_v54 = vunpack.c.l.s4 %v1893_v53  ;;  %v356_v55 = vshrl.u32 %v355_v52, 7  ;;  %v64_v53 = vld [vmem:[%s2741_s4] sm:$0xff] }
   0x8   :  { %1758 = vmatprep.subr.mxu0 %v61_v11  ;;  %1841 = vpow2.f32 %v307_v14  ;;  %v67_v50 = vld [vmem:[%s2741_s4 + $0x18] sm:$0xff]  ;;  %456 = vst.msk [vmem:[#allocation2 + $0x14] sm:$0xf] %vm337_vm0, %v1892_v51  ;;  %v55_v60 = vld [vmem:[%s2742_s1] sm:$0x7]  ;;  %vm463_vm4 = vcmask 257024  }
   0x9   :  { %1759 = vmatpush3.msra.mxu0 %v61_v11  ;;  %1843 = vpow2.f32 %v309_v15  ;;  %v354_v57 = vunpack.c.0.s8 %v353_v54  ;;  %v367_v58 = vsub.s32 0, %v356_v55  ;;  %v371_v59 = vsub.s32 1, %v356_v55  ;;  %s1898_s30 = smov 109   ;;  %s1899_s16 = smov 92  }
   0xa   :  { %1760 = vmatprep.subr.mxu0 %v60_v17  ;;  %v375_v61 = vsub.s32 2, %v356_v55  ;;  %s1900_s17 = smov 127   ;;  %s1901_s18 = smov 126   ;;  %vm623_vm5 = vcmask 1041408   ;;  %vm579_vm6 = vcmask 736256   ;;  %vm2756_vm7 = vcmask 261124  }
   0xb   :  { %1761 = vmatpush3.msra.mxu0 %v60_v17  ;;  %v2100_v63 = vsub.s32 %v354_v57, %v356_v55  ;;  %s1902_s2 = smov 110   ;;  %vm534_vm8 = vcmask 883712   ;;  %vm519_vm9 = vcmask 891904   ;;  %vm2755_vm10 = vcmask 744448  }
   0xc   :  { %1763 = vmatmul.mubr.msk.f32.vlgmr.msra.gmra.mxu0 %vm88_vm1, %v57_v19  ;;  %v2108_v7 = vrot.slane %v55_v60, %v375_v61  ;;  %vm549_vm11 = vcmask 752640   ;;  %vm489_vm12 = vcmask 1031168   ;;  %vm473_vm13 = vcmask 1039360  }
   0xd   :  { %1765 = vmatprep.mubr.msk.f32.mxu0 %vm88_vm1, %v58_v20  ;;  %vm504_vm14 = vcmask 900096   ;;  %vm2754_vm15 = vcmask 293888  }
  0x10   :  { %1766 = vmatmul.mubr.msk.f32.gmra.mxu0 %vm88_vm1, %v59_v21 }
  0x11   :  { %665 = vmatprep.mubr.bf16.mxu0 %v1891_v3 }
  0x13   :  { %v1838_v22 = vpop.eup %1837 }
  0x14   :  { %v1840_v23 = vpop.eup %1839  ;;  %v311_v24 = vadd.f32 1.0, %v1838_v22 }
  0x15   :  { %v1842_v25 = vpop.eup %1841  ;;  %v312_v26 = vadd.f32 1.0, %v1840_v23 }
  0x16   :  { %v1844_v27 = vpop.eup %1843  ;;  %1845 = vrcp.f32 %v311_v24  ;;  %v313_v28 = vadd.f32 1.0, %v1842_v25 }
  0x17   :  { %1847 = vrcp.f32 %v312_v26  ;;  %v314_v29 = vadd.f32 1.0, %v1844_v27 }
  0x18   :  { %1849 = vrcp.f32 %v313_v28 }
  0x19   :  { %1851 = vrcp.f32 %v314_v29 }
  0x23   :  { %v1846_v30 = vpop.eup %1845 }
  0x24   :  { %v1848_v31 = vpop.eup %1847  ;;  %v2062_v32 = vmul.f32 %v1846_v30, %v1988_v0  ;;  %v2102_v0 = vrot.slane %v55_v60, %v367_v58 }
  0x25   :  { %v1850_v33 = vpop.eup %1849  ;;  %v2065_v34 = vmul.f32 %v1848_v31, %v1993_v1 }
  0x26   :  { %v1852_v35 = vpop.eup %1851  ;;  %v329_v36 = vcombine.high %v2062_v32, %v2062_v32  ;;  %v334_v37 = vsel %vm333_vm2, %v2062_v32, 0.0  ;;  %v2072_v38 = vmul.f32 %v1850_v33, %v1998_v2  ;;  %v2104_v2 = vrot.slane %v55_v60, %v371_v59 }
  0x27   :  { %v2075_v39 = vmul.f32 %v1852_v35, %v2016_v6  ;;  %v338_v41 = vsel %vm337_vm0, %v2065_v34, 0.0 }
  0x28   :  { %v335_v40 = vsel %vm333_vm2, %v329_v36, 0.0  ;;  %v330_v42 = vcombine.high %v2072_v38, %v2072_v38  ;;  %v342_v43 = vsel %vm333_vm2, %v2072_v38, 0.0  ;;  %v2114_v9 = vcombine.low %v2102_v0, %v2104_v2 }
  0x29   :  { %v336_v44 = vadd.f32 %v335_v40, %v334_v37  ;;  %v345_v46 = vsel %vm337_vm0, %v2075_v39, 0.0 }
  0x2a   :  { %v343_v45 = vsel %vm333_vm2, %v330_v42, 0.0 }
  0x2b   :  { %v339_v47 = vadd.f32 %v338_v41, %v336_v44  ;;  %v344_v48 = vadd.f32 %v343_v45, %v342_v43 }
  0x2d   :  { %340 = vadd.xlane.f32.xlu0 %v339_v47  ;;  %v346_v49 = vadd.f32 %v345_v46, %v344_v48 }
  0x31   :  { %347 = vadd.xlane.f32.xlu0 %v346_v49 }
  0x47   :  { %85 = vperm.xlu0 %1833, %v67_v50   ;;  %v65_v50 = vld [vmem:[%s2741_s4 + $0x8] sm:$0xff] }
  0x82   :  { %v81_v41 = vpop.permute.xlu1 %80 }
  0xb6   :  { %v341_v56 = vpop.xlane.xlu0 %340 }
  0xba   :  { %v348_v62 = vpop.xlane.xlu0 %347 }
  0xbb   :  { %v349_v4 = vadd.f32 %v348_v62, %v341_v56 }
  0xbd   :  { %v2106_v5 = vmul.f32 0.001953125, %v349_v4 }
  0xbf   :  { %v358_v8 = vrot.slane %v2106_v5, %v2100_v63 }
  0xc1   :  { %v360_v10 = vsub.f32 %v2062_v32, %v358_v8  ;;  %v361_v11 = vsub.f32 %v2065_v34, %v358_v8  ;;  %v362_v12 = vsub.f32 %v2072_v38, %v358_v8  ;;  %v363_v15 = vsub.f32 %v2075_v39, %v358_v8 }
  0xc2   :  { %v86_v36 = vpop.permute.xlu0 %85 }
  0xc3   :  { %v380_v13 = vmul.f32 %v2114_v9, %v360_v10  ;;  %v381_v14 = vmul.f32 %v2108_v7, %v361_v11  ;;  %v382_v16 = vmul.f32 %v2114_v9, %v362_v12  ;;  %v383_v21 = vmul.f32 %v2108_v7, %v363_v15 }
  0xc5   :  { %v384_v17 = vmul.f32 %v380_v13, %v380_v13  ;;  %v386_v18 = vmul.f32 %v382_v16, %v382_v16  ;;  %v385_v19 = vmul.f32 %v381_v14, %v381_v14  ;;  %v387_v28 = vmul.f32 %v383_v21, %v383_v21 }
  0xc7   :  { %v390_v20 = vcombine.high %v384_v17, %v384_v17  ;;  %v391_v22 = vcombine.high %v386_v18, %v386_v18  ;;  %v394_v23 = vsel %vm333_vm2, %v384_v17, 0.0  ;;  %v397_v27 = vsel %vm337_vm0, %v385_v19, 0.0  ;;  %v410_v19 = vld [vmem:[%s2743_s7] sm:$0xf] }
  0xc8   :  { %v401_v29 = vsel %vm333_vm2, %v386_v18, 0.0  ;;  %v404_v37 = vsel %vm337_vm0, %v387_v28, 0.0 }
  0xc9   :  { %v395_v24 = vsel %vm333_vm2, %v390_v20, 0.0  ;;  %v402_v25 = vsel %vm333_vm2, %v391_v22, 0.0  ;;  %v414_v22 = vld [vmem:[%s2744_s8] sm:$0xf] }
  0xca   :  { %v396_v26 = vadd.f32 %v395_v24, %v394_v23  ;;  %v403_v33 = vadd.f32 %v402_v25, %v401_v29 }
  0xcc   :  { %v1764_v30 = vpop.f32.mrf.mxu0  ;;  %v398_v31 = vadd.f32 %v397_v27, %v396_v26  ;;  %v405_v42 = vadd.f32 %v404_v37, %v403_v33 }
  0xce   :  { %v167_v35 = vpop.f32.mrf.mxu0  ;;  %399 = vadd.xlane.f32.xlu1 %v398_v31 }
  0xd0   :  { %v1767_v40 = vpop.f32.mrf.mxu0 }
  0xd1   :  { %v183_v43 = vadd.f32 %v1767_v40, %v86_v36 }
  0xd2   :  { %v177_v44 = vpop.f32.mrf.mxu0  ;;  %406 = vadd.xlane.f32.xlu1 %v405_v42 }
  0xd3   :  { %v190_v45 = vsub.f32 0.0, %v183_v43  ;;  %v178_v46 = vadd.f32 %v177_v44, %v81_v41 }
  0xd5   :  { %v197_v47 = vmul.f32 1.442695, %v190_v45  ;;  %v189_v48 = vsub.f32 0.0, %v178_v46 }
  0xd7   :  { %1853 = vpow2.f32 %v197_v47  ;;  %v195_v49 = vmul.f32 1.442695, %v189_v48 }
  0xd9   :  { %1855 = vpow2.f32 %v195_v49 }
  0xe3   :  { %75 = vperm.xlu1 %1834, %v65_v50  }
  0xe4   :  { %v1854_v52 = vpop.eup %1853 }
  0xe5   :  { %v202_v54 = vadd.f32 1.0, %v1854_v52 }
  0xe6   :  { %v1856_v55 = vpop.eup %1855 }
  0xe7   :  { %1857 = vrcp.f32 %v202_v54  ;;  %v201_v56 = vadd.f32 1.0, %v1856_v55  ;;  %70 = vperm.xlu1 %1834, %v64_v53  }
  0xe9   :  { %1859 = vrcp.f32 %v201_v56 }
  0xf4   :  { %v1858_v57 = vpop.eup %1857 }
  0xf5   :  { %v214_v58 = vmul.f32 %v1858_v57, %v183_v43 }
  0xf6   :  { %v1860_v59 = vpop.eup %1859 }
  0xf7   :  { %v213_v60 = vmul.f32 %v1860_v59, %v178_v46  ;;  %1769 = vmatpush3.msra.mxu1 %v214_v58  ;;  %v215_v58 = vld [vmem:[%s2746_s6] sm:$0xf] }
  0xf8   :  { %1770 = vmatprep.subr.mxu1 %v1892_v51  ;;  %v613_v59 = vld [vmem:[%s2747_s12] sm:$0xf] }
  0xf9   :  { %1771 = vmatpush3.msra.mxu1 %v213_v60 }
  0xfa   :  { %1772 = vmatprep.subr.mxu1 %v1892_v51 }
 0x157   :  { %v400_v61 = vpop.xlane.xlu1 %399 }
 0x15b   :  { %v407_v62 = vpop.xlane.xlu1 %406 }
 0x15c   :  { %v408_v4 = vadd.f32 %v407_v62, %v400_v61 }
 0x15e   :  { %v409_v8 = vmul.f32 0.001953125, %v408_v4 }
 0x15f   :  { %v76_v10 = vpop.permute.xlu1 %75 }
 0x160   :  { %v411_v11 = vadd.f32 1e-05, %v409_v8  ;;  %v173_v12 = vadd.f32 %v1764_v30, %v76_v10 }
 0x162   :  { %1861 = vrsqrt.f32 %v411_v11  ;;  %v188_v13 = vsub.f32 0.0, %v173_v12 }
 0x163   :  { %v71_v14 = vpop.permute.xlu1 %70 }
 0x164   :  { %v193_v15 = vmul.f32 1.442695, %v188_v13  ;;  %v168_v16 = vadd.f32 %v167_v35, %v71_v14 }
 0x166   :  { %1863 = vpow2.f32 %v193_v15  ;;  %v187_v17 = vsub.f32 0.0, %v168_v16 }
 0x168   :  { %v191_v18 = vmul.f32 1.442695, %v187_v17 }
 0x16a   :  { %1865 = vpow2.f32 %v191_v18 }
 0x16f   :  { %v1862_v20 = vpop.eup %1861 }
 0x170   :  { %v413_v21 = vmul.f32 %v1862_v20, %v410_v19 }
 0x172   :  { %419 = vperm.xlu1 %1834, %v413_v21   ;;  %v415_v23 = vmul.f32 %v413_v21, %v2106_v5  ;;  %v186_v5 = vld [vmem:[%s2745_s5] sm:$0xf]  ;;  %s1895_s5 = smov 108  }
 0x173   :  { %v1864_v24 = vpop.eup %1863 }
 0x174   :  { %v200_v25 = vadd.f32 1.0, %v1864_v24  ;;  %v416_v26 = vsub.f32 %v414_v22, %v415_v23 }
 0x176   :  { %1867 = vrcp.f32 %v200_v25  ;;  %435 = vperm.xlu1 %1834, %v416_v26  }
 0x177   :  { %v1866_v27 = vpop.eup %1865 }
 0x178   :  { %v199_v28 = vadd.f32 1.0, %v1866_v27 }
 0x17a   :  { %1869 = vrcp.f32 %v199_v28 }
 0x183   :  { %v1868_v29 = vpop.eup %1867 }
 0x184   :  { %v212_v30 = vmul.f32 %v1868_v29, %v173_v12 }
 0x186   :  { %1773 = vmatpush3.msra.mxu1 %v212_v30 }
 0x187   :  { %v1870_v31 = vpop.eup %1869  ;;  %1774 = vmatprep.subr.mxu1 %v1892_v51 }
 0x188   :  { %v211_v33 = vmul.f32 %v1870_v31, %v168_v16 }
 0x18a   :  { %1775 = vmatpush3.msra.mxu1 %v211_v33 }
 0x18b   :  { %1779 = vmatprep.subr.bf16.mxu1 %v1892_v51  ;;  %1777 = vmatmul.mubr.msk.f32.vlgmr.msra.gmra.mxu1 %vm88_vm1, %v186_v5  ;;  %vm750_vm1 = vcmask 1043608  }
 0x18c   :  { %1785 = vmatprep.mubr.msk.bf16.mxu1 %vm2753_vm3, %v1892_v51 }
 0x1ed   :  { %v420_v35 = vpop.permute.xlu1 %419 }
 0x1ee   :  { %v427_v36 = vrot.slane %v420_v35, %v2100_v63 }
 0x1f0   :  { %v429_v40 = vmul.f32 %v427_v36, %v2062_v32  ;;  %v430_v41 = vmul.f32 %v427_v36, %v2065_v34  ;;  %v431_v34 = vmul.f32 %v427_v36, %v2072_v38  ;;  %v432_v48 = vmul.f32 %v427_v36, %v2075_v39 }
 0x1f1   :  { %v436_v37 = vpop.permute.xlu1 %435 }
 0x1f2   :  { %v443_v42 = vrot.slane %v436_v37, %v2100_v63 }
 0x1f4   :  { %v445_v43 = vadd.f32 %v443_v42, %v429_v40  ;;  %v446_v44 = vadd.f32 %v443_v42, %v430_v41  ;;  %v447_v47 = vadd.f32 %v443_v42, %v431_v34  ;;  %v448_v49 = vadd.f32 %v443_v42, %v432_v48 }
 0x1f6   :  { %v449_v45 = vmul.f32 %v445_v43, %v2114_v9  ;;  %v450_v46 = vmul.f32 %v446_v44, %v2108_v7  ;;  %v2177_v50 = vmul.f32 %v447_v47, %v2114_v9  ;;  %v2184_v38 = vmul.f32 %v448_v49, %v2108_v7 }
 0x1f8   :  { %464 = vst.msk [vmem:[#allocation3 + $0x10] sm:$0xf] %vm463_vm4, %v450_v46  ;;  %461 = vst [vmem:[#allocation3] sm:$0xf] %v449_v45  ;;  %530 = vrot.lane.b32.xlu0 %v449_v45, %s1895_s5  ;;  %573 = vrot.lane.b32.xlu1 %v449_v45, %s1896_s28  ;;  %v459_v32 = vcombine.high %v449_v45, %v449_v45  ;;  %v466_v39 = vcombine.low %v450_v46, %v450_v46 }
 0x1f9   :  { %v465_v52 = vcombine.low %v449_v45, %v449_v45  ;;  %v2217_v53 = vcombine.high %v2177_v50, %v2177_v50  ;;  %v764_v54 = vcombine.low %v2184_v38, %v2184_v38  ;;  %v763_v55 = vcombine.low %v2177_v50, %v2177_v50 }
 0x1fa   :  { %462 = vst [vmem:[#allocation3 + $0x8] sm:$0xf] %v459_v32 }
 0x1fc   :  { %560 = vrot.lane.b32.xlu0 %v449_v45, %s1897_s29  ;;  %577 = vrot.lane.b32.xlu1 %v450_v46, %s1896_s28 }
 0x200   :  { %513 = vrot.lane.b32.xlu0 %v449_v45, %s1898_s30  ;;  %517 = vrot.lane.b32.xlu1 %v450_v46, %s1898_s30 }
 0x204   :  { %543 = vrot.lane.b32.xlu0 %v449_v45, %s1899_s16  ;;  %547 = vrot.lane.b32.xlu1 %v450_v46, %s1899_s16 }
 0x208   :  { %469 = vrot.lane.b32.xlu0 %v449_v45, %s1900_s17  ;;  %487 = vrot.lane.b32.xlu1 %v450_v46, %s1901_s18 }
 0x20c   :  { %500 = vrot.lane.b32.xlu0 %v449_v45, %s1902_s2  ;;  %483 = vrot.lane.b32.xlu1 %v449_v45, %s1901_s18 }
 0x210   :  { %823 = vrot.lane.b32.xlu0 %v2177_v50, %s1895_s5  ;;  %863 = vrot.lane.b32.xlu1 %v2177_v50, %s1896_s28 }
 0x214   :  { %851 = vrot.lane.b32.xlu0 %v2177_v50, %s1897_s29  ;;  %867 = vrot.lane.b32.xlu1 %v2184_v38, %s1896_s28 }
 0x218   :  { %807 = vrot.lane.b32.xlu0 %v2177_v50, %s1898_s30  ;;  %811 = vrot.lane.b32.xlu1 %v2184_v38, %s1898_s30 }
 0x21c   :  { %835 = vrot.lane.b32.xlu0 %v2177_v50, %s1899_s16  ;;  %839 = vrot.lane.b32.xlu1 %v2184_v38, %s1899_s16 }
 0x220   :  { %767 = vrot.lane.b32.xlu0 %v2177_v50, %s1900_s17  ;;  %783 = vrot.lane.b32.xlu1 %v2184_v38, %s1901_s18 }
 0x224   :  { %795 = vrot.lane.b32.xlu0 %v2177_v50, %s1902_s2  ;;  %575 = vrot.lane.b32.xlu1 %v459_v32, %s1896_s28 }
 0x228   :  { %515 = vrot.lane.b32.xlu0 %v459_v32, %s1898_s30  ;;  %532 = vrot.lane.b32.xlu1 %v466_v39, %s1895_s5 }
 0x22c   :  { %545 = vrot.lane.b32.xlu0 %v459_v32, %s1899_s16  ;;  %562 = vrot.lane.b32.xlu1 %v466_v39, %s1897_s29 }
 0x230   :  { %485 = vrot.lane.b32.xlu0 %v459_v32, %s1901_s18  ;;  %528 = vrot.lane.b32.xlu1 %v465_v52, %s1895_s5 }
 0x234   :  { %467 = vrot.lane.b32.xlu0 %v465_v52, %s1900_s17  ;;  %558 = vrot.lane.b32.xlu1 %v465_v52, %s1897_s29 }
 0x238   :  { %498 = vrot.lane.b32.xlu0 %v465_v52, %s1902_s2  ;;  %471 = vrot.lane.b32.xlu1 %v466_v39, %s1900_s17 }
 0x23c   :  { %865 = vrot.lane.b32.xlu0 %v2217_v53, %s1896_s28  ;;  %502 = vrot.lane.b32.xlu1 %v466_v39, %s1902_s2 }
 0x240   :  { %809 = vrot.lane.b32.xlu0 %v2217_v53, %s1898_s30  ;;  %825 = vrot.lane.b32.xlu1 %v764_v54, %s1895_s5 }
 0x244   :  { %837 = vrot.lane.b32.xlu0 %v2217_v53, %s1899_s16  ;;  %853 = vrot.lane.b32.xlu1 %v764_v54, %s1897_s29 }
 0x248   :  { %781 = vrot.lane.b32.xlu0 %v2217_v53, %s1901_s18  ;;  %821 = vrot.lane.b32.xlu1 %v763_v55, %s1895_s5 }
 0x24b   :  { %v2240_v56 = vpop.f32.mrf.mxu1 }
 0x24c   :  { %765 = vrot.lane.b32.xlu0 %v763_v55, %s1900_s17  ;;  %849 = vrot.lane.b32.xlu1 %v763_v55, %s1897_s29 }
 0x24d   :  { %v1778_v57 = vpop.f32.mrf.mxu1 }
 0x250   :  { %793 = vrot.lane.b32.xlu0 %v763_v55, %s1902_s2  ;;  %769 = vrot.lane.b32.xlu1 %v764_v54, %s1900_s17 }
 0x254   :  { %797 = vrot.lane.b32.xlu1 %v764_v54, %s1902_s2 }
 0x258   :  { %779 = vrot.lane.b32.xlu1 %v2177_v50, %s1901_s18 }
 0x25c   :  { %218 = vperm.xlu1 %1834, %v215_v58  }
 0x260   :  { %616 = vperm.xlu1 %1834, %v613_v59  }
 0x26a   :  { %v574_v60 = vpop.permute.xlu1 %573  ;;  %v2250_v61 = vpop.permute.xlu0 %530 }
 0x26e   :  { %v578_v62 = vpop.permute.xlu1 %577  ;;  %v2252_v4 = vpop.permute.xlu0 %560 }
 0x26f   :  { %587 = vst.msk [vmem:[#allocation3 + $0x70] sm:$0xf] %vm463_vm4, %v578_v62 }
 0x272   :  { %v518_v8 = vpop.permute.xlu1 %517  ;;  %v514_v10 = vpop.permute.xlu0 %513 }
 0x273   :  { %527 = vst.msk [vmem:[#allocation3 + $0x40] sm:$0xf] %vm463_vm4, %v518_v8 }
 0x276   :  { %v548_v11 = vpop.permute.xlu1 %547  ;;  %v544_v12 = vpop.permute.xlu0 %543  ;;  %v602_v13 = vld [vmem:[#allocation3 + $0x70] sm:$0xf] }
 0x277   :  { %557 = vst.msk [vmem:[#allocation3 + $0x58] sm:$0xf] %vm463_vm4, %v548_v11  ;;  %v611_v14 = vpack.c.bf16 %v602_v13, %v602_v13 }
 0x279   :  { %v631_v15 = vsel %vm623_vm5, %v611_v14, 0 }
 0x27a   :  { %v488_v16 = vpop.permute.xlu1 %487  ;;  %1780 = vmatpush3.bf16.msra.mxu1 %v631_v15  ;;  %v2258_v17 = vpop.permute.xlu0 %469 }
 0x27b   :  { %497 = vst.msk [vmem:[#allocation3 + $0x28] sm:$0xf] %vm463_vm4, %v488_v16  ;;  %1781 = vmatprep.subr.bf16.mxu1 %v1892_v51 }
 0x27e   :  { %v484_v18 = vpop.permute.xlu1 %483  ;;  %v2262_v19 = vpop.permute.xlu0 %500 }
 0x282   :  { %v2264_v20 = vpop.permute.xlu1 %863  ;;  %v2266_v21 = vpop.permute.xlu0 %823 }
 0x286   :  { %v2268_v22 = vpop.permute.xlu1 %867  ;;  %v2270_v23 = vpop.permute.xlu0 %851 }
 0x287   :  { %876 = vst.msk [vmem:[#allocation3 + $0x70] sm:$0xf] %vm463_vm4, %v2268_v22 }
 0x28a   :  { %v2274_v24 = vpop.permute.xlu1 %811  ;;  %v2276_v25 = vpop.permute.xlu0 %807 }
 0x28e   :  { %v2278_v26 = vpop.permute.xlu1 %839  ;;  %v2280_v27 = vpop.permute.xlu0 %835 }
 0x292   :  { %v2282_v28 = vpop.permute.xlu1 %783  ;;  %v2284_v29 = vpop.permute.xlu0 %767 }
 0x296   :  { %v576_v30 = vpop.permute.xlu1 %575  ;;  %v2286_v31 = vpop.permute.xlu0 %795 }
 0x297   :  { %v580_v33 = vsel %vm579_vm6, %v574_v60, %v576_v30  ;;  %v581_v5 = vsel %vm579_vm6, %v576_v30, %v578_v62 }
 0x298   :  { %585 = vst [vmem:[#allocation3 + $0x60] sm:$0xf] %v580_v33  ;;  %586 = vst [vmem:[#allocation3 + $0x68] sm:$0xf] %v581_v5 }
 0x29a   :  { %v533_v35 = vpop.permute.xlu1 %532  ;;  %v516_v36 = vpop.permute.xlu0 %515 }
 0x29b   :  { %v536_v37 = vsel %vm534_vm8, %v2250_v61, %v533_v35  ;;  %542 = vst.msk [vmem:[#allocation3 + $0x40] sm:$0xf0] %vm2756_vm7, %v533_v35  ;;  %v520_v40 = vsel %vm519_vm9, %v514_v10, %v516_v36  ;;  %v521_v41 = vsel %vm519_vm9, %v516_v36, %v518_v8 }
 0x29c   :  { %541 = vst [vmem:[#allocation3 + $0x38] sm:$0xf0] %v536_v37  ;;  %525 = vst [vmem:[#allocation3 + $0x30] sm:$0xf] %v520_v40 }
 0x29d   :  { %526 = vst [vmem:[#allocation3 + $0x38] sm:$0xf] %v521_v41 }
 0x29e   :  { %v563_v42 = vpop.permute.xlu1 %562  ;;  %v546_v43 = vpop.permute.xlu0 %545 }
 0x29f   :  { %v566_v44 = vsel %vm2755_vm10, %v2252_v4, %v563_v42  ;;  %572 = vst.msk [vmem:[#allocation3 + $0x58] sm:$0xf0] %vm2756_vm7, %v563_v42  ;;  %v550_v45 = vsel %vm549_vm11, %v544_v12, %v546_v43  ;;  %v551_v46 = vsel %vm549_vm11, %v546_v43, %v548_v11  ;;  %v601_v32 = vld [vmem:[#allocation3 + $0x68] sm:$0xf]  ;;  %v600_v34 = vld [vmem:[#allocation3 + $0x60] sm:$0xf] }
 0x2a0   :  { %571 = vst [vmem:[#allocation3 + $0x50] sm:$0xf0] %v566_v44  ;;  %555 = vst [vmem:[#allocation3 + $0x48] sm:$0xf] %v550_v45  ;;  %v610_v47 = vpack.c.bf16 %v601_v32, %v601_v32  ;;  %v609_v48 = vpack.c.bf16 %v600_v34, %v600_v34 }
 0x2a1   :  { %556 = vst [vmem:[#allocation3 + $0x50] sm:$0xf] %v551_v46 }
 0x2a2   :  { %1711 = vmatprep.subr.msk.bf16.mxu0 %vm623_vm5, %v610_v47  ;;  %v529_v49 = vpop.permute.xlu1 %528  ;;  %v486_v39 = vpop.permute.xlu0 %485  ;;  %v625_v52 = vsel %vm623_vm5, %v609_v48, 0  ;;  %v596_v54 = vld [vmem:[#allocation3 + $0x40] sm:$0xff] }
 0x2a3   :  { %v535_v55 = vsel %vm534_vm8, %v529_v49, %v2250_v61  ;;  %v490_v57 = vsel %vm489_vm12, %v484_v18, %v486_v39  ;;  %v491_v58 = vsel %vm489_vm12, %v486_v39, %v488_v16  ;;  %644 = vmatpush1.bf16.msra.mxu0 %v625_v52  ;;  %820 = vst.msk [vmem:[#allocation3 + $0x40] sm:$0xf] %vm463_vm4, %v2274_v24 }
 0x2a4   :  { %540 = vst [vmem:[#allocation3 + $0x30] sm:$0xf0] %v535_v55  ;;  %495 = vst [vmem:[#allocation3 + $0x18] sm:$0xf] %v490_v57  ;;  %v595_v11 = vld [vmem:[#allocation3 + $0x38] sm:$0xff] }
 0x2a5   :  { %496 = vst [vmem:[#allocation3 + $0x20] sm:$0xf] %v491_v58 }
 0x2a6   :  { %v559_v59 = vpop.permute.xlu1 %558  ;;  %v468_v60 = vpop.permute.xlu0 %467  ;;  %v599_v62 = vld [vmem:[#allocation3 + $0x58] sm:$0xff] }
 0x2a7   :  { %v565_v8 = vsel %vm2755_vm10, %v559_v59, %v2252_v4  ;;  %v474_v61 = vsel %vm473_vm13, %v468_v60, %v2258_v17  ;;  %v608_v10 = vpack.c.bf16 %v599_v62, %v596_v54  ;;  %848 = vst.msk [vmem:[#allocation3 + $0x58] sm:$0xf] %vm463_vm4, %v2278_v26 }
 0x2a8   :  { %v598_v12 = vld [vmem:[#allocation3 + $0x50] sm:$0xff]  ;;  %570 = vst [vmem:[#allocation3 + $0x48] sm:$0xf0] %v565_v8  ;;  %479 = vst [vmem:[#allocation3] sm:$0xf0] %v474_v61 }
 0x2a9   :  { %v607_v13 = vpack.c.bf16 %v598_v12, %v595_v11  ;;  %1782 = vmatpush3.bf16.msra.mxu1 %v608_v10 }
 0x2aa   :  { %v472_v14 = vpop.permute.xlu1 %471  ;;  %v499_v15 = vpop.permute.xlu0 %498  ;;  %1783 = vmatprep.subr.bf16.mxu1 %v1892_v51 }
 0x2ab   :  { %645 = vmatprep.subr.bf16.mxu0 %v607_v13  ;;  %v475_v4 = vsel %vm473_vm13, %v2258_v17, %v472_v14  ;;  %482 = vst.msk [vmem:[#allocation3 + $0x10] sm:$0xf0] %vm2756_vm7, %v472_v14  ;;  %v505_v16 = vsel %vm504_vm14, %v499_v15, %v2262_v19  ;;  %v594_v35 = vld [vmem:[#allocation3 + $0x30] sm:$0xff] }
 0x2ac   :  { %480 = vst [vmem:[#allocation3 + $0x8] sm:$0xf0] %v475_v4  ;;  %510 = vst [vmem:[#allocation3 + $0x18] sm:$0xf0] %v505_v16 }
 0x2ae   :  { %v503_v18 = vpop.permute.xlu1 %502  ;;  %v866_v30 = vpop.permute.xlu0 %865 }
 0x2af   :  { %v506_v33 = vsel %vm504_vm14, %v2262_v19, %v503_v18  ;;  %512 = vst.msk [vmem:[#allocation3 + $0x28] sm:$0xf0] %vm2756_vm7, %v503_v18  ;;  %v869_v5 = vsel %vm579_vm6, %v2264_v20, %v866_v30  ;;  %v870_v17 = vsel %vm579_vm6, %v866_v30, %v2268_v22  ;;  %v597_v36 = vld [vmem:[#allocation3 + $0x48] sm:$0xff]  ;;  %v588_v37 = vld [vmem:[#allocation3] sm:$0xff] }
 0x2b0   :  { %511 = vst [vmem:[#allocation3 + $0x20] sm:$0xf0] %v506_v33  ;;  %874 = vst [vmem:[#allocation3 + $0x60] sm:$0xf] %v869_v5  ;;  %v606_v40 = vpack.c.bf16 %v597_v36, %v594_v35 }
 0x2b1   :  { %875 = vst [vmem:[#allocation3 + $0x68] sm:$0xf] %v870_v17  ;;  %760 = vst [vmem:[#allocation3] sm:$0xf] %v2177_v50  ;;  %v891_v50 = vld [vmem:[#allocation3 + $0x70] sm:$0xf] }
 0x2b2   :  { %v826_v41 = vpop.permute.xlu1 %825  ;;  %646 = vmatpush1.bf16.msra.mxu0 %v606_v40  ;;  %v810_v19 = vpop.permute.xlu0 %809  ;;  %v590_v42 = vld [vmem:[#allocation3 + $0x10] sm:$0xff]  ;;  %v900_v52 = vpack.c.bf16 %v891_v50, %v891_v50 }
 0x2b3   :  { %v828_v43 = vsel %vm534_vm8, %v2266_v21, %v826_v41  ;;  %834 = vst.msk [vmem:[#allocation3 + $0x40] sm:$0xf0] %vm2756_vm7, %v826_v41  ;;  %v813_v20 = vsel %vm519_vm9, %v2276_v25, %v810_v19  ;;  %v814_v22 = vsel %vm519_vm9, %v810_v19, %v2274_v24  ;;  %v589_v44 = vld [vmem:[#allocation3 + $0x8] sm:$0xff]  ;;  %v591_v34 = vld [vmem:[#allocation3 + $0x18] sm:$0xff] }
 0x2b4   :  { %762 = vst.msk [vmem:[#allocation3 + $0x10] sm:$0xf] %vm463_vm4, %v2184_v38  ;;  %833 = vst [vmem:[#allocation3 + $0x38] sm:$0xf0] %v828_v43  ;;  %v603_v54 = vpack.c.bf16 %v591_v34, %v588_v37  ;;  %v918_v62 = vsel %vm623_vm5, %v900_v52, 0  ;;  %v1903_v34 = vmov 1  }
 0x2b5   :  { %818 = vst [vmem:[#allocation3 + $0x30] sm:$0xf] %v813_v20  ;;  %819 = vst [vmem:[#allocation3 + $0x38] sm:$0xf] %v814_v22 }
 0x2b6   :  { %761 = vst [vmem:[#allocation3 + $0x8] sm:$0xf] %v2217_v53  ;;  %v854_v45 = vpop.permute.xlu1 %853  ;;  %v838_v46 = vpop.permute.xlu0 %837  ;;  %v593_v32 = vld [vmem:[#allocation3 + $0x28] sm:$0xff] }
 0x2b7   :  { %v856_v25 = vsel %vm2755_vm10, %v2270_v23, %v854_v45  ;;  %862 = vst.msk [vmem:[#allocation3 + $0x58] sm:$0xf0] %vm2756_vm7, %v854_v45  ;;  %v841_v24 = vsel %vm549_vm11, %v2280_v27, %v838_v46  ;;  %v842_v38 = vsel %vm549_vm11, %v838_v46, %v2278_v26  ;;  %v605_v47 = vpack.c.bf16 %v593_v32, %v590_v42  ;;  %v592_v53 = vld [vmem:[#allocation3 + $0x20] sm:$0xff]  ;;  %v612_v27 = vld [vmem:[%s2748_s11] sm:$0x3] }
 0x2b8   :  { %792 = vst.msk [vmem:[#allocation3 + $0x28] sm:$0xf] %vm463_vm4, %v2282_v28  ;;  %v890_v48 = vld [vmem:[#allocation3 + $0x68] sm:$0xf]  ;;  %v889_v49 = vld [vmem:[#allocation3 + $0x60] sm:$0xf]  ;;  %v604_v39 = vpack.c.bf16 %v592_v53, %v589_v44 }
 0x2b9   :  { %861 = vst [vmem:[#allocation3 + $0x50] sm:$0xf0] %v856_v25  ;;  %846 = vst [vmem:[#allocation3 + $0x48] sm:$0xf] %v841_v24  ;;  %1784 = vmatpush3.bf16.msra.mxu1 %v605_v47  ;;  %v899_v57 = vpack.c.bf16 %v890_v48, %v890_v48  ;;  %v898_v58 = vpack.c.bf16 %v889_v49, %v889_v49  ;;  %v902_v32 = vld [vmem:[%s2747_s12] sm:$0xf] }
 0x2ba   :  { %847 = vst [vmem:[#allocation3 + $0x50] sm:$0xf] %v842_v38  ;;  %v822_v26 = vpop.permute.xlu1 %821  ;;  %647 = vmatprep.subr.bf16.mxu0 %v604_v39  ;;  %v782_v55 = vpop.permute.xlu0 %781  ;;  %1789 = vmatprep.subr.bf16.mxu1 %v1892_v51  ;;  %s1904_s12 = smov 19  }
 0x2bb   :  { %v827_v59 = vsel %vm534_vm8, %v822_v26, %v2266_v21  ;;  %v786_v60 = vsel %vm489_vm12, %v782_v55, %v2282_v28  ;;  %648 = vmatpush1.bf16.msra.mxu0 %v603_v54  ;;  %v912_v61 = vsel %vm623_vm5, %v898_v58, 0  ;;  %v885_v28 = vld [vmem:[#allocation3 + $0x40] sm:$0xff] }
 0x2bc   :  { %832 = vst [vmem:[#allocation3 + $0x30] sm:$0xf0] %v827_v59  ;;  %791 = vst [vmem:[#allocation3 + $0x20] sm:$0xf] %v786_v60  ;;  %1786 = vmatmul.mubr.msk.bf16.vlgmr.msra.gmra.mxu1 %vm2754_vm15, %v612_v27  ;;  %1714 = vmatprep.subr.msk.bf16.mxu0 %vm623_vm5, %v899_v57  ;;  %v884_v14 = vld [vmem:[#allocation3 + $0x38] sm:$0xff] }
 0x2bd   :  { %1790 = vmatpush3.bf16.msra.mxu1 %v918_v62  ;;  %1795 = vmatprep.mubr.msk.bf16.mxu1 %vm2753_vm3, %v1892_v51 }
 0x2be   :  { %v850_v8 = vpop.permute.xlu1 %849  ;;  %1712 = vmatmul.mubr.msk.bf16.vlgmr.msra.gmra.mxu0 %vm2754_vm15, %v612_v27  ;;  %v766_v21 = vpop.permute.xlu0 %765  ;;  %1791 = vmatprep.subr.bf16.mxu1 %v1892_v51  ;;  %v888_v10 = vld [vmem:[#allocation3 + $0x58] sm:$0xff] }
 0x2bf   :  { %v855_v11 = vsel %vm2755_vm10, %v850_v8, %v2270_v23  ;;  %v771_v12 = vsel %vm473_vm13, %v766_v21, %v2284_v29  ;;  %931 = vmatpush1.bf16.msra.mxu0 %v912_v61  ;;  %v897_v13 = vpack.c.bf16 %v888_v10, %v885_v28  ;;  %952 = vmatprep.mubr.bf16.mxu0 %v1891_v3 }
 0x2c0   :  { %860 = vst [vmem:[#allocation3 + $0x48] sm:$0xf0] %v855_v11  ;;  %776 = vst [vmem:[#allocation3] sm:$0xf0] %v771_v12 }
 0x2c1   :  { %v887_v15 = vld [vmem:[#allocation3 + $0x50] sm:$0xff]  ;;  %1792 = vmatpush3.bf16.msra.mxu1 %v897_v13 }
 0x2c2   :  { %v896_v4 = vpack.c.bf16 %v887_v15, %v884_v14  ;;  %v770_v16 = vpop.permute.xlu1 %769  ;;  %v794_v18 = vpop.permute.xlu0 %793  ;;  %1793 = vmatprep.subr.bf16.mxu1 %v1892_v51 }
 0x2c3   :  { %v772_v23 = vsel %vm473_vm13, %v2284_v29, %v770_v16  ;;  %778 = vst.msk [vmem:[#allocation3 + $0x10] sm:$0xf0] %vm2756_vm7, %v770_v16  ;;  %v799_v30 = vsel %vm504_vm14, %v794_v18, %v2286_v31  ;;  %v883_v17 = vld [vmem:[#allocation3 + $0x30] sm:$0xff] }
 0x2c4   :  { %932 = vmatprep.subr.bf16.mxu0 %v896_v4  ;;  %777 = vst [vmem:[#allocation3 + $0x8] sm:$0xf0] %v772_v23  ;;  %804 = vst [vmem:[#allocation3 + $0x18] sm:$0xf0] %v799_v30 }
 0x2c6   :  { %v798_v33 = vpop.permute.xlu1 %797 }
 0x2c7   :  { %v800_v5 = vsel %vm504_vm14, %v2286_v31, %v798_v33  ;;  %806 = vst.msk [vmem:[#allocation3 + $0x28] sm:$0xf0] %vm2756_vm7, %v798_v33  ;;  %v886_v35 = vld [vmem:[#allocation3 + $0x48] sm:$0xff]  ;;  %v877_v22 = vld [vmem:[#allocation3] sm:$0xff]  ;;  %vm754_vm7 = vcmask 412672  }
 0x2c8   :  { %805 = vst [vmem:[#allocation3 + $0x20] sm:$0xf0] %v800_v5  ;;  %v895_v36 = vpack.c.bf16 %v886_v35, %v883_v17  ;;  %v901_v31 = vld [vmem:[%s2748_s11] sm:$0x3] }
 0x2ca   :  { %v780_v37 = vpop.permute.xlu1 %779  ;;  %933 = vmatpush1.bf16.msra.mxu0 %v895_v36  ;;  %v879_v40 = vld [vmem:[#allocation3 + $0x10] sm:$0xff] }
 0x2cb   :  { %v785_v29 = vsel %vm489_vm12, %v780_v37, %v782_v55  ;;  %v878_v42 = vld [vmem:[#allocation3 + $0x8] sm:$0xff] }
 0x2cc   :  { %790 = vst [vmem:[#allocation3 + $0x18] sm:$0xf] %v785_v29 }
 0x2ce   :  { %v882_v41 = vld [vmem:[#allocation3 + $0x28] sm:$0xff] }
 0x2cf   :  { %v894_v19 = vpack.c.bf16 %v882_v41, %v879_v40  ;;  %v881_v43 = vld [vmem:[#allocation3 + $0x20] sm:$0xff] }
 0x2d0   :  { %v893_v20 = vpack.c.bf16 %v881_v43, %v878_v42 }
 0x2d1   :  { %1794 = vmatpush3.bf16.msra.mxu1 %v894_v19 }
 0x2d2   :  { %934 = vmatprep.subr.bf16.mxu0 %v893_v20  ;;  %1799 = vmatprep.subr.bf16.mxu1 %v1892_v51 }
 0x2d3   :  { %v880_v44 = vld [vmem:[#allocation3 + $0x18] sm:$0xff] }
 0x2d4   :  { %1796 = vmatmul.mubr.msk.bf16.vlgmr.msra.gmra.mxu1 %vm2754_vm15, %v901_v31  ;;  %v892_v50 = vpack.c.bf16 %v880_v44, %v877_v22 }
 0x2d5   :  { %1805 = vmatprep.mubr.msk.bf16.mxu1 %vm2753_vm3, %v1892_v51  ;;  %vm751_vm3 = vcmask 1047556  }
 0x2d6   :  { %935 = vmatpush1.bf16.msra.mxu0 %v892_v50  ;;  %vm2418_vm10 = vmor %vm751_vm3, %vm750_vm1 }
 0x2d7   :  { %v219_v45 = vpop.permute.xlu1 %218 }
 0x2d8   :  { %v291_v46 = vadd.f32 %v2240_v56, %v219_v45 }
 0x2d9   :  { %1715 = vmatmul.mubr.msk.bf16.vlgmr.msra.gmra.mxu0 %vm2754_vm15, %v901_v31  ;;  %vm745_vm15 = vcmask 154624  }
 0x2da   :  { %295 = vrot.lane.b32.xlu0 %v291_v46, %s1901_s18  ;;  %1367 = vmatprep.mubr.bf16.mxu0 %v1891_v3 }
 0x2db   :  { %v617_v60 = vpop.permute.xlu1 %616 }
 0x2de   :  { %905 = vperm.xlu0 %1833, %v902_v32  }
 0x2e2   :  { %1835 = vset.pattern.permute.xlu0 %v1903_v34 }
 0x34c   :  { %v296_v25 = vpop.permute.xlu0 %295 }
 0x34d   :  { %v298_v24 = vadd.f32 %v296_v25, %v291_v46 }
 0x34f   :  { %1002 = vperm.xlu0 %1835, %v298_v24   ;;  %716 = vperm.xlu1 %1834, %v298_v24  }
 0x353   :  { %726 = vrot.lane.b32.xlu0 %v2108_v7, %s1898_s30  ;;  %722 = vrot.lane.b32.xlu1 %v2102_v0, %s1898_s30 }
 0x354   :  { %1836 = vset.pattern.permute.xlu0 %v1891_v3 }
 0x357   :  { %724 = vrot.lane.b32.xlu1 %v2104_v2, %s1898_s30 }
 0x359   :  { %v906_v62 = vpop.permute.xlu0 %905 }
 0x37c   :  { %v708_v56 = vpop.f32.mrf.mxu1 }
 0x37d   :  { %v709_v35 = vadd.f32 %v708_v56, %v617_v60 }
 0x37e   :  { %v667_v38 = vpop.f32.mrf.mxu0  ;;  %v1787_v47 = vpop.f32.mrf.mxu1 }
 0x37f   :  { %v668_v61 = vadd.f32 %v667_v38, %v617_v60 }
 0x380   :  { %v669_v53 = vpop.f32.mrf.mxu0  ;;  %v711_v48 = vpop.f32.mrf.mxu1 }
 0x381   :  { %v670_v28 = vadd.f32 %v669_v53, %v617_v60 }
 0x382   :  { %v1788_v49 = vpop.f32.mrf.mxu1  ;;  %v671_v39 = vpop.f32.mrf.mxu0 }
 0x384   :  { %v672_v52 = vpop.f32.mrf.mxu0 }
 0x394   :  { %v995_v54 = vpop.f32.mrf.mxu1 }
 0x395   :  { %v996_v36 = vadd.f32 %v995_v54, %v906_v62 }
 0x396   :  { %v1797_v27 = vpop.f32.mrf.mxu1 }
 0x398   :  { %v998_v26 = vpop.f32.mrf.mxu1 }
 0x399   :  { %v954_v55 = vpop.f32.mrf.mxu0 }
 0x39a   :  { %v1798_v57 = vpop.f32.mrf.mxu1  ;;  %v955_v10 = vadd.f32 %v954_v55, %v906_v62 }
 0x39b   :  { %v956_v58 = vpop.f32.mrf.mxu0 }
 0x39c   :  { %v957_v11 = vadd.f32 %v956_v58, %v906_v62 }
 0x39d   :  { %v958_v0 = vpop.f32.mrf.mxu0 }
 0x39f   :  { %v959_v59 = vpop.f32.mrf.mxu0 }
 0x3ca   :  { %v717_v8 = vpop.permute.xlu1 %716  ;;  %v1003_v2 = vpop.permute.xlu0 %1002 }
 0x3cb   :  { %v719_v12 = vadd.f32 %v717_v8, %v668_v61  ;;  %v720_v13 = vadd.f32 %v717_v8, %v670_v28  ;;  %v1005_v14 = vadd.f32 %v1003_v2, %v955_v10  ;;  %v1006_v15 = vadd.f32 %v1003_v2, %v957_v11 }
 0x3cc   :  { %v721_v40 = vadd.f32 %v717_v8, %v709_v35  ;;  %v1007_v41 = vadd.f32 %v1003_v2, %v996_v36 }
 0x3ce   :  { %v723_v21 = vpop.permute.xlu1 %722  ;;  %v2399_v4 = vpop.permute.xlu0 %726 }
 0x3cf   :  { %v1010_v19 = vmul.f32 %v1007_v41, %v2399_v4  ;;  %v735_v42 = vmul.f32 %v2399_v4, %v721_v40 }
 0x3d2   :  { %v725_v16 = vpop.permute.xlu1 %724 }
 0x3d3   :  { %v2402_v18 = vsel %vm519_vm9, %v723_v21, %v725_v16  ;;  %v2406_v23 = vsel %vm519_vm9, %v725_v16, %v2399_v4 }
 0x3d4   :  { %v733_v30 = vmul.f32 %v2402_v18, %v719_v12  ;;  %v734_v33 = vmul.f32 %v2406_v23, %v720_v13  ;;  %v1008_v5 = vmul.f32 %v1005_v14, %v2402_v18  ;;  %v1009_v17 = vmul.f32 %v1006_v15, %v2406_v23 }
 0x3d6   :  { %v1014_v37 = vcombine.low %v1008_v5, %v1009_v17  ;;  %v739_v29 = vcombine.low %v733_v30, %v734_v33 }
 0x3d8   :  { %1015 = vrot.lane.b32.xlu0 %v1014_v37, %s1904_s12  ;;  %740 = vrot.lane.b32.xlu1 %v739_v29, %s1904_s12 }
 0x3dc   :  { %1017 = vrot.lane.b32.xlu0 %v1010_v19, %s1904_s12  ;;  %742 = vrot.lane.b32.xlu1 %v735_v42, %s1904_s12 }
 0x44a   :  { %v1016_v43 = vpop.permute.xlu0 %1015  ;;  %v741_v20 = vpop.permute.xlu1 %740 }
 0x44b   :  { %v1019_v22 = vrot.slane %v1016_v43, 4  ;;  %v744_v44 = vrot.slane %v741_v20, 4 }
 0x44d   :  { %v1020_v50 = vsel %vm745_vm15, %v1019_v22, %v1016_v43  ;;  %v746_v45 = vsel %vm745_vm15, %v744_v44, %v741_v20 }
 0x44e   :  { %1025 = vst.msk [vmem:[#allocation2 + $0xc] sm:$0xff] %vm2418_vm10, %v1020_v50  ;;  %753 = vst.msk [vmem:[#allocation2] sm:$0xff] %vm2418_vm10, %v746_v45  ;;  %v1018_v46 = vpop.permute.xlu0 %1017  ;;  %v743_v32 = vpop.permute.xlu1 %742 }
 0x44f   :  { %v1021_v34 = vsel %vm745_vm15, %v1019_v22, %v1018_v46  ;;  %v747_v25 = vsel %vm745_vm15, %v744_v44, %v743_v32 }
 0x450   :  { %1026 = vst.msk [vmem:[#allocation2 + $0x14] sm:$0xf] %vm754_vm7, %v1021_v34  ;;  %755 = vst.msk [vmem:[#allocation2 + $0x8] sm:$0xf] %vm754_vm7, %v747_v25 }
 0x455   :  { %v1029_v24 = vld [vmem:[#allocation2 + $0xc] sm:$0xff]  ;;  %v1027_v56 = vld [vmem:[#allocation2] sm:$0xff] }
 0x456   :  { %v1033_v38 = vsub.f32 0.0, %v1029_v24  ;;  %v1031_v47 = vsub.f32 0.0, %v1027_v56 }
 0x457   :  { %v1030_v53 = vld [vmem:[#allocation2 + $0x14] sm:$0xf]  ;;  %v1028_v48 = vld [vmem:[#allocation2 + $0x8] sm:$0xf] }
 0x458   :  { %v1034_v49 = vsub.f32 0.0, %v1030_v53  ;;  %v1039_v39 = vmul.f32 1.442695, %v1033_v38  ;;  %v1032_v52 = vsub.f32 0.0, %v1028_v48  ;;  %v1035_v54 = vmul.f32 1.442695, %v1031_v47 }
 0x45a   :  { %1871 = vpow2.f32 %v1039_v39  ;;  %v1041_v27 = vmul.f32 1.442695, %v1034_v49  ;;  %v1037_v26 = vmul.f32 1.442695, %v1032_v52 }
 0x45b   :  { %1873 = vpow2.f32 %v1035_v54 }
 0x45c   :  { %1875 = vpow2.f32 %v1041_v27 }
 0x45d   :  { %1877 = vpow2.f32 %v1037_v26 }
 0x467   :  { %v1872_v55 = vpop.eup %1871 }
 0x468   :  { %v1874_v57 = vpop.eup %1873  ;;  %v1045_v58 = vadd.f32 1.0, %v1872_v55 }
 0x469   :  { %v1876_v0 = vpop.eup %1875  ;;  %v1043_v59 = vadd.f32 1.0, %v1874_v57 }
 0x46a   :  { %v1878_v60 = vpop.eup %1877  ;;  %v1046_v62 = vadd.f32 1.0, %v1876_v0  ;;  %1879 = vrcp.f32 %v1045_v58 }
 0x46b   :  { %v1044_v8 = vadd.f32 1.0, %v1878_v60  ;;  %1881 = vrcp.f32 %v1043_v59 }
 0x46c   :  { %1883 = vrcp.f32 %v1046_v62 }
 0x46d   :  { %1885 = vrcp.f32 %v1044_v8 }
 0x477   :  { %v1880_v2 = vpop.eup %1879 }
 0x478   :  { %v1882_v21 = vpop.eup %1881  ;;  %v2432_v61 = vmul.f32 %v1880_v2, %v1029_v24 }
 0x479   :  { %v1884_v28 = vpop.eup %1883  ;;  %v2434_v10 = vmul.f32 %v1882_v21, %v1027_v56  ;;  %v1124_v21 = vld [vmem:[%s2749_s9] sm:$0xf] }
 0x47a   :  { %v1886_v11 = vpop.eup %1885  ;;  %v2436_v12 = vmul.f32 %v1884_v28, %v1030_v53  ;;  %v1062_v13 = vcombine.high %v2432_v61, %v2432_v61  ;;  %v1072_v16 = vsel %vm333_vm2, %v2432_v61, 0.0 }
 0x47b   :  { %v2440_v14 = vmul.f32 %v1886_v11, %v1028_v48  ;;  %v1061_v15 = vcombine.high %v2434_v10, %v2434_v10  ;;  %v1065_v5 = vsel %vm333_vm2, %v2434_v10, 0.0 }
 0x47c   :  { %v1073_v30 = vsel %vm333_vm2, %v1062_v13, 0.0  ;;  %v1075_v35 = vsel %vm337_vm0, %v2436_v12, 0.0  ;;  %v1128_v13 = vld [vmem:[%s2750_s10] sm:$0xf] }
 0x47d   :  { %v1074_v33 = vadd.f32 %v1073_v30, %v1072_v16  ;;  %v1066_v17 = vsel %vm333_vm2, %v1061_v15, 0.0  ;;  %v1068_v29 = vsel %vm337_vm0, %v2440_v14, 0.0 }
 0x47e   :  { %v1067_v36 = vadd.f32 %v1066_v17, %v1065_v5 }
 0x47f   :  { %v1076_v37 = vadd.f32 %v1075_v35, %v1074_v33 }
 0x480   :  { %v1069_v40 = vadd.f32 %v1068_v29, %v1067_v36 }
 0x481   :  { %1077 = vadd.xlane.f32.xlu0 %v1076_v37 }
 0x482   :  { %1070 = vadd.xlane.f32.xlu1 %v1069_v40 }
 0x50a   :  { %v1078_v41 = vpop.xlane.xlu0 %1077 }
 0x50b   :  { %v1071_v19 = vpop.xlane.xlu1 %1070 }
 0x50c   :  { %v1079_v42 = vadd.f32 %v1078_v41, %v1071_v19 }
 0x50e   :  { %v1080_v43 = vmul.f32 0.001953125, %v1079_v42 }
 0x510   :  { %v1088_v20 = vrot.slane %v1080_v43, %v2100_v63 }
 0x512   :  { %v1092_v22 = vsub.f32 %v2432_v61, %v1088_v20  ;;  %v1093_v44 = vsub.f32 %v2436_v12, %v1088_v20  ;;  %v1090_v50 = vsub.f32 %v2434_v10, %v1088_v20  ;;  %v1091_v45 = vsub.f32 %v2440_v14, %v1088_v20 }
 0x514   :  { %v1096_v46 = vmul.f32 %v1092_v22, %v2114_v9  ;;  %v1097_v32 = vmul.f32 %v1093_v44, %v2108_v7  ;;  %v1094_v34 = vmul.f32 %v1090_v50, %v2114_v9  ;;  %v1095_v25 = vmul.f32 %v1091_v45, %v2108_v7  ;;  %v1582_v44 = vld [vmem:[%s2751_s14] sm:$0xf] }
 0x515   :  { %v1317_v50 = vld [vmem:[%s2751_s14] sm:$0xf] }
 0x516   :  { %v1100_v24 = vmul.f32 %v1096_v46, %v1096_v46  ;;  %v1098_v56 = vmul.f32 %v1094_v34, %v1094_v34  ;;  %v1101_v38 = vmul.f32 %v1097_v32, %v1097_v32  ;;  %v1099_v53 = vmul.f32 %v1095_v25, %v1095_v25 }
 0x518   :  { %v1105_v47 = vcombine.high %v1100_v24, %v1100_v24  ;;  %v1104_v48 = vcombine.high %v1098_v56, %v1098_v56  ;;  %v1115_v49 = vsel %vm333_vm2, %v1100_v24, 0.0  ;;  %v1108_v52 = vsel %vm333_vm2, %v1098_v56, 0.0 }
 0x519   :  { %v1118_v55 = vsel %vm337_vm0, %v1101_v38, 0.0  ;;  %v1111_v57 = vsel %vm337_vm0, %v1099_v53, 0.0  ;;  %vm2759_vm0 = vcmask 261124  }
 0x51a   :  { %v1116_v39 = vsel %vm333_vm2, %v1105_v47, 0.0  ;;  %v1109_v54 = vsel %vm333_vm2, %v1104_v48, 0.0  ;;  %vm2760_vm2 = vcmask 744448   ;;  %vm2761_vm3 = vmmov %vm2759_vm0 }
 0x51b   :  { %v1117_v27 = vadd.f32 %v1116_v39, %v1115_v49  ;;  %v1110_v26 = vadd.f32 %v1109_v54, %v1108_v52  ;;  %vm2763_vm1 = vmmov %vm2759_vm0 }
 0x51d   :  { %v1119_v58 = vadd.f32 %v1118_v55, %v1117_v27  ;;  %v1112_v0 = vadd.f32 %v1111_v57, %v1110_v26 }
 0x51f   :  { %1120 = vadd.xlane.f32.xlu1 %v1119_v58  ;;  %1113 = vadd.xlane.f32.xlu0 %v1112_v0 }
 0x5a8   :  { %v1121_v59 = vpop.xlane.xlu1 %1120  ;;  %v1114_v60 = vpop.xlane.xlu0 %1113 }
 0x5a9   :  { %v1122_v62 = vadd.f32 %v1121_v59, %v1114_v60 }
 0x5ab   :  { %v1123_v8 = vmul.f32 0.001953125, %v1122_v62 }
 0x5ad   :  { %v1125_v2 = vadd.f32 1e-05, %v1123_v8 }
 0x5af   :  { %1887 = vrsqrt.f32 %v1125_v2 }
 0x5bc   :  { %v1888_v28 = vpop.eup %1887 }
 0x5bd   :  { %v1127_v11 = vmul.f32 %v1888_v28, %v1124_v21 }
 0x5bf   :  { %1133 = vperm.xlu0 %1836, %v1127_v11   ;;  %v1129_v15 = vmul.f32 %v1127_v11, %v1080_v43 }
 0x5c1   :  { %v1130_v16 = vsub.f32 %v1128_v13, %v1129_v15 }
 0x5c3   :  { %1149 = vperm.xlu1 %1834, %v1130_v16  }
 0x63a   :  { %v1134_v30 = vpop.permute.xlu0 %1133 }
 0x63b   :  { %v1141_v33 = vrot.slane %v1134_v30, %v2100_v63 }
 0x63d   :  { %v1143_v17 = vmul.f32 %v1141_v33, %v2434_v10  ;;  %v1144_v35 = vmul.f32 %v1141_v33, %v2440_v14  ;;  %v1146_v42 = vmul.f32 %v1141_v33, %v2436_v12 }
 0x63e   :  { %v1150_v5 = vpop.permute.xlu1 %1149 }
 0x63f   :  { %v1157_v36 = vrot.slane %v1150_v5, %v2100_v63  ;;  %v1145_v63 = vmul.f32 %v1141_v33, %v2432_v61 }
 0x641   :  { %v1159_v37 = vadd.f32 %v1157_v36, %v1143_v17  ;;  %v1160_v29 = vadd.f32 %v1157_v36, %v1144_v35  ;;  %v1161_v10 = vadd.f32 %v1157_v36, %v1145_v63  ;;  %v1162_v61 = vadd.f32 %v1157_v36, %v1146_v42 }
 0x643   :  { %v1163_v40 = vmul.f32 %v1159_v37, %v2114_v9  ;;  %v1164_v41 = vmul.f32 %v1160_v29, %v2108_v7  ;;  %v2494_v14 = vmul.f32 %v1161_v10, %v2114_v9  ;;  %v2508_v9 = vmul.f32 %v1162_v61, %v2108_v7 }
 0x645   :  { %1175 = vst [vmem:[#allocation3] sm:$0xf] %v1163_v40  ;;  %1177 = vst.msk [vmem:[#allocation3 + $0x10] sm:$0xf] %vm463_vm4, %v1164_v41  ;;  %1266 = vrot.lane.b32.xlu0 %v1163_v40, %s1897_s29  ;;  %1278 = vrot.lane.b32.xlu1 %v1163_v40, %s1896_s28  ;;  %v1173_v19 = vcombine.high %v1163_v40, %v1163_v40  ;;  %v1178_v7 = vcombine.low %v1163_v40, %v1163_v40 }
 0x646   :  { %v1179_v12 = vcombine.low %v1164_v41, %v1164_v41  ;;  %v2533_v43 = vcombine.high %v2494_v14, %v2494_v14  ;;  %v1443_v20 = vcombine.low %v2494_v14, %v2494_v14  ;;  %v1444_v22 = vcombine.low %v2508_v9, %v2508_v9 }
 0x647   :  { %1176 = vst [vmem:[#allocation3 + $0x8] sm:$0xf] %v1173_v19 }
 0x649   :  { %1222 = vrot.lane.b32.xlu0 %v1163_v40, %s1898_s30  ;;  %1282 = vrot.lane.b32.xlu1 %v1164_v41, %s1896_s28 }
 0x64d   :  { %1250 = vrot.lane.b32.xlu0 %v1163_v40, %s1899_s16  ;;  %1226 = vrot.lane.b32.xlu1 %v1164_v41, %s1898_s30 }
 0x651   :  { %1182 = vrot.lane.b32.xlu0 %v1163_v40, %s1900_s17  ;;  %1238 = vrot.lane.b32.xlu1 %v1163_v40, %s1895_s5 }
 0x655   :  { %1210 = vrot.lane.b32.xlu0 %v1163_v40, %s1902_s2  ;;  %1254 = vrot.lane.b32.xlu1 %v1164_v41, %s1899_s16 }
 0x659   :  { %1503 = vrot.lane.b32.xlu0 %v2494_v14, %s1895_s5  ;;  %1198 = vrot.lane.b32.xlu1 %v1164_v41, %s1901_s18 }
 0x65d   :  { %1531 = vrot.lane.b32.xlu0 %v2494_v14, %s1897_s29  ;;  %1194 = vrot.lane.b32.xlu1 %v1163_v40, %s1901_s18 }
 0x661   :  { %1487 = vrot.lane.b32.xlu0 %v2494_v14, %s1898_s30  ;;  %1543 = vrot.lane.b32.xlu1 %v2494_v14, %s1896_s28 }
 0x665   :  { %1515 = vrot.lane.b32.xlu0 %v2494_v14, %s1899_s16  ;;  %1547 = vrot.lane.b32.xlu1 %v2508_v9, %s1896_s28 }
 0x669   :  { %1447 = vrot.lane.b32.xlu0 %v2494_v14, %s1900_s17  ;;  %1491 = vrot.lane.b32.xlu1 %v2508_v9, %s1898_s30 }
 0x66d   :  { %1475 = vrot.lane.b32.xlu0 %v2494_v14, %s1902_s2  ;;  %1519 = vrot.lane.b32.xlu1 %v2508_v9, %s1899_s16 }
 0x671   :  { %1463 = vrot.lane.b32.xlu1 %v2508_v9, %s1901_s18  ;;  %1252 = vrot.lane.b32.xlu0 %v1173_v19, %s1899_s16 }
 0x675   :  { %1196 = vrot.lane.b32.xlu0 %v1173_v19, %s1901_s18  ;;  %1280 = vrot.lane.b32.xlu1 %v1173_v19, %s1896_s28 }
 0x679   :  { %1180 = vrot.lane.b32.xlu0 %v1178_v7, %s1900_s17  ;;  %1224 = vrot.lane.b32.xlu1 %v1173_v19, %s1898_s30 }
 0x67d   :  { %1208 = vrot.lane.b32.xlu0 %v1178_v7, %s1902_s2  ;;  %1240 = vrot.lane.b32.xlu1 %v1179_v12, %s1895_s5 }
 0x681   :  { %1545 = vrot.lane.b32.xlu0 %v2533_v43, %s1896_s28  ;;  %1268 = vrot.lane.b32.xlu1 %v1179_v12, %s1897_s29 }
 0x685   :  { %1489 = vrot.lane.b32.xlu0 %v2533_v43, %s1898_s30  ;;  %1236 = vrot.lane.b32.xlu1 %v1178_v7, %s1895_s5 }
 0x689   :  { %1517 = vrot.lane.b32.xlu0 %v2533_v43, %s1899_s16  ;;  %1264 = vrot.lane.b32.xlu1 %v1178_v7, %s1897_s29 }
 0x68d   :  { %1461 = vrot.lane.b32.xlu0 %v2533_v43, %s1901_s18  ;;  %1184 = vrot.lane.b32.xlu1 %v1179_v12, %s1900_s17 }
 0x691   :  { %1445 = vrot.lane.b32.xlu0 %v1443_v20, %s1900_s17  ;;  %1212 = vrot.lane.b32.xlu1 %v1179_v12, %s1902_s2 }
 0x695   :  { %1473 = vrot.lane.b32.xlu0 %v1443_v20, %s1902_s2  ;;  %1505 = vrot.lane.b32.xlu1 %v1444_v22, %s1895_s5 }
 0x699   :  { %1585 = vperm.xlu0 %1836, %v1582_v44   ;;  %1533 = vrot.lane.b32.xlu1 %v1444_v22, %s1897_s29 }
 0x69d   :  { %1501 = vrot.lane.b32.xlu1 %v1443_v20, %s1895_s5 }
 0x6a1   :  { %1529 = vrot.lane.b32.xlu1 %v1443_v20, %s1897_s29 }
 0x6a5   :  { %1449 = vrot.lane.b32.xlu1 %v1444_v22, %s1900_s17 }
 0x6a9   :  { %1477 = vrot.lane.b32.xlu1 %v1444_v22, %s1902_s2 }
 0x6ad   :  { %1459 = vrot.lane.b32.xlu1 %v2494_v14, %s1901_s18 }
 0x6b1   :  { %1320 = vperm.xlu1 %1834, %v1317_v50  }
 0x6b7   :  { %v2568_v45 = vpop.permute.xlu0 %1266  ;;  %v1279_v46 = vpop.permute.xlu1 %1278 }
 0x6bb   :  { %v1223_v32 = vpop.permute.xlu0 %1222  ;;  %v1283_v34 = vpop.permute.xlu1 %1282 }
 0x6bc   :  { %1291 = vst.msk [vmem:[#allocation3 + $0x70] sm:$0xf] %vm463_vm4, %v1283_v34 }
 0x6bf   :  { %v1251_v25 = vpop.permute.xlu0 %1250  ;;  %v1227_v24 = vpop.permute.xlu1 %1226 }
 0x6c0   :  { %1235 = vst.msk [vmem:[#allocation3 + $0x40] sm:$0xf] %vm463_vm4, %v1227_v24 }
 0x6c3   :  { %v2572_v56 = vpop.permute.xlu0 %1182  ;;  %v2574_v38 = vpop.permute.xlu1 %1238  ;;  %v1306_v47 = vld [vmem:[#allocation3 + $0x70] sm:$0xf] }
 0x6c4   :  { %v1315_v53 = vpack.c.bf16 %v1306_v47, %v1306_v47 }
 0x6c6   :  { %v1333_v48 = vsel %vm623_vm5, %v1315_v53, 0 }
 0x6c7   :  { %v2577_v49 = vpop.permute.xlu0 %1210  ;;  %1800 = vmatpush3.bf16.msra.mxu1 %v1333_v48  ;;  %v1255_v39 = vpop.permute.xlu1 %1254 }
 0x6c8   :  { %1263 = vst.msk [vmem:[#allocation3 + $0x58] sm:$0xf] %vm463_vm4, %v1255_v39  ;;  %1801 = vmatprep.subr.bf16.mxu1 %v1892_v51 }
 0x6cb   :  { %v2581_v52 = vpop.permute.xlu0 %1503  ;;  %v1199_v54 = vpop.permute.xlu1 %1198 }
 0x6cc   :  { %1207 = vst.msk [vmem:[#allocation3 + $0x28] sm:$0xf] %vm463_vm4, %v1199_v54 }
 0x6cf   :  { %v2584_v27 = vpop.permute.xlu0 %1531  ;;  %v1195_v26 = vpop.permute.xlu1 %1194 }
 0x6d3   :  { %v2586_v55 = vpop.permute.xlu0 %1487  ;;  %v1544_v57 = vpop.permute.xlu1 %1543 }
 0x6d7   :  { %v2588_v58 = vpop.permute.xlu0 %1515  ;;  %v1548_v0 = vpop.permute.xlu1 %1547 }
 0x6d8   :  { %1556 = vst.msk [vmem:[#allocation3 + $0x70] sm:$0xf] %vm463_vm4, %v1548_v0 }
 0x6db   :  { %v2591_v59 = vpop.permute.xlu0 %1447  ;;  %v1492_v60 = vpop.permute.xlu1 %1491 }
 0x6df   :  { %v2593_v62 = vpop.permute.xlu0 %1475  ;;  %v2595_v8 = vpop.permute.xlu1 %1519 }
 0x6e3   :  { %v2597_v2 = vpop.permute.xlu1 %1463  ;;  %v1253_v21 = vpop.permute.xlu0 %1252 }
 0x6e4   :  { %v1256_v28 = vsel %vm549_vm11, %v1251_v25, %v1253_v21  ;;  %v1257_v11 = vsel %vm549_vm11, %v1253_v21, %v1255_v39 }
 0x6e5   :  { %1261 = vst [vmem:[#allocation3 + $0x48] sm:$0xf] %v1256_v28  ;;  %1262 = vst [vmem:[#allocation3 + $0x50] sm:$0xf] %v1257_v11 }
 0x6e7   :  { %v1197_v13 = vpop.permute.xlu0 %1196  ;;  %v1281_v15 = vpop.permute.xlu1 %1280 }
 0x6e8   :  { %v1200_v16 = vsel %vm489_vm12, %v1195_v26, %v1197_v13  ;;  %v1201_v30 = vsel %vm489_vm12, %v1197_v13, %v1199_v54  ;;  %v1284_v33 = vsel %vm579_vm6, %v1279_v46, %v1281_v15  ;;  %v1285_v5 = vsel %vm579_vm6, %v1281_v15, %v1283_v34 }
 0x6e9   :  { %1205 = vst [vmem:[#allocation3 + $0x18] sm:$0xf] %v1200_v16  ;;  %1206 = vst [vmem:[#allocation3 + $0x20] sm:$0xf] %v1201_v30 }
 0x6ea   :  { %1289 = vst [vmem:[#allocation3 + $0x60] sm:$0xf] %v1284_v33  ;;  %1290 = vst [vmem:[#allocation3 + $0x68] sm:$0xf] %v1285_v5 }
 0x6eb   :  { %v1181_v17 = vpop.permute.xlu0 %1180  ;;  %v1225_v35 = vpop.permute.xlu1 %1224 }
 0x6ec   :  { %v1186_v36 = vsel %vm473_vm13, %v1181_v17, %v2572_v56  ;;  %v1228_v37 = vsel %vm519_vm9, %v1223_v32, %v1225_v35  ;;  %v1229_v29 = vsel %vm519_vm9, %v1225_v35, %v1227_v24 }
 0x6ed   :  { %1191 = vst [vmem:[#allocation3] sm:$0xf0] %v1186_v36  ;;  %1233 = vst [vmem:[#allocation3 + $0x30] sm:$0xf] %v1228_v37 }
 0x6ee   :  { %1234 = vst [vmem:[#allocation3 + $0x38] sm:$0xf] %v1229_v29  ;;  %v1571_v29 = vld [vmem:[#allocation3 + $0x70] sm:$0xf] }
 0x6ef   :  { %v1209_v40 = vpop.permute.xlu0 %1208  ;;  %v1241_v41 = vpop.permute.xlu1 %1240 }
 0x6f0   :  { %v1214_v19 = vsel %vm504_vm14, %v1209_v40, %v2577_v49  ;;  %v1243_v63 = vsel %vm534_vm8, %v2574_v38, %v1241_v41  ;;  %1249 = vst.msk [vmem:[#allocation3 + $0x40] sm:$0xf0] %vm2759_vm0, %v1241_v41 }
 0x6f1   :  { %v1305_v10 = vld [vmem:[#allocation3 + $0x68] sm:$0xf]  ;;  %v1304_v42 = vld [vmem:[#allocation3 + $0x60] sm:$0xf]  ;;  %1219 = vst [vmem:[#allocation3 + $0x18] sm:$0xf0] %v1214_v19 }
 0x6f2   :  { %1248 = vst [vmem:[#allocation3 + $0x38] sm:$0xf0] %v1243_v63  ;;  %v1314_v61 = vpack.c.bf16 %v1305_v10, %v1305_v10  ;;  %v1313_v7 = vpack.c.bf16 %v1304_v42, %v1304_v42 }
 0x6f3   :  { %v1546_v12 = vpop.permute.xlu0 %1545  ;;  %v1269_v20 = vpop.permute.xlu1 %1268 }
 0x6f4   :  { %1717 = vmatprep.subr.msk.bf16.mxu0 %vm623_vm5, %v1314_v61  ;;  %v1327_v22 = vsel %vm623_vm5, %v1313_v7, 0  ;;  %v1549_v44 = vsel %vm579_vm6, %v1544_v57, %v1546_v12  ;;  %v1550_v50 = vsel %vm579_vm6, %v1546_v12, %v1548_v0  ;;  %v1271_v46 = vsel %vm2760_vm2, %v2568_v45, %v1269_v20  ;;  %1277 = vst.msk [vmem:[#allocation3 + $0x58] sm:$0xf0] %vm2761_vm3, %v1269_v20  ;;  %v2621_v32 = vld [vmem:[#allocation3] sm:$0xff]  ;;  %vm2762_vm6 = vmmov %vm2760_vm2  ;;  %v1316_v20 = vld [vmem:[%s2752_s13] sm:$0x3] }
 0x6f5   :  { %1346 = vmatpush1.bf16.msra.mxu0 %v1327_v22  ;;  %1555 = vst [vmem:[#allocation3 + $0x68] sm:$0xf] %v1550_v50  ;;  %1276 = vst [vmem:[#allocation3 + $0x50] sm:$0xf0] %v1271_v46  ;;  %v1580_v7 = vpack.c.bf16 %v1571_v29, %v1571_v29  ;;  %vm2769_vm3 = vmmov 0  }
 0x6f6   :  { %1554 = vst [vmem:[#allocation3 + $0x60] sm:$0xf] %v1549_v44  ;;  %1440 = vst [vmem:[#allocation3] sm:$0xf] %v2494_v14 }
 0x6f7   :  { %v1490_v34 = vpop.permute.xlu0 %1489  ;;  %v1237_v25 = vpop.permute.xlu1 %1236  ;;  %v1300_v24 = vld [vmem:[#allocation3 + $0x40] sm:$0xff]  ;;  %v1598_v46 = vsel %vm623_vm5, %v1580_v7, 0 }
 0x6f8   :  { %v1494_v47 = vsel %vm519_vm9, %v1490_v34, %v1492_v60  ;;  %v1242_v53 = vsel %vm534_vm8, %v1237_v25, %v2574_v38  ;;  %1500 = vst.msk [vmem:[#allocation3 + $0x40] sm:$0xf] %vm463_vm4, %v1492_v60  ;;  %v1493_v11 = vsel %vm519_vm9, %v2586_v55, %v1490_v34  ;;  %vm2764_vm9 = vmmov %vm2759_vm0  ;;  %v1295_v36 = vld [vmem:[#allocation3 + $0x18] sm:$0xff] }
 0x6f9   :  { %v1299_v48 = vld [vmem:[#allocation3 + $0x38] sm:$0xff]  ;;  %1247 = vst [vmem:[#allocation3 + $0x30] sm:$0xf0] %v1242_v53  ;;  %v1307_v12 = vpack.c.bf16 %v1295_v36, %v2621_v32 }
 0x6fa   :  { %1499 = vst [vmem:[#allocation3 + $0x38] sm:$0xf] %v1494_v47 }
 0x6fb   :  { %v1518_v39 = vpop.permute.xlu0 %1517  ;;  %v1265_v54 = vpop.permute.xlu1 %1264  ;;  %v1303_v26 = vld [vmem:[#allocation3 + $0x58] sm:$0xff] }
 0x6fc   :  { %v1522_v57 = vsel %vm549_vm11, %v1518_v39, %v2595_v8  ;;  %v1270_v14 = vsel %vm2762_vm6, %v1265_v54, %v2568_v45  ;;  %v1312_v0 = vpack.c.bf16 %v1303_v26, %v1300_v24  ;;  %1528 = vst.msk [vmem:[#allocation3 + $0x58] sm:$0xf] %vm463_vm4, %v2595_v8  ;;  %v1302_v21 = vld [vmem:[#allocation3 + $0x50] sm:$0xff]  ;;  %v1521_v16 = vsel %vm549_vm11, %v2588_v58, %v1518_v39  ;;  %vm2765_vm11 = vmmov %vm2759_vm0  ;;  %v1570_v42 = vld [vmem:[#allocation3 + $0x68] sm:$0xf] }
 0x6fd   :  { %1275 = vst [vmem:[#allocation3 + $0x48] sm:$0xf0] %v1270_v14  ;;  %v1311_v38 = vpack.c.bf16 %v1302_v21, %v1299_v48  ;;  %1527 = vst [vmem:[#allocation3 + $0x50] sm:$0xf] %v1522_v57  ;;  %v1569_v61 = vld [vmem:[#allocation3 + $0x60] sm:$0xf]  ;;  %v1579_v44 = vpack.c.bf16 %v1570_v42, %v1570_v42 }
 0x6fe   :  { %1802 = vmatpush3.bf16.msra.mxu1 %v1312_v0  ;;  %vm2766_vm0 = vmmov %vm2760_vm2 }
 0x6ff   :  { %v2634_v60 = vpop.permute.xlu0 %1461  ;;  %1347 = vmatprep.subr.bf16.mxu0 %v1311_v38  ;;  %v1185_v28 = vpop.permute.xlu1 %1184  ;;  %1803 = vmatprep.subr.bf16.mxu1 %v1892_v51  ;;  %vm2767_vm2 = vmmov %vm2763_vm1 }
 0x700   :  { %v1187_v45 = vsel %vm473_vm13, %v2572_v56, %v1185_v28  ;;  %1193 = vst.msk [vmem:[#allocation3 + $0x10] sm:$0xf0] %vm2763_vm1, %v1185_v28  ;;  %v1298_v8 = vld [vmem:[#allocation3 + $0x30] sm:$0xff]  ;;  %v1466_v19 = vsel %vm489_vm12, %v2634_v60, %v2597_v2 }
 0x701   :  { %1192 = vst [vmem:[#allocation3 + $0x8] sm:$0xf0] %v1187_v45  ;;  %1498 = vst [vmem:[#allocation3 + $0x30] sm:$0xf] %v1493_v11 }
 0x703   :  { %v1446_v13 = vpop.permute.xlu0 %1445  ;;  %v1213_v15 = vpop.permute.xlu1 %1212 }
 0x704   :  { %v1451_v30 = vsel %vm473_vm13, %v1446_v13, %v2591_v59  ;;  %v1215_v33 = vsel %vm504_vm14, %v2577_v49, %v1213_v15  ;;  %1221 = vst.msk [vmem:[#allocation3 + $0x28] sm:$0xf0] %vm2764_vm9, %v1213_v15  ;;  %v1301_v55 = vld [vmem:[#allocation3 + $0x48] sm:$0xff] }
 0x705   :  { %1456 = vst [vmem:[#allocation3] sm:$0xf0] %v1451_v30  ;;  %1220 = vst [vmem:[#allocation3 + $0x20] sm:$0xf0] %v1215_v33  ;;  %v1310_v56 = vpack.c.bf16 %v1301_v55, %v1298_v8 }
 0x706   :  { %1526 = vst [vmem:[#allocation3 + $0x48] sm:$0xf] %v1521_v16 }
 0x707   :  { %v1474_v5 = vpop.permute.xlu0 %1473  ;;  %1348 = vmatpush1.bf16.msra.mxu0 %v1310_v56  ;;  %v1506_v17 = vpop.permute.xlu1 %1505  ;;  %v1294_v35 = vld [vmem:[#allocation3 + $0x10] sm:$0xff] }
 0x708   :  { %v1479_v58 = vsel %vm504_vm14, %v1474_v5, %v2593_v62  ;;  %v1508_v37 = vsel %vm534_vm8, %v2581_v52, %v1506_v17  ;;  %1514 = vst.msk [vmem:[#allocation3 + $0x40] sm:$0xf0] %vm2765_vm11, %v1506_v17  ;;  %v1293_v49 = vld [vmem:[#allocation3 + $0x8] sm:$0xff] }
 0x709   :  { %1442 = vst.msk [vmem:[#allocation3 + $0x10] sm:$0xf] %vm463_vm4, %v2508_v9  ;;  %1484 = vst [vmem:[#allocation3 + $0x18] sm:$0xf0] %v1479_v58 }
 0x70a   :  { %1513 = vst [vmem:[#allocation3 + $0x38] sm:$0xf0] %v1508_v37  ;;  %1441 = vst [vmem:[#allocation3 + $0x8] sm:$0xf] %v2533_v43 }
 0x70b   :  { %v1534_v40 = vpop.permute.xlu1 %1533  ;;  %v1297_v41 = vld [vmem:[#allocation3 + $0x28] sm:$0xff] }
 0x70c   :  { %v1536_v63 = vsel %vm2766_vm0, %v2584_v27, %v1534_v40  ;;  %1542 = vst.msk [vmem:[#allocation3 + $0x58] sm:$0xf0] %vm2767_vm2, %v1534_v40  ;;  %v1309_v10 = vpack.c.bf16 %v1297_v41, %v1294_v35  ;;  %v1296_v9 = vld [vmem:[#allocation3 + $0x20] sm:$0xff] }
 0x70d   :  { %1472 = vst.msk [vmem:[#allocation3 + $0x28] sm:$0xf] %vm463_vm4, %v2597_v2  ;;  %1541 = vst [vmem:[#allocation3 + $0x50] sm:$0xf0] %v1536_v63  ;;  %v1308_v43 = vpack.c.bf16 %v1296_v9, %v1293_v49  ;;  %v1578_v2 = vpack.c.bf16 %v1569_v61, %v1569_v61  ;;  %vm2768_vm4 = vcmask 293888   ;;  %v1557_v13 = vld [vmem:[#allocation3] sm:$0xff] }
 0x70e   :  { %1471 = vst [vmem:[#allocation3 + $0x20] sm:$0xf] %v1466_v19  ;;  %1804 = vmatpush3.bf16.msra.mxu1 %v1309_v10  ;;  %vm2770_vm6 = vmmov %vm2768_vm4 }
 0x70f   :  { %v1502_v22 = vpop.permute.xlu1 %1501  ;;  %1349 = vmatprep.subr.bf16.mxu0 %v1308_v43  ;;  %1809 = vmatprep.subr.bf16.mxu1 %v1892_v51  ;;  %v1592_v34 = vsel %vm623_vm5, %v1578_v2, 0 }
 0x710   :  { %v1507_v50 = vsel %vm534_vm8, %v1502_v22, %v2581_v52  ;;  %1350 = vmatpush1.bf16.msra.mxu0 %v1307_v12  ;;  %v1565_v52 = vld [vmem:[#allocation3 + $0x40] sm:$0xff]  ;;  %vm2771_vm8 = vmmov %vm2766_vm0 }
 0x711   :  { %1512 = vst [vmem:[#allocation3 + $0x30] sm:$0xf0] %v1507_v50  ;;  %1806 = vmatmul.mubr.msk.bf16.vlgmr.msra.gmra.mxu1 %vm2768_vm4, %v1316_v20  ;;  %1720 = vmatprep.subr.msk.bf16.mxu0 %vm623_vm5, %v1579_v44  ;;  %v1564_v53 = vld [vmem:[#allocation3 + $0x38] sm:$0xff]  ;;  %vm2772_vm5 = vmmov %vm2763_vm1 }
 0x712   :  { %1810 = vmatpush3.bf16.msra.mxu1 %v1598_v46  ;;  %1815 = vmatprep.mubr.msk.bf16.mxu1 %vm2769_vm3, %v1892_v51 }
 0x713   :  { %v1530_v32 = vpop.permute.xlu1 %1529  ;;  %1718 = vmatmul.mubr.msk.bf16.vlgmr.msra.gmra.mxu0 %vm2770_vm6, %v1316_v20  ;;  %1811 = vmatprep.subr.bf16.mxu1 %v1892_v51  ;;  %v1568_v25 = vld [vmem:[#allocation3 + $0x58] sm:$0xff] }
 0x714   :  { %v1535_v24 = vsel %vm2771_vm8, %v1530_v32, %v2584_v27  ;;  %1611 = vmatpush1.bf16.msra.mxu0 %v1592_v34  ;;  %v1577_v47 = vpack.c.bf16 %v1568_v25, %v1565_v52  ;;  %v1567_v48 = vld [vmem:[#allocation3 + $0x50] sm:$0xff]  ;;  %1632 = vmatprep.mubr.bf16.mxu0 %v1891_v3  ;;  %v1586_v42 = vpop.permute.xlu0 %1585 }
 0x715   :  { %1540 = vst [vmem:[#allocation3 + $0x48] sm:$0xf0] %v1535_v24  ;;  %v1576_v39 = vpack.c.bf16 %v1567_v48, %v1564_v53 }
 0x716   :  { %1812 = vmatpush3.bf16.msra.mxu1 %v1577_v47  ;;  %v1889_v47 = vld [vmem:[%s2738_s15] sm:$0xff] }
 0x717   :  { %v1450_v54 = vpop.permute.xlu1 %1449  ;;  %1612 = vmatprep.subr.bf16.mxu0 %v1576_v39  ;;  %1813 = vmatprep.subr.bf16.mxu1 %v1892_v51 }
 0x718   :  { %v1452_v26 = vsel %vm473_vm13, %v2591_v59, %v1450_v54  ;;  %1458 = vst.msk [vmem:[#allocation3 + $0x10] sm:$0xf0] %vm2772_vm5, %v1450_v54  ;;  %v1563_v3 = vld [vmem:[#allocation3 + $0x30] sm:$0xff]  ;;  %vm2773_vm13 = vmmov %vm2768_vm4 }
 0x719   :  { %1457 = vst [vmem:[#allocation3 + $0x8] sm:$0xf0] %v1452_v26  ;;  %v1890_v26 = vld [vmem:[%s2738_s15 + $0xc] sm:$0xff] }
 0x71b   :  { %v1478_v27 = vpop.permute.xlu1 %1477 }
 0x71c   :  { %v1480_v57 = vsel %vm504_vm14, %v2593_v62, %v1478_v27  ;;  %1486 = vst.msk [vmem:[#allocation3 + $0x28] sm:$0xf0] %vm2763_vm1, %v1478_v27  ;;  %v1566_v14 = vld [vmem:[#allocation3 + $0x48] sm:$0xff] }
 0x71d   :  { %1485 = vst [vmem:[#allocation3 + $0x20] sm:$0xf0] %v1480_v57  ;;  %v1575_v0 = vpack.c.bf16 %v1566_v14, %v1563_v3  ;;  %v1581_v62 = vld [vmem:[%s2752_s13] sm:$0x3] }
 0x71f   :  { %v1460_v21 = vpop.permute.xlu1 %1459  ;;  %1613 = vmatpush1.bf16.msra.mxu0 %v1575_v0  ;;  %v1559_v59 = vld [vmem:[#allocation3 + $0x10] sm:$0xff] }
 0x720   :  { %v1465_v51 = vsel %vm489_vm12, %v1460_v21, %v2634_v60  ;;  %v1558_v11 = vld [vmem:[#allocation3 + $0x8] sm:$0xff]  ;;  %vm2774_vm12 = vmmov %vm2768_vm4 }
 0x721   :  { %1470 = vst [vmem:[#allocation3 + $0x18] sm:$0xf] %v1465_v51 }
 0x723   :  { %v1562_v38 = vld [vmem:[#allocation3 + $0x28] sm:$0xff] }
 0x724   :  { %v1574_v28 = vpack.c.bf16 %v1562_v38, %v1559_v59  ;;  %v1561_v45 = vld [vmem:[#allocation3 + $0x20] sm:$0xff] }
 0x725   :  { %v1573_v8 = vpack.c.bf16 %v1561_v45, %v1558_v11 }
 0x726   :  { %1814 = vmatpush3.bf16.msra.mxu1 %v1574_v28 }
 0x727   :  { %1614 = vmatprep.subr.bf16.mxu0 %v1573_v8 }
 0x728   :  { %v1560_v15 = vld [vmem:[#allocation3 + $0x18] sm:$0xff] }
 0x729   :  { %1816 = vmatmul.mubr.msk.bf16.vlgmr.msra.gmra.mxu1 %vm2773_vm13, %v1581_v62  ;;  %v1572_v16 = vpack.c.bf16 %v1560_v15, %v1557_v13 }
 0x72b   :  { %1615 = vmatpush1.bf16.msra.mxu0 %v1572_v16 }
 0x72c   :  { %v1321_v30 = vpop.permute.xlu1 %1320 }
 0x72e   :  { %1721 = vmatmul.mubr.msk.bf16.vlgmr.msra.gmra.mxu0 %vm2774_vm12, %v1581_v62 }
 0x7d1   :  { %v1410_v60 = vpop.f32.mrf.mxu1 }
 0x7d2   :  { %v1411_v40 = vadd.f32 %v1410_v60, %v1321_v30 }
 0x7d3   :  { %v1369_v33 = vpop.f32.mrf.mxu0  ;;  %v1807_v55 = vpop.f32.mrf.mxu1 }
 0x7d4   :  { %v1370_v56 = vadd.f32 %v1369_v33, %v1321_v30  ;;  %v1418_v19 = vmul.f32 %v1411_v40, %v2399_v4 }
 0x7d5   :  { %v1371_v5 = vpop.f32.mrf.mxu0  ;;  %v1413_v17 = vpop.f32.mrf.mxu1 }
 0x7d6   :  { %v1372_v35 = vadd.f32 %v1371_v5, %v1321_v30  ;;  %v1416_v37 = vmul.f32 %v1370_v56, %v2402_v18 }
 0x7d7   :  { %v1373_v36 = vpop.f32.mrf.mxu0  ;;  %v1808_v58 = vpop.f32.mrf.mxu1 }
 0x7d8   :  { %v1417_v49 = vmul.f32 %v1372_v35, %v2406_v23 }
 0x7d9   :  { %v1374_v29 = vpop.f32.mrf.mxu0 }
 0x7da   :  { %v1422_v41 = vcombine.low %v1416_v37, %v1417_v49 }
 0x7dc   :  { %1423 = vrot.lane.b32.xlu1 %v1422_v41, %s1904_s12 }
 0x7e0   :  { %1425 = vrot.lane.b32.xlu1 %v1418_v19, %s1904_s12 }
 0x7e9   :  { %v1675_v63 = vpop.f32.mrf.mxu1 }
 0x7ea   :  { %v1676_v46 = vadd.f32 %v1675_v63, %v1586_v42 }
 0x7eb   :  { %v1817_v10 = vpop.f32.mrf.mxu1 }
 0x7ec   :  { %v1683_v34 = vmul.f32 %v1676_v46, %v2399_v4 }
 0x7ed   :  { %v1678_v9 = vpop.f32.mrf.mxu1 }
 0x7ee   :  { %v1634_v61 = vpop.f32.mrf.mxu0 }
 0x7ef   :  { %v1635_v43 = vadd.f32 %v1634_v61, %v1586_v42  ;;  %v1818_v7 = vpop.f32.mrf.mxu1 }
 0x7f0   :  { %v1636_v12 = vpop.f32.mrf.mxu0 }
 0x7f1   :  { %v1637_v20 = vadd.f32 %v1636_v12, %v1586_v42  ;;  %v1681_v44 = vmul.f32 %v1635_v43, %v2402_v18 }
 0x7f2   :  { %v1638_v22 = vpop.f32.mrf.mxu0 }
 0x7f3   :  { %v1682_v2 = vmul.f32 %v1637_v20, %v2406_v23 }
 0x7f4   :  { %v1639_v50 = vpop.f32.mrf.mxu0 }
 0x7f5   :  { %v1687_v32 = vcombine.low %v1681_v44, %v1682_v2 }
 0x7f7   :  { %1688 = vrot.lane.b32.xlu0 %v1687_v32, %s1904_s12 }
 0x7fb   :  { %1690 = vrot.lane.b32.xlu0 %v1683_v34, %s1904_s12 }
 0x84e   :  { %v1424_v52 = vpop.permute.xlu1 %1423 }
 0x84f   :  { %v1427_v25 = vrot.slane %v1424_v52, 4 }
 0x851   :  { %v1428_v24 = vsel %vm745_vm15, %v1427_v25, %v1424_v52 }
 0x852   :  { %v1432_v18 = vadd.f32 %v1889_v47, %v1428_v24  ;;  %v1426_v53 = vpop.permute.xlu1 %1425 }
 0x853   :  { %v1429_v23 = vsel %vm745_vm15, %v1427_v25, %v1426_v53 }
 0x854   :  { %1434 = vst.msk [vmem:[%s2738_s15] sm:$0xff] %vm2418_vm10, %v1432_v18  ;;  %v1433_v4 = vadd.f32 %v1429_v23, %v1993_v1 }
 0x856   :  { %1435 = vst.msk [vmem:[%s2738_s15 + $0x8] sm:$0xf] %vm754_vm7, %v1433_v4 }
 0x869   :  { %v1689_v48 = vpop.permute.xlu0 %1688 }
 0x86a   :  { %v1692_v39 = vrot.slane %v1689_v48, 4 }
 0x86c   :  { %v1693_v54 = vsel %vm745_vm15, %v1692_v39, %v1689_v48 }
 0x86d   :  { %v1697_v27 = vadd.f32 %v1890_v26, %v1693_v54  ;;  %v1691_v57 = vpop.permute.xlu0 %1690 }
 0x86e   :  { %v1694_v3 = vsel %vm745_vm15, %v1692_v39, %v1691_v57 }
 0x86f   :  { %1723 = vst.msk [vmem:[%s2738_s15 + $0xc] sm:$0xff] %vm2418_vm10, %v1697_v27  ;;  %v1698_v1 = vadd.f32 %v1694_v3, %v2016_v6 }
 0x871   :  { %1724 = vst.msk [vmem:[%s2738_s15 + $0x14] sm:$0xf] %vm754_vm7, %v1698_v1 }

</bundles_post_ra>
